<compile_context>
chip_gen: v5e
topology: v5e:2x2
jax: 0.10.0
libtpu: 0.0.40
codegen_flags: <defaults>
</compile_context>

<pallas_src>
import functools

import jax
import jax.numpy as jnp
import numpy as np
from jax.experimental import pallas as pl
from jax.experimental.pallas import tpu as pltpu

LANE = 128          # lanes per batch row (fixed by vreg geometry)
SUB_MAX = 128       # max sublanes (batch rows of 128) per grid step -> 16K samples
                    # VMEM/step: in 1MiB + out 1MiB (x2 double-buffered) + ~24KiB scratch
                    # ~= 4 MiB -> fits default scoped VMEM on v5e(16)/v6e(32)/v7x(32 MiB).


# ---------------------------------------------------------------------------
# Pallas kernel: one batch tile of the whole TDVP forward hot path.
# ---------------------------------------------------------------------------
def tdvp_kernel(scale_ref, mpo_ref, mpo_sym_ref, x_ref, out_ref,
                a_scr, lenv_scr, *, n, d, D, block_mask, num_chunks):
    eps = 1e-6                      # eps_div in the PyTorch forward()
    slope = 1e-5                    # LeakyReLU negative_slope
    scale = scale_ref[0]

    def w(i, l, r, j, k):           # scalar read of activated/masked MPO (SMEM)
        return mpo_ref[(((i * D + l) * D + r) * d + j) * d + k]

    def wsym(i, l, r, j, k):        # pre-symmetrized MPO (j <= k): w[j,k]+w[k,j]
        return mpo_sym_ref[(((i * D + l) * D + r) * d + j) * d + k]

    def a_idx(i, l, r):
        return (i * D + l) * D + r

    # Rolled loop over 8-sublane chunks: every temporary is one (8,128) vreg and the
    # loop boundary bounds live ranges, so the enlarged tile never spills.
    def chunk_body(c, carry):
        c8 = pl.multiple_of(c * 8, 8)
        sl = pl.ds(c8, 8)

        def xrow(i, j):             # (8, LANE) raw input row for site i, feature j
            return x_ref[i * d + j, sl, :]

        def zeros():
            return jnp.zeros((8, LANE), jnp.float32)

        def env_inv(vals):
            # Single EUP rsqrt; the per-sample uniform scale difference vs the
            # reference's 1/(||v||+eps) cancels in the downstream H / L1 norms.
            ss = None
            for v in vals:
                if v is None:
                    continue
                t = v * v
                ss = t if ss is None else ss + t
            if ss is None:
                return zeros()
            return jax.lax.rsqrt(ss + eps * eps)

        # ---- Phase 1: transfer matrices A_i[l,r] -> per-chunk VMEM scratch --------
        # A_i[b,l,r] = sum_{jk} xn[b,j] W_i[l,r,j,k] xn[b,k], xn = per-site L2-normalized
        # input (no eps, matching torch.divide(X, ||X||)).
        for i in range(n):
            rows = [xrow(i, j) for j in range(d)]
            inv_nrm = jax.lax.rsqrt(sum(r_ * r_ for r_ in rows))     # EUP rsqrt
            xn = [r_ * inv_nrm for r_ in rows]
            prods = {}
            for j in range(d):
                for k in range(j, d):
                    prods[(j, k)] = xn[j] * xn[k]
            ls = (0,) if i == 0 else tuple(range(D))            # left boundary: l = 0
            rs = (D - 1,) if i == n - 1 else tuple(range(D))    # right boundary: r = D-1
            for l in ls:
                for r in rs:
                    if not block_mask[l][r]:                    # static triangular mask
                        continue
                    acc = None
                    for j in range(d):
                        for k in range(j, d):
                            term = wsym(i, l, r, j, k) * prods[(j, k)]
                            acc = term if acc is None else acc + term
                    a_scr[a_idx(i, l, r)] = acc if acc is not None else zeros()

        # ---- Phase 2: left environments (unnormalized prefix products, each entry
        #      normalized exactly once).  The last one stays in registers. -----------
        P = [a_scr[a_idx(0, 0, r)] if block_mask[0][r] else None for r in range(D)]
        inv = env_inv(P)
        L = [P[r] * inv if P[r] is not None else zeros() for r in range(D)]
        if n > 2:                                   # lenv[0] only re-read when n > 2
            for r in range(D):
                lenv_scr[r] = L[r]
        for i in range(1, n - 1):
            Pn = []
            for r in range(D):
                acc = None
                for l in range(D):
                    if P[l] is None or not block_mask[l][r]:
                        continue
                    t = P[l] * a_scr[a_idx(i, l, r)]
                    acc = t if acc is None else acc + t
                Pn.append(acc)
            P = Pn
            inv = env_inv(P)
            L = [P[r] * inv if P[r] is not None else zeros() for r in range(D)]
            if i < n - 2:                           # last left env used immediately
                for r in range(D):
                    lenv_scr[i * D + r] = L[r]

        # ---- Phases 3+4 fused: right sweep carrying the suffix product S in
        #      registers, emitting each site's H / output on the fly. ---------------
        def emit(i, Alft, Argt):
            if 0 < i < n - 1:
                terms = [((l, r), Alft[l] * Argt[r])
                         for l in range(D) for r in range(D) if block_mask[l][r]]
            elif i == 0:
                terms = [((0, r), Argt[r]) for r in range(D) if block_mask[0][r]]
            else:                               # i == n - 1
                terms = [((l, D - 1), Alft[l]) for l in range(D)
                         if block_mask[l][D - 1]]

            H = [[None] * d for _ in range(d)]
            for j in range(d):
                for k in range(d):
                    acc = None
                    for (l, r), ev in terms:
                        t = w(i, l, r, j, k) * ev
                        acc = t if acc is None else acc + t
                    H[j][k] = acc if acc is not None else zeros()

            ss = None
            for j in range(d):
                for k in range(d):
                    t = H[j][k] * H[j][k]
                    ss = t if ss is None else ss + t
            # trainable scale folded into the (EUP) rsqrt of ||H||; uniform positive
            # scale cancels in the LeakyReLU + L1 output normalization.
            sinv = scale * jax.lax.rsqrt(ss + eps * eps)
            ok = ss == ss                        # one NaN predicate per site/sample

            ay = []
            s_sum = None
            for j in range(d):
                yj = None
                for k in range(d):
                    t = H[j][k] * xrow(i, k)     # raw (un-normalized) input
                    yj = t if yj is None else yj + t
                yj = yj * sinv                   # H norm * scale applied once per row
                yj = jnp.where(ok, yj, 0.0)      # NaN H -> 0 (matches torch)
                yj = jnp.where(yj >= 0, yj, slope * yj)   # LeakyReLU(1e-5)
                aj = jnp.abs(yj)
                ay.append(aj)
                s_sum = aj if s_sum is None else s_sum + aj
            inv_s = pl.reciprocal(s_sum)         # exact (feeds output directly)
            for j in range(d):
                out_ref[i * d + j, sl, :] = ay[j] * inv_s   # dense (8,128) stores

        # site n-1 needs only the last left environment (still in registers)
        emit(n - 1, L, None)

        # suffix products A_{site+1}..A_{n-1}[:, D-1], kept unnormalized in registers
        S = [a_scr[a_idx(n - 1, l, D - 1)] if block_mask[l][D - 1] else None
             for l in range(D)]
        for site in range(n - 2, 0, -1):
            inv = env_inv(S)
            R = [S[l] * inv if S[l] is not None else zeros() for l in range(D)]
            emit(site, [lenv_scr[(site - 1) * D + l] for l in range(D)], R)
            Sn = []
            for l in range(D):
                acc = None
                for r in range(D):
                    if S[r] is None or not block_mask[l][r]:
                        continue
                    t = a_scr[a_idx(site, l, r)] * S[r]
                    acc = t if acc is None else acc + t
                Sn.append(acc)
            S = Sn
        inv = env_inv(S)
        R = [S[l] * inv if S[l] is not None else zeros() for l in range(D)]
        emit(0, None, R)

        return carry

    jax.lax.fori_loop(0, num_chunks, chunk_body, 0)


# ---------------------------------------------------------------------------
# Wrapper: parameter activation (glue) + pallas_call + layout plumbing.
# ---------------------------------------------------------------------------
def tdvp_forward(x, mpo_param, scale, *, n, d, D, mask):
    """`mask` is a *static* numpy (D,D,d,d) array (module buffer), so its
    upper-triangular block sparsity is exploited at trace time."""
    mask_np = np.asarray(mask, dtype=np.float32)
    block_mask = tuple(tuple(bool(np.any(mask_np[l, r] != 0.0)) for r in range(D))
                       for l in range(D))

    # kernel_activation (ka=True): atan(mpo)/(pi/2 + 1e-5), then static mask.
    pi_half = jnp.float32(np.pi / 2.0 + 1e-5)
    mpo_act = (jnp.arctan(mpo_param.astype(jnp.float32)) / pi_half) * mask_np
    # Pre-symmetrized copy for Phase 1 (x^T W x only sees the symmetric part):
    # diag -> w[j,j], off-diag -> w[j,k] + w[k,j]; computed once in XLA, not per tile.
    mpo_sym = mpo_act + jnp.swapaxes(mpo_act, -1, -2)
    mpo_sym = mpo_sym - mpo_act * jnp.eye(d, dtype=jnp.float32)

    B = x.shape[0]
    lane_rows = -(-B // LANE)                         # ceil(B/128) rows of 128 lanes
    sub = min(SUB_MAX, ((lane_rows + 7) // 8) * 8)    # sublanes per grid step (mult of 8)
    batch_tile = sub * LANE
    Bp = ((B + batch_tile - 1) // batch_tile) * batch_tile
    num_tiles = Bp // batch_tile                      # >= 2 tiles uses both v7x TCs
    num_chunks = sub // 8

    # (B,n,d) -> (n*d, Bp) -> (n*d, Bp/128, 128): batch dense on sublanes x lanes.
    # Pad with ones (not zeros) so padded lanes never hit the eps-free divides.
    # TODO(synk): this relayout is an extra HBM pass of x and of the output; produce /
    # consume the (n*d, Bp/128, 128) layout directly upstream to remove it (matters
    # most on v5e's ~0.8 TB/s HBM).
    x_t = jnp.transpose(x.astype(jnp.float32), (1, 2, 0)).reshape(n * d, B)
    if Bp != B:
        x_t = jnp.pad(x_t, ((0, 0), (0, Bp - B)), constant_values=1.0)
    x_k = x_t.reshape(n * d, Bp // LANE, LANE)

    mpo_flat = mpo_act.reshape(-1)                    # (n*D*D*d*d,) in SMEM
    mpo_sym_flat = mpo_sym.reshape(-1)
    scale_arr = jnp.reshape(scale.astype(jnp.float32), (1,))

    kern = functools.partial(tdvp_kernel, n=n, d=d, D=D,
                             block_mask=block_mask, num_chunks=num_chunks)
    out = pl.pallas_call(
        kern,
        out_shape=jax.ShapeDtypeStruct((n * d, Bp // LANE, LANE), jnp.float32),
        grid=(num_tiles,),
        in_specs=[
            pl.BlockSpec(memory_space=pltpu.MemorySpace.SMEM),      # scale (1,)
            pl.BlockSpec(memory_space=pltpu.MemorySpace.SMEM),      # mpo (flat)
            pl.BlockSpec(memory_space=pltpu.MemorySpace.SMEM),      # mpo_sym (flat)
            pl.BlockSpec((n * d, sub, LANE), lambda t: (0, t, 0)),  # x tile
        ],
        out_specs=pl.BlockSpec((n * d, sub, LANE), lambda t: (0, t, 0)),
        scratch_shapes=[
            pltpu.VMEM((n * D * D, 8, LANE), jnp.float32),          # A_i[l,r] (per chunk)
            pltpu.VMEM((max(n - 1, 1) * D, 8, LANE), jnp.float32),  # Aleft     (per chunk)
        ],
        compiler_params=pltpu.CompilerParams(
            dimension_semantics=("parallel",)),       # megacore / 2 TCs on v7x
    )(scale_arr, mpo_flat, mpo_sym_flat, x_k)

    out = out.reshape(n * d, Bp)[:, :B].reshape(n, d, B)
    return jnp.transpose(out, (2, 0, 1))              # (B, n, d)


# ---------------------------------------------------------------------------
# Pure-JAX reference of the same forward pass (for verification).
# ---------------------------------------------------------------------------
def tdvp_reference(x, mpo_param, mask, scale):
    B, n, d = x.shape
    D = mpo_param.shape[1]
    eps = 1e-6
    pi_half = jnp.float32(np.pi / 2.0 + 1e-5)
    mpo = (jnp.arctan(mpo_param) / pi_half) * mask

    xn = x / jnp.linalg.norm(x, axis=-1, keepdims=True)
    A = jnp.einsum('bnj,nlrjk,bnk->bnlr', xn, mpo, xn)            # (B,n,D,D)

    P = A[:, 0, 0, :]
    Aleft = [P / (jnp.linalg.norm(P, axis=-1, keepdims=True) + eps)]
    for i in range(1, n - 1):
        P = jnp.einsum('bl,blr->br', P, A[:, i])
        Aleft.append(P / (jnp.linalg.norm(P, axis=-1, keepdims=True) + eps))

    S = A[:, n - 1, :, D - 1]
    Aright = [S / (jnp.linalg.norm(S, axis=-1, keepdims=True) + eps)]
    for i in range(1, n - 1):
        S = jnp.einsum('blr,br->bl', A[:, n - 1 - i], S)
        Aright = [S / (jnp.linalg.norm(S, axis=-1, keepdims=True) + eps)] + Aright

    outs = []
    for i in range(n):
        if i == 0:
            H = jnp.einsum('rjk,br->bjk', mpo[0, 0], Aright[0])
        elif i == n - 1:
            H = jnp.einsum('bl,ljk->bjk', Aleft[n - 2], mpo[n - 1, :, D - 1])
        else:
            H = jnp.einsum('bl,lrjk,br->bjk', Aleft[i - 1], mpo[i], Aright[i])
        nrm = jnp.sqrt(jnp.sum(H * H, axis=(-2, -1), keepdims=True)) + eps
        H = scale * H / nrm
        H = jnp.where(jnp.isnan(H), 0.0, H)
        y = jnp.einsum('bjk,bk->bj', H, x[:, i, :])
        y = jnp.where(y >= 0, y, 1e-5 * y)
        outs.append(y)
    out = jnp.stack(outs, axis=1)
    out = jnp.abs(out)
    return out / jnp.sum(out, axis=-1, keepdims=True)


if __name__ == "__main__":
    n, d, D = 8, 2, 2
    eps_init = 1.0
    cinit = 10.0 * 1.0                      # ka=True => cinit = 10 * cinit

    key = jax.random.PRNGKey(0)
    k_mpo, k_x1, k_x2 = jax.random.split(key, 3)

    # mpo parameter init: tan(randn * eps), + eye(D)*cinit on physical diagonal,
    # + cinit on the (l=0, r=D-1) block (activation != 'expm').
    mpo_param = jnp.tan(jax.random.normal(k_mpo, (n, D, D, d, d), jnp.float32) * eps_init)
    diag_add = cinit * (jnp.eye(D, dtype=jnp.float32)[None, :, :, None, None]
                        * jnp.eye(d, dtype=jnp.float32)[None, None, None, :, :])
    mpo_param = mpo_param + diag_add
    mpo_param = mpo_param.at[:, 0, D - 1, :, :].add(cinit)

    # mask: upper-triangular in (l, r) -- static module buffer.
    mask = np.ones((D, D, d, d), np.float32)
    for i in range(D):
        mask[i + 1:, i, :, :] = 0.0

    scale = jnp.float32(1.0)
    run = jax.jit(functools.partial(tdvp_forward, n=n, d=d, D=D, mask=mask))

    # Small canonical check (single tile, heavy padding path).
    x_small = jax.random.normal(k_x1, (8, n, d), jnp.float32)
    out_small = jax.block_until_ready(run(x_small, mpo_param, scale))
    ref_small = jax.block_until_ready(
        tdvp_reference(x_small, mpo_param, jnp.asarray(mask), scale))
    np.testing.assert_allclose(np.asarray(out_small), np.asarray(ref_small),
                               rtol=1e-3, atol=1e-3)

    # Multi-tile / ragged-batch check: exercises >1 grid step (megacore split on v7x),
    # the B-not-a-multiple-of-BATCH_TILE padding, and the output un-slicing.
    B_big = SUB_MAX * LANE + 123
    x_big = jax.random.normal(k_x2, (B_big, n, d), jnp.float32)
    out_big = jax.block_until_ready(run(x_big, mpo_param, scale))
    ref_big = jax.block_until_ready(
        tdvp_reference(x_big, mpo_param, jnp.asarray(mask), scale))
    np.testing.assert_allclose(np.asarray(out_big), np.asarray(ref_big),
                               rtol=1e-3, atol=2e-3)

    # TODO(synk): non-default branches (cyclic MPO trace, sequential mode,
    # activation='expm'/'exp'/'sigmoid', remove_trace/residual, ti boundary
    # vectors, out_norm != 'L1') are not lowered.
    print("KERNEL_OK")
</pallas_src>

<mosaic_0001>
module attributes {stable_mosaic.version = 11 : i64} {
  func.func @tdvp_kernel(%arg0: i32, %arg1: memref<1xf32, #tpu.memory_space<smem>>, %arg2: memref<128xf32, #tpu.memory_space<smem>>, %arg3: memref<128xf32, #tpu.memory_space<smem>>, %arg4: memref<16x8x128xf32, #tpu.memory_space<vmem>>, %arg5: memref<16x8x128xf32, #tpu.memory_space<vmem>>, %arg6: memref<32x8x128xf32, #tpu.memory_space<vmem>>, %arg7: memref<14x8x128xf32, #tpu.memory_space<vmem>>) attributes {dimension_semantics = [#tpu.dimension_semantics<parallel>], iteration_bounds = array<i64: 1>, scalar_prefetch = 0 : i64, scratch_operands = 2 : i64, tpu.core_type = #tpu.core_type<tc>, window_params = [{transform_indices = @transform_0, window_bounds = array<i64: 1>}, {transform_indices = @transform_1, window_bounds = array<i64: 128>}, {transform_indices = @transform_2, window_bounds = array<i64: 128>}, {transform_indices = @transform_3, window_bounds = array<i64: 16, 8, 128>}, {transform_indices = @transform_4, window_bounds = array<i64: 16, 8, 128>}]} {
    %c0 = arith.constant 0 : index
    %0 = memref.load %arg1[%c0] : memref<1xf32, #tpu.memory_space<smem>>
    %c0_i32 = arith.constant 0 : i32
    %c8_i32 = arith.constant 8 : i32
    %1 = arith.muli %c0_i32, %c8_i32 : i32
    %2 = tpu.assume_multiple %1, 8 : i32
    %c0_0 = arith.constant 0 : index
    %3 = arith.index_cast %2 : i32 to index
    %c0_1 = arith.constant 0 : index
    %4 = vector.load %arg4[%c0_0, %3, %c0_1] : memref<16x8x128xf32, #tpu.memory_space<vmem>>, vector<1x8x128xf32>
    %5 = vector.shape_cast %4 : vector<1x8x128xf32> to vector<8x128xf32>
    %c1 = arith.constant 1 : index
    %6 = arith.index_cast %2 : i32 to index
    %c0_2 = arith.constant 0 : index
    %7 = vector.load %arg4[%c1, %6, %c0_2] : memref<16x8x128xf32, #tpu.memory_space<vmem>>, vector<1x8x128xf32>
    %8 = vector.shape_cast %7 : vector<1x8x128xf32> to vector<8x128xf32>
    %9 = arith.mulf %5, %5 : vector<8x128xf32>
    %cst = arith.constant 0.000000e+00 : f32
    %10 = vector.broadcast %cst : f32 to vector<8x128xf32>
    %11 = arith.addf %10, %9 : vector<8x128xf32>
    %12 = arith.mulf %8, %8 : vector<8x128xf32>
    %13 = arith.addf %11, %12 : vector<8x128xf32>
    %14 = math.rsqrt %13 : vector<8x128xf32>
    %15 = arith.mulf %5, %14 : vector<8x128xf32>
    %16 = arith.mulf %8, %14 : vector<8x128xf32>
    %17 = arith.mulf %15, %15 : vector<8x128xf32>
    %18 = arith.mulf %15, %16 : vector<8x128xf32>
    %19 = arith.mulf %16, %16 : vector<8x128xf32>
    %c0_3 = arith.constant 0 : index
    %20 = memref.load %arg3[%c0_3] : memref<128xf32, #tpu.memory_space<smem>>
    %21 = vector.broadcast %20 : f32 to vector<8x128xf32>
    %22 = arith.mulf %21, %17 : vector<8x128xf32>
    %c1_4 = arith.constant 1 : index
    %23 = memref.load %arg3[%c1_4] : memref<128xf32, #tpu.memory_space<smem>>
    %24 = vector.broadcast %23 : f32 to vector<8x128xf32>
    %25 = arith.mulf %24, %18 : vector<8x128xf32>
    %26 = arith.addf %22, %25 : vector<8x128xf32>
    %c3 = arith.constant 3 : index
    %27 = memref.load %arg3[%c3] : memref<128xf32, #tpu.memory_space<smem>>
    %28 = vector.broadcast %27 : f32 to vector<8x128xf32>
    %29 = arith.mulf %28, %19 : vector<8x128xf32>
    %30 = arith.addf %26, %29 : vector<8x128xf32>
    %c0_5 = arith.constant 0 : index
    %c0_6 = arith.constant 0 : index
    %c0_7 = arith.constant 0 : index
    %31 = vector.load %arg6[%c0_5, %c0_6, %c0_7] : memref<32x8x128xf32, #tpu.memory_space<vmem>>, vector<1x8x128xf32>
    %32 = vector.shape_cast %31 : vector<1x8x128xf32> to vector<8x128xf32>
    %33 = vector.shape_cast %30 : vector<8x128xf32> to vector<1x8x128xf32>
    tpu.vector_store %arg6[%c0_5, %c0_6, %c0_7], %33 {strides = array<i32>} : memref<32x8x128xf32, #tpu.memory_space<vmem>>, vector<1x8x128xf32>,
    %c4 = arith.constant 4 : index
    %34 = memref.load %arg3[%c4] : memref<128xf32, #tpu.memory_space<smem>>
    %35 = vector.broadcast %34 : f32 to vector<8x128xf32>
    %36 = arith.mulf %35, %17 : vector<8x128xf32>
    %c5 = arith.constant 5 : index
    %37 = memref.load %arg3[%c5] : memref<128xf32, #tpu.memory_space<smem>>
    %38 = vector.broadcast %37 : f32 to vector<8x128xf32>
    %39 = arith.mulf %38, %18 : vector<8x128xf32>
    %40 = arith.addf %36, %39 : vector<8x128xf32>
    %c7 = arith.constant 7 : index
    %41 = memref.load %arg3[%c7] : memref<128xf32, #tpu.memory_space<smem>>
    %42 = vector.broadcast %41 : f32 to vector<8x128xf32>
    %43 = arith.mulf %42, %19 : vector<8x128xf32>
    %44 = arith.addf %40, %43 : vector<8x128xf32>
    %c1_8 = arith.constant 1 : index
    %c0_9 = arith.constant 0 : index
    %c0_10 = arith.constant 0 : index
    %45 = vector.load %arg6[%c1_8, %c0_9, %c0_10] : memref<32x8x128xf32, #tpu.memory_space<vmem>>, vector<1x8x128xf32>
    %46 = vector.shape_cast %45 : vector<1x8x128xf32> to vector<8x128xf32>
    %47 = vector.shape_cast %44 : vector<8x128xf32> to vector<1x8x128xf32>
    tpu.vector_store %arg6[%c1_8, %c0_9, %c0_10], %47 {strides = array<i32>} : memref<32x8x128xf32, #tpu.memory_space<vmem>>, vector<1x8x128xf32>,
    %c2 = arith.constant 2 : index
    %48 = arith.index_cast %2 : i32 to index
    %c0_11 = arith.constant 0 : index
    %49 = vector.load %arg4[%c2, %48, %c0_11] : memref<16x8x128xf32, #tpu.memory_space<vmem>>, vector<1x8x128xf32>
    %50 = vector.shape_cast %49 : vector<1x8x128xf32> to vector<8x128xf32>
    %c3_12 = arith.constant 3 : index
    %51 = arith.index_cast %2 : i32 to index
    %c0_13 = arith.constant 0 : index
    %52 = vector.load %arg4[%c3_12, %51, %c0_13] : memref<16x8x128xf32, #tpu.memory_space<vmem>>, vector<1x8x128xf32>
    %53 = vector.shape_cast %52 : vector<1x8x128xf32> to vector<8x128xf32>
    %54 = arith.mulf %50, %50 : vector<8x128xf32>
    %cst_14 = arith.constant 0.000000e+00 : f32
    %55 = vector.broadcast %cst_14 : f32 to vector<8x128xf32>
    %56 = arith.addf %55, %54 : vector<8x128xf32>
    %57 = arith.mulf %53, %53 : vector<8x128xf32>
    %58 = arith.addf %56, %57 : vector<8x128xf32>
    %59 = math.rsqrt %58 : vector<8x128xf32>
    %60 = arith.mulf %50, %59 : vector<8x128xf32>
    %61 = arith.mulf %53, %59 : vector<8x128xf32>
    %62 = arith.mulf %60, %60 : vector<8x128xf32>
    %63 = arith.mulf %60, %61 : vector<8x128xf32>
    %64 = arith.mulf %61, %61 : vector<8x128xf32>
    %c16 = arith.constant 16 : index
    %65 = memref.load %arg3[%c16] : memref<128xf32, #tpu.memory_space<smem>>
    %66 = vector.broadcast %65 : f32 to vector<8x128xf32>
    %67 = arith.mulf %66, %62 : vector<8x128xf32>
    %c17 = arith.constant 17 : index
    %68 = memref.load %arg3[%c17] : memref<128xf32, #tpu.memory_space<smem>>
    %69 = vector.broadcast %68 : f32 to vector<8x128xf32>
    %70 = arith.mulf %69, %63 : vector<8x128xf32>
    %71 = arith.addf %67, %70 : vector<8x128xf32>
    %c19 = arith.constant 19 : index
    %72 = memref.load %arg3[%c19] : memref<128xf32, #tpu.memory_space<smem>>
    %73 = vector.broadcast %72 : f32 to vector<8x128xf32>
    %74 = arith.mulf %73, %64 : vector<8x128xf32>
    %75 = arith.addf %71, %74 : vector<8x128xf32>
    %c4_15 = arith.constant 4 : index
    %c0_16 = arith.constant 0 : index
    %c0_17 = arith.constant 0 : index
    %76 = vector.load %arg6[%c4_15, %c0_16, %c0_17] : memref<32x8x128xf32, #tpu.memory_space<vmem>>, vector<1x8x128xf32>
    %77 = vector.shape_cast %76 : vector<1x8x128xf32> to vector<8x128xf32>
    %78 = vector.shape_cast %75 : vector<8x128xf32> to vector<1x8x128xf32>
    tpu.vector_store %arg6[%c4_15, %c0_16, %c0_17], %78 {strides = array<i32>} : memref<32x8x128xf32, #tpu.memory_space<vmem>>, vector<1x8x128xf32>,
    %c20 = arith.constant 20 : index
    %79 = memref.load %arg3[%c20] : memref<128xf32, #tpu.memory_space<smem>>
    %80 = vector.broadcast %79 : f32 to vector<8x128xf32>
    %81 = arith.mulf %80, %62 : vector<8x128xf32>
    %c21 = arith.constant 21 : index
    %82 = memref.load %arg3[%c21] : memref<128xf32, #tpu.memory_space<smem>>
    %83 = vector.broadcast %82 : f32 to vector<8x128xf32>
    %84 = arith.mulf %83, %63 : vector<8x128xf32>
    %85 = arith.addf %81, %84 : vector<8x128xf32>
    %c23 = arith.constant 23 : index
    %86 = memref.load %arg3[%c23] : memref<128xf32, #tpu.memory_space<smem>>
    %87 = vector.broadcast %86 : f32 to vector<8x128xf32>
    %88 = arith.mulf %87, %64 : vector<8x128xf32>
    %89 = arith.addf %85, %88 : vector<8x128xf32>
    %c5_18 = arith.constant 5 : index
    %c0_19 = arith.constant 0 : index
    %c0_20 = arith.constant 0 : index
    %90 = vector.load %arg6[%c5_18, %c0_19, %c0_20] : memref<32x8x128xf32, #tpu.memory_space<vmem>>, vector<1x8x128xf32>
    %91 = vector.shape_cast %90 : vector<1x8x128xf32> to vector<8x128xf32>
    %92 = vector.shape_cast %89 : vector<8x128xf32> to vector<1x8x128xf32>
    tpu.vector_store %arg6[%c5_18, %c0_19, %c0_20], %92 {strides = array<i32>} : memref<32x8x128xf32, #tpu.memory_space<vmem>>, vector<1x8x128xf32>,
    %c28 = arith.constant 28 : index
    %93 = memref.load %arg3[%c28] : memref<128xf32, #tpu.memory_space<smem>>
    %94 = vector.broadcast %93 : f32 to vector<8x128xf32>
    %95 = arith.mulf %94, %62 : vector<8x128xf32>
    %c29 = arith.constant 29 : index
    %96 = memref.load %arg3[%c29] : memref<128xf32, #tpu.memory_space<smem>>
    %97 = vector.broadcast %96 : f32 to vector<8x128xf32>
    %98 = arith.mulf %97, %63 : vector<8x128xf32>
    %99 = arith.addf %95, %98 : vector<8x128xf32>
    %c31 = arith.constant 31 : index
    %100 = memref.load %arg3[%c31] : memref<128xf32, #tpu.memory_space<smem>>
    %101 = vector.broadcast %100 : f32 to vector<8x128xf32>
    %102 = arith.mulf %101, %64 : vector<8x128xf32>
    %103 = arith.addf %99, %102 : vector<8x128xf32>
    %c7_21 = arith.constant 7 : index
    %c0_22 = arith.constant 0 : index
    %c0_23 = arith.constant 0 : index
    %104 = vector.load %arg6[%c7_21, %c0_22, %c0_23] : memref<32x8x128xf32, #tpu.memory_space<vmem>>, vector<1x8x128xf32>
    %105 = vector.shape_cast %104 : vector<1x8x128xf32> to vector<8x128xf32>
    %106 = vector.shape_cast %103 : vector<8x128xf32> to vector<1x8x128xf32>
    tpu.vector_store %arg6[%c7_21, %c0_22, %c0_23], %106 {strides = array<i32>} : memref<32x8x128xf32, #tpu.memory_space<vmem>>, vector<1x8x128xf32>,
    %c4_24 = arith.constant 4 : index
    %107 = arith.index_cast %2 : i32 to index
    %c0_25 = arith.constant 0 : index
    %108 = vector.load %arg4[%c4_24, %107, %c0_25] : memref<16x8x128xf32, #tpu.memory_space<vmem>>, vector<1x8x128xf32>
    %109 = vector.shape_cast %108 : vector<1x8x128xf32> to vector<8x128xf32>
    %c5_26 = arith.constant 5 : index
    %110 = arith.index_cast %2 : i32 to index
    %c0_27 = arith.constant 0 : index
    %111 = vector.load %arg4[%c5_26, %110, %c0_27] : memref<16x8x128xf32, #tpu.memory_space<vmem>>, vector<1x8x128xf32>
    %112 = vector.shape_cast %111 : vector<1x8x128xf32> to vector<8x128xf32>
    %113 = arith.mulf %109, %109 : vector<8x128xf32>
    %cst_28 = arith.constant 0.000000e+00 : f32
    %114 = vector.broadcast %cst_28 : f32 to vector<8x128xf32>
    %115 = arith.addf %114, %113 : vector<8x128xf32>
    %116 = arith.mulf %112, %112 : vector<8x128xf32>
    %117 = arith.addf %115, %116 : vector<8x128xf32>
    %118 = math.rsqrt %117 : vector<8x128xf32>
    %119 = arith.mulf %109, %118 : vector<8x128xf32>
    %120 = arith.mulf %112, %118 : vector<8x128xf32>
    %121 = arith.mulf %119, %119 : vector<8x128xf32>
    %122 = arith.mulf %119, %120 : vector<8x128xf32>
    %123 = arith.mulf %120, %120 : vector<8x128xf32>
    %c32 = arith.constant 32 : index
    %124 = memref.load %arg3[%c32] : memref<128xf32, #tpu.memory_space<smem>>
    %125 = vector.broadcast %124 : f32 to vector<8x128xf32>
    %126 = arith.mulf %125, %121 : vector<8x128xf32>
    %c33 = arith.constant 33 : index
    %127 = memref.load %arg3[%c33] : memref<128xf32, #tpu.memory_space<smem>>
    %128 = vector.broadcast %127 : f32 to vector<8x128xf32>
    %129 = arith.mulf %128, %122 : vector<8x128xf32>
    %130 = arith.addf %126, %129 : vector<8x128xf32>
    %c35 = arith.constant 35 : index
    %131 = memref.load %arg3[%c35] : memref<128xf32, #tpu.memory_space<smem>>
    %132 = vector.broadcast %131 : f32 to vector<8x128xf32>
    %133 = arith.mulf %132, %123 : vector<8x128xf32>
    %134 = arith.addf %130, %133 : vector<8x128xf32>
    %c8 = arith.constant 8 : index
    %c0_29 = arith.constant 0 : index
    %c0_30 = arith.constant 0 : index
    %135 = vector.load %arg6[%c8, %c0_29, %c0_30] : memref<32x8x128xf32, #tpu.memory_space<vmem>>, vector<1x8x128xf32>
    %136 = vector.shape_cast %135 : vector<1x8x128xf32> to vector<8x128xf32>
    %137 = vector.shape_cast %134 : vector<8x128xf32> to vector<1x8x128xf32>
    tpu.vector_store %arg6[%c8, %c0_29, %c0_30], %137 {strides = array<i32>} : memref<32x8x128xf32, #tpu.memory_space<vmem>>, vector<1x8x128xf32>,
    %c36 = arith.constant 36 : index
    %138 = memref.load %arg3[%c36] : memref<128xf32, #tpu.memory_space<smem>>
    %139 = vector.broadcast %138 : f32 to vector<8x128xf32>
    %140 = arith.mulf %139, %121 : vector<8x128xf32>
    %c37 = arith.constant 37 : index
    %141 = memref.load %arg3[%c37] : memref<128xf32, #tpu.memory_space<smem>>
    %142 = vector.broadcast %141 : f32 to vector<8x128xf32>
    %143 = arith.mulf %142, %122 : vector<8x128xf32>
    %144 = arith.addf %140, %143 : vector<8x128xf32>
    %c39 = arith.constant 39 : index
    %145 = memref.load %arg3[%c39] : memref<128xf32, #tpu.memory_space<smem>>
    %146 = vector.broadcast %145 : f32 to vector<8x128xf32>
    %147 = arith.mulf %146, %123 : vector<8x128xf32>
    %148 = arith.addf %144, %147 : vector<8x128xf32>
    %c9 = arith.constant 9 : index
    %c0_31 = arith.constant 0 : index
    %c0_32 = arith.constant 0 : index
    %149 = vector.load %arg6[%c9, %c0_31, %c0_32] : memref<32x8x128xf32, #tpu.memory_space<vmem>>, vector<1x8x128xf32>
    %150 = vector.shape_cast %149 : vector<1x8x128xf32> to vector<8x128xf32>
    %151 = vector.shape_cast %148 : vector<8x128xf32> to vector<1x8x128xf32>
    tpu.vector_store %arg6[%c9, %c0_31, %c0_32], %151 {strides = array<i32>} : memref<32x8x128xf32, #tpu.memory_space<vmem>>, vector<1x8x128xf32>,
    %c44 = arith.constant 44 : index
    %152 = memref.load %arg3[%c44] : memref<128xf32, #tpu.memory_space<smem>>
    %153 = vector.broadcast %152 : f32 to vector<8x128xf32>
    %154 = arith.mulf %153, %121 : vector<8x128xf32>
    %c45 = arith.constant 45 : index
    %155 = memref.load %arg3[%c45] : memref<128xf32, #tpu.memory_space<smem>>
    %156 = vector.broadcast %155 : f32 to vector<8x128xf32>
    %157 = arith.mulf %156, %122 : vector<8x128xf32>
    %158 = arith.addf %154, %157 : vector<8x128xf32>
    %c47 = arith.constant 47 : index
    %159 = memref.load %arg3[%c47] : memref<128xf32, #tpu.memory_space<smem>>
    %160 = vector.broadcast %159 : f32 to vector<8x128xf32>
    %161 = arith.mulf %160, %123 : vector<8x128xf32>
    %162 = arith.addf %158, %161 : vector<8x128xf32>
    %c11 = arith.constant 11 : index
    %c0_33 = arith.constant 0 : index
    %c0_34 = arith.constant 0 : index
    %163 = vector.load %arg6[%c11, %c0_33, %c0_34] : memref<32x8x128xf32, #tpu.memory_space<vmem>>, vector<1x8x128xf32>
    %164 = vector.shape_cast %163 : vector<1x8x128xf32> to vector<8x128xf32>
    %165 = vector.shape_cast %162 : vector<8x128xf32> to vector<1x8x128xf32>
    tpu.vector_store %arg6[%c11, %c0_33, %c0_34], %165 {strides = array<i32>} : memref<32x8x128xf32, #tpu.memory_space<vmem>>, vector<1x8x128xf32>,
    %c6 = arith.constant 6 : index
    %166 = arith.index_cast %2 : i32 to index
    %c0_35 = arith.constant 0 : index
    %167 = vector.load %arg4[%c6, %166, %c0_35] : memref<16x8x128xf32, #tpu.memory_space<vmem>>, vector<1x8x128xf32>
    %168 = vector.shape_cast %167 : vector<1x8x128xf32> to vector<8x128xf32>
    %c7_36 = arith.constant 7 : index
    %169 = arith.index_cast %2 : i32 to index
    %c0_37 = arith.constant 0 : index
    %170 = vector.load %arg4[%c7_36, %169, %c0_37] : memref<16x8x128xf32, #tpu.memory_space<vmem>>, vector<1x8x128xf32>
    %171 = vector.shape_cast %170 : vector<1x8x128xf32> to vector<8x128xf32>
    %172 = arith.mulf %168, %168 : vector<8x128xf32>
    %cst_38 = arith.constant 0.000000e+00 : f32
    %173 = vector.broadcast %cst_38 : f32 to vector<8x128xf32>
    %174 = arith.addf %173, %172 : vector<8x128xf32>
    %175 = arith.mulf %171, %171 : vector<8x128xf32>
    %176 = arith.addf %174, %175 : vector<8x128xf32>
    %177 = math.rsqrt %176 : vector<8x128xf32>
    %178 = arith.mulf %168, %177 : vector<8x128xf32>
    %179 = arith.mulf %171, %177 : vector<8x128xf32>
    %180 = arith.mulf %178, %178 : vector<8x128xf32>
    %181 = arith.mulf %178, %179 : vector<8x128xf32>
    %182 = arith.mulf %179, %179 : vector<8x128xf32>
    %c48 = arith.constant 48 : index
    %183 = memref.load %arg3[%c48] : memref<128xf32, #tpu.memory_space<smem>>
    %184 = vector.broadcast %183 : f32 to vector<8x128xf32>
    %185 = arith.mulf %184, %180 : vector<8x128xf32>
    %c49 = arith.constant 49 : index
    %186 = memref.load %arg3[%c49] : memref<128xf32, #tpu.memory_space<smem>>
    %187 = vector.broadcast %186 : f32 to vector<8x128xf32>
    %188 = arith.mulf %187, %181 : vector<8x128xf32>
    %189 = arith.addf %185, %188 : vector<8x128xf32>
    %c51 = arith.constant 51 : index
    %190 = memref.load %arg3[%c51] : memref<128xf32, #tpu.memory_space<smem>>
    %191 = vector.broadcast %190 : f32 to vector<8x128xf32>
    %192 = arith.mulf %191, %182 : vector<8x128xf32>
    %193 = arith.addf %189, %192 : vector<8x128xf32>
    %c12 = arith.constant 12 : index
    %c0_39 = arith.constant 0 : index
    %c0_40 = arith.constant 0 : index
    %194 = vector.load %arg6[%c12, %c0_39, %c0_40] : memref<32x8x128xf32, #tpu.memory_space<vmem>>, vector<1x8x128xf32>
    %195 = vector.shape_cast %194 : vector<1x8x128xf32> to vector<8x128xf32>
    %196 = vector.shape_cast %193 : vector<8x128xf32> to vector<1x8x128xf32>
    tpu.vector_store %arg6[%c12, %c0_39, %c0_40], %196 {strides = array<i32>} : memref<32x8x128xf32, #tpu.memory_space<vmem>>, vector<1x8x128xf32>,
    %c52 = arith.constant 52 : index
    %197 = memref.load %arg3[%c52] : memref<128xf32, #tpu.memory_space<smem>>
    %198 = vector.broadcast %197 : f32 to vector<8x128xf32>
    %199 = arith.mulf %198, %180 : vector<8x128xf32>
    %c53 = arith.constant 53 : index
    %200 = memref.load %arg3[%c53] : memref<128xf32, #tpu.memory_space<smem>>
    %201 = vector.broadcast %200 : f32 to vector<8x128xf32>
    %202 = arith.mulf %201, %181 : vector<8x128xf32>
    %203 = arith.addf %199, %202 : vector<8x128xf32>
    %c55 = arith.constant 55 : index
    %204 = memref.load %arg3[%c55] : memref<128xf32, #tpu.memory_space<smem>>
    %205 = vector.broadcast %204 : f32 to vector<8x128xf32>
    %206 = arith.mulf %205, %182 : vector<8x128xf32>
    %207 = arith.addf %203, %206 : vector<8x128xf32>
    %c13 = arith.constant 13 : index
    %c0_41 = arith.constant 0 : index
    %c0_42 = arith.constant 0 : index
    %208 = vector.load %arg6[%c13, %c0_41, %c0_42] : memref<32x8x128xf32, #tpu.memory_space<vmem>>, vector<1x8x128xf32>
    %209 = vector.shape_cast %208 : vector<1x8x128xf32> to vector<8x128xf32>
    %210 = vector.shape_cast %207 : vector<8x128xf32> to vector<1x8x128xf32>
    tpu.vector_store %arg6[%c13, %c0_41, %c0_42], %210 {strides = array<i32>} : memref<32x8x128xf32, #tpu.memory_space<vmem>>, vector<1x8x128xf32>,
    %c60 = arith.constant 60 : index
    %211 = memref.load %arg3[%c60] : memref<128xf32, #tpu.memory_space<smem>>
    %212 = vector.broadcast %211 : f32 to vector<8x128xf32>
    %213 = arith.mulf %212, %180 : vector<8x128xf32>
    %c61 = arith.constant 61 : index
    %214 = memref.load %arg3[%c61] : memref<128xf32, #tpu.memory_space<smem>>
    %215 = vector.broadcast %214 : f32 to vector<8x128xf32>
    %216 = arith.mulf %215, %181 : vector<8x128xf32>
    %217 = arith.addf %213, %216 : vector<8x128xf32>
    %c63 = arith.constant 63 : index
    %218 = memref.load %arg3[%c63] : memref<128xf32, #tpu.memory_space<smem>>
    %219 = vector.broadcast %218 : f32 to vector<8x128xf32>
    %220 = arith.mulf %219, %182 : vector<8x128xf32>
    %221 = arith.addf %217, %220 : vector<8x128xf32>
    %c15 = arith.constant 15 : index
    %c0_43 = arith.constant 0 : index
    %c0_44 = arith.constant 0 : index
    %222 = vector.load %arg6[%c15, %c0_43, %c0_44] : memref<32x8x128xf32, #tpu.memory_space<vmem>>, vector<1x8x128xf32>
    %223 = vector.shape_cast %222 : vector<1x8x128xf32> to vector<8x128xf32>
    %224 = vector.shape_cast %221 : vector<8x128xf32> to vector<1x8x128xf32>
    tpu.vector_store %arg6[%c15, %c0_43, %c0_44], %224 {strides = array<i32>} : memref<32x8x128xf32, #tpu.memory_space<vmem>>, vector<1x8x128xf32>,
    %c8_45 = arith.constant 8 : index
    %225 = arith.index_cast %2 : i32 to index
    %c0_46 = arith.constant 0 : index
    %226 = vector.load %arg4[%c8_45, %225, %c0_46] : memref<16x8x128xf32, #tpu.memory_space<vmem>>, vector<1x8x128xf32>
    %227 = vector.shape_cast %226 : vector<1x8x128xf32> to vector<8x128xf32>
    %c9_47 = arith.constant 9 : index
    %228 = arith.index_cast %2 : i32 to index
    %c0_48 = arith.constant 0 : index
    %229 = vector.load %arg4[%c9_47, %228, %c0_48] : memref<16x8x128xf32, #tpu.memory_space<vmem>>, vector<1x8x128xf32>
    %230 = vector.shape_cast %229 : vector<1x8x128xf32> to vector<8x128xf32>
    %231 = arith.mulf %227, %227 : vector<8x128xf32>
    %cst_49 = arith.constant 0.000000e+00 : f32
    %232 = vector.broadcast %cst_49 : f32 to vector<8x128xf32>
    %233 = arith.addf %232, %231 : vector<8x128xf32>
    %234 = arith.mulf %230, %230 : vector<8x128xf32>
    %235 = arith.addf %233, %234 : vector<8x128xf32>
    %236 = math.rsqrt %235 : vector<8x128xf32>
    %237 = arith.mulf %227, %236 : vector<8x128xf32>
    %238 = arith.mulf %230, %236 : vector<8x128xf32>
    %239 = arith.mulf %237, %237 : vector<8x128xf32>
    %240 = arith.mulf %237, %238 : vector<8x128xf32>
    %241 = arith.mulf %238, %238 : vector<8x128xf32>
    %c64 = arith.constant 64 : index
    %242 = memref.load %arg3[%c64] : memref<128xf32, #tpu.memory_space<smem>>
    %243 = vector.broadcast %242 : f32 to vector<8x128xf32>
    %244 = arith.mulf %243, %239 : vector<8x128xf32>
    %c65 = arith.constant 65 : index
    %245 = memref.load %arg3[%c65] : memref<128xf32, #tpu.memory_space<smem>>
    %246 = vector.broadcast %245 : f32 to vector<8x128xf32>
    %247 = arith.mulf %246, %240 : vector<8x128xf32>
    %248 = arith.addf %244, %247 : vector<8x128xf32>
    %c67 = arith.constant 67 : index
    %249 = memref.load %arg3[%c67] : memref<128xf32, #tpu.memory_space<smem>>
    %250 = vector.broadcast %249 : f32 to vector<8x128xf32>
    %251 = arith.mulf %250, %241 : vector<8x128xf32>
    %252 = arith.addf %248, %251 : vector<8x128xf32>
    %c16_50 = arith.constant 16 : index
    %c0_51 = arith.constant 0 : index
    %c0_52 = arith.constant 0 : index
    %253 = vector.load %arg6[%c16_50, %c0_51, %c0_52] : memref<32x8x128xf32, #tpu.memory_space<vmem>>, vector<1x8x128xf32>
    %254 = vector.shape_cast %253 : vector<1x8x128xf32> to vector<8x128xf32>
    %255 = vector.shape_cast %252 : vector<8x128xf32> to vector<1x8x128xf32>
    tpu.vector_store %arg6[%c16_50, %c0_51, %c0_52], %255 {strides = array<i32>} : memref<32x8x128xf32, #tpu.memory_space<vmem>>, vector<1x8x128xf32>,
    %c68 = arith.constant 68 : index
    %256 = memref.load %arg3[%c68] : memref<128xf32, #tpu.memory_space<smem>>
    %257 = vector.broadcast %256 : f32 to vector<8x128xf32>
    %258 = arith.mulf %257, %239 : vector<8x128xf32>
    %c69 = arith.constant 69 : index
    %259 = memref.load %arg3[%c69] : memref<128xf32, #tpu.memory_space<smem>>
    %260 = vector.broadcast %259 : f32 to vector<8x128xf32>
    %261 = arith.mulf %260, %240 : vector<8x128xf32>
    %262 = arith.addf %258, %261 : vector<8x128xf32>
    %c71 = arith.constant 71 : index
    %263 = memref.load %arg3[%c71] : memref<128xf32, #tpu.memory_space<smem>>
    %264 = vector.broadcast %263 : f32 to vector<8x128xf32>
    %265 = arith.mulf %264, %241 : vector<8x128xf32>
    %266 = arith.addf %262, %265 : vector<8x128xf32>
    %c17_53 = arith.constant 17 : index
    %c0_54 = arith.constant 0 : index
    %c0_55 = arith.constant 0 : index
    %267 = vector.load %arg6[%c17_53, %c0_54, %c0_55] : memref<32x8x128xf32, #tpu.memory_space<vmem>>, vector<1x8x128xf32>
    %268 = vector.shape_cast %267 : vector<1x8x128xf32> to vector<8x128xf32>
    %269 = vector.shape_cast %266 : vector<8x128xf32> to vector<1x8x128xf32>
    tpu.vector_store %arg6[%c17_53, %c0_54, %c0_55], %269 {strides = array<i32>} : memref<32x8x128xf32, #tpu.memory_space<vmem>>, vector<1x8x128xf32>,
    %c76 = arith.constant 76 : index
    %270 = memref.load %arg3[%c76] : memref<128xf32, #tpu.memory_space<smem>>
    %271 = vector.broadcast %270 : f32 to vector<8x128xf32>
    %272 = arith.mulf %271, %239 : vector<8x128xf32>
    %c77 = arith.constant 77 : index
    %273 = memref.load %arg3[%c77] : memref<128xf32, #tpu.memory_space<smem>>
    %274 = vector.broadcast %273 : f32 to vector<8x128xf32>
    %275 = arith.mulf %274, %240 : vector<8x128xf32>
    %276 = arith.addf %272, %275 : vector<8x128xf32>
    %c79 = arith.constant 79 : index
    %277 = memref.load %arg3[%c79] : memref<128xf32, #tpu.memory_space<smem>>
    %278 = vector.broadcast %277 : f32 to vector<8x128xf32>
    %279 = arith.mulf %278, %241 : vector<8x128xf32>
    %280 = arith.addf %276, %279 : vector<8x128xf32>
    %c19_56 = arith.constant 19 : index
    %c0_57 = arith.constant 0 : index
    %c0_58 = arith.constant 0 : index
    %281 = vector.load %arg6[%c19_56, %c0_57, %c0_58] : memref<32x8x128xf32, #tpu.memory_space<vmem>>, vector<1x8x128xf32>
    %282 = vector.shape_cast %281 : vector<1x8x128xf32> to vector<8x128xf32>
    %283 = vector.shape_cast %280 : vector<8x128xf32> to vector<1x8x128xf32>
    tpu.vector_store %arg6[%c19_56, %c0_57, %c0_58], %283 {strides = array<i32>} : memref<32x8x128xf32, #tpu.memory_space<vmem>>, vector<1x8x128xf32>,
    %c10 = arith.constant 10 : index
    %284 = arith.index_cast %2 : i32 to index
    %c0_59 = arith.constant 0 : index
    %285 = vector.load %arg4[%c10, %284, %c0_59] : memref<16x8x128xf32, #tpu.memory_space<vmem>>, vector<1x8x128xf32>
    %286 = vector.shape_cast %285 : vector<1x8x128xf32> to vector<8x128xf32>
    %c11_60 = arith.constant 11 : index
    %287 = arith.index_cast %2 : i32 to index
    %c0_61 = arith.constant 0 : index
    %288 = vector.load %arg4[%c11_60, %287, %c0_61] : memref<16x8x128xf32, #tpu.memory_space<vmem>>, vector<1x8x128xf32>
    %289 = vector.shape_cast %288 : vector<1x8x128xf32> to vector<8x128xf32>
    %290 = arith.mulf %286, %286 : vector<8x128xf32>
    %cst_62 = arith.constant 0.000000e+00 : f32
    %291 = vector.broadcast %cst_62 : f32 to vector<8x128xf32>
    %292 = arith.addf %291, %290 : vector<8x128xf32>
    %293 = arith.mulf %289, %289 : vector<8x128xf32>
    %294 = arith.addf %292, %293 : vector<8x128xf32>
    %295 = math.rsqrt %294 : vector<8x128xf32>
    %296 = arith.mulf %286, %295 : vector<8x128xf32>
    %297 = arith.mulf %289, %295 : vector<8x128xf32>
    %298 = arith.mulf %296, %296 : vector<8x128xf32>
    %299 = arith.mulf %296, %297 : vector<8x128xf32>
    %300 = arith.mulf %297, %297 : vector<8x128xf32>
    %c80 = arith.constant 80 : index
    %301 = memref.load %arg3[%c80] : memref<128xf32, #tpu.memory_space<smem>>
    %302 = vector.broadcast %301 : f32 to vector<8x128xf32>
    %303 = arith.mulf %302, %298 : vector<8x128xf32>
    %c81 = arith.constant 81 : index
    %304 = memref.load %arg3[%c81] : memref<128xf32, #tpu.memory_space<smem>>
    %305 = vector.broadcast %304 : f32 to vector<8x128xf32>
    %306 = arith.mulf %305, %299 : vector<8x128xf32>
    %307 = arith.addf %303, %306 : vector<8x128xf32>
    %c83 = arith.constant 83 : index
    %308 = memref.load %arg3[%c83] : memref<128xf32, #tpu.memory_space<smem>>
    %309 = vector.broadcast %308 : f32 to vector<8x128xf32>
    %310 = arith.mulf %309, %300 : vector<8x128xf32>
    %311 = arith.addf %307, %310 : vector<8x128xf32>
    %c20_63 = arith.constant 20 : index
    %c0_64 = arith.constant 0 : index
    %c0_65 = arith.constant 0 : index
    %312 = vector.load %arg6[%c20_63, %c0_64, %c0_65] : memref<32x8x128xf32, #tpu.memory_space<vmem>>, vector<1x8x128xf32>
    %313 = vector.shape_cast %312 : vector<1x8x128xf32> to vector<8x128xf32>
    %314 = vector.shape_cast %311 : vector<8x128xf32> to vector<1x8x128xf32>
    tpu.vector_store %arg6[%c20_63, %c0_64, %c0_65], %314 {strides = array<i32>} : memref<32x8x128xf32, #tpu.memory_space<vmem>>, vector<1x8x128xf32>,
    %c84 = arith.constant 84 : index
    %315 = memref.load %arg3[%c84] : memref<128xf32, #tpu.memory_space<smem>>
    %316 = vector.broadcast %315 : f32 to vector<8x128xf32>
    %317 = arith.mulf %316, %298 : vector<8x128xf32>
    %c85 = arith.constant 85 : index
    %318 = memref.load %arg3[%c85] : memref<128xf32, #tpu.memory_space<smem>>
    %319 = vector.broadcast %318 : f32 to vector<8x128xf32>
    %320 = arith.mulf %319, %299 : vector<8x128xf32>
    %321 = arith.addf %317, %320 : vector<8x128xf32>
    %c87 = arith.constant 87 : index
    %322 = memref.load %arg3[%c87] : memref<128xf32, #tpu.memory_space<smem>>
    %323 = vector.broadcast %322 : f32 to vector<8x128xf32>
    %324 = arith.mulf %323, %300 : vector<8x128xf32>
    %325 = arith.addf %321, %324 : vector<8x128xf32>
    %c21_66 = arith.constant 21 : index
    %c0_67 = arith.constant 0 : index
    %c0_68 = arith.constant 0 : index
    %326 = vector.load %arg6[%c21_66, %c0_67, %c0_68] : memref<32x8x128xf32, #tpu.memory_space<vmem>>, vector<1x8x128xf32>
    %327 = vector.shape_cast %326 : vector<1x8x128xf32> to vector<8x128xf32>
    %328 = vector.shape_cast %325 : vector<8x128xf32> to vector<1x8x128xf32>
    tpu.vector_store %arg6[%c21_66, %c0_67, %c0_68], %328 {strides = array<i32>} : memref<32x8x128xf32, #tpu.memory_space<vmem>>, vector<1x8x128xf32>,
    %c92 = arith.constant 92 : index
    %329 = memref.load %arg3[%c92] : memref<128xf32, #tpu.memory_space<smem>>
    %330 = vector.broadcast %329 : f32 to vector<8x128xf32>
    %331 = arith.mulf %330, %298 : vector<8x128xf32>
    %c93 = arith.constant 93 : index
    %332 = memref.load %arg3[%c93] : memref<128xf32, #tpu.memory_space<smem>>
    %333 = vector.broadcast %332 : f32 to vector<8x128xf32>
    %334 = arith.mulf %333, %299 : vector<8x128xf32>
    %335 = arith.addf %331, %334 : vector<8x128xf32>
    %c95 = arith.constant 95 : index
    %336 = memref.load %arg3[%c95] : memref<128xf32, #tpu.memory_space<smem>>
    %337 = vector.broadcast %336 : f32 to vector<8x128xf32>
    %338 = arith.mulf %337, %300 : vector<8x128xf32>
    %339 = arith.addf %335, %338 : vector<8x128xf32>
    %c23_69 = arith.constant 23 : index
    %c0_70 = arith.constant 0 : index
    %c0_71 = arith.constant 0 : index
    %340 = vector.load %arg6[%c23_69, %c0_70, %c0_71] : memref<32x8x128xf32, #tpu.memory_space<vmem>>, vector<1x8x128xf32>
    %341 = vector.shape_cast %340 : vector<1x8x128xf32> to vector<8x128xf32>
    %342 = vector.shape_cast %339 : vector<8x128xf32> to vector<1x8x128xf32>
    tpu.vector_store %arg6[%c23_69, %c0_70, %c0_71], %342 {strides = array<i32>} : memref<32x8x128xf32, #tpu.memory_space<vmem>>, vector<1x8x128xf32>,
    %c12_72 = arith.constant 12 : index
    %343 = arith.index_cast %2 : i32 to index
    %c0_73 = arith.constant 0 : index
    %344 = vector.load %arg4[%c12_72, %343, %c0_73] : memref<16x8x128xf32, #tpu.memory_space<vmem>>, vector<1x8x128xf32>
    %345 = vector.shape_cast %344 : vector<1x8x128xf32> to vector<8x128xf32>
    %c13_74 = arith.constant 13 : index
    %346 = arith.index_cast %2 : i32 to index
    %c0_75 = arith.constant 0 : index
    %347 = vector.load %arg4[%c13_74, %346, %c0_75] : memref<16x8x128xf32, #tpu.memory_space<vmem>>, vector<1x8x128xf32>
    %348 = vector.shape_cast %347 : vector<1x8x128xf32> to vector<8x128xf32>
    %349 = arith.mulf %345, %345 : vector<8x128xf32>
    %cst_76 = arith.constant 0.000000e+00 : f32
    %350 = vector.broadcast %cst_76 : f32 to vector<8x128xf32>
    %351 = arith.addf %350, %349 : vector<8x128xf32>
    %352 = arith.mulf %348, %348 : vector<8x128xf32>
    %353 = arith.addf %351, %352 : vector<8x128xf32>
    %354 = math.rsqrt %353 : vector<8x128xf32>
    %355 = arith.mulf %345, %354 : vector<8x128xf32>
    %356 = arith.mulf %348, %354 : vector<8x128xf32>
    %357 = arith.mulf %355, %355 : vector<8x128xf32>
    %358 = arith.mulf %355, %356 : vector<8x128xf32>
    %359 = arith.mulf %356, %356 : vector<8x128xf32>
    %c96 = arith.constant 96 : index
    %360 = memref.load %arg3[%c96] : memref<128xf32, #tpu.memory_space<smem>>
    %361 = vector.broadcast %360 : f32 to vector<8x128xf32>
    %362 = arith.mulf %361, %357 : vector<8x128xf32>
    %c97 = arith.constant 97 : index
    %363 = memref.load %arg3[%c97] : memref<128xf32, #tpu.memory_space<smem>>
    %364 = vector.broadcast %363 : f32 to vector<8x128xf32>
    %365 = arith.mulf %364, %358 : vector<8x128xf32>
    %366 = arith.addf %362, %365 : vector<8x128xf32>
    %c99 = arith.constant 99 : index
    %367 = memref.load %arg3[%c99] : memref<128xf32, #tpu.memory_space<smem>>
    %368 = vector.broadcast %367 : f32 to vector<8x128xf32>
    %369 = arith.mulf %368, %359 : vector<8x128xf32>
    %370 = arith.addf %366, %369 : vector<8x128xf32>
    %c24 = arith.constant 24 : index
    %c0_77 = arith.constant 0 : index
    %c0_78 = arith.constant 0 : index
    %371 = vector.load %arg6[%c24, %c0_77, %c0_78] : memref<32x8x128xf32, #tpu.memory_space<vmem>>, vector<1x8x128xf32>
    %372 = vector.shape_cast %371 : vector<1x8x128xf32> to vector<8x128xf32>
    %373 = vector.shape_cast %370 : vector<8x128xf32> to vector<1x8x128xf32>
    tpu.vector_store %arg6[%c24, %c0_77, %c0_78], %373 {strides = array<i32>} : memref<32x8x128xf32, #tpu.memory_space<vmem>>, vector<1x8x128xf32>,
    %c100 = arith.constant 100 : index
    %374 = memref.load %arg3[%c100] : memref<128xf32, #tpu.memory_space<smem>>
    %375 = vector.broadcast %374 : f32 to vector<8x128xf32>
    %376 = arith.mulf %375, %357 : vector<8x128xf32>
    %c101 = arith.constant 101 : index
    %377 = memref.load %arg3[%c101] : memref<128xf32, #tpu.memory_space<smem>>
    %378 = vector.broadcast %377 : f32 to vector<8x128xf32>
    %379 = arith.mulf %378, %358 : vector<8x128xf32>
    %380 = arith.addf %376, %379 : vector<8x128xf32>
    %c103 = arith.constant 103 : index
    %381 = memref.load %arg3[%c103] : memref<128xf32, #tpu.memory_space<smem>>
    %382 = vector.broadcast %381 : f32 to vector<8x128xf32>
    %383 = arith.mulf %382, %359 : vector<8x128xf32>
    %384 = arith.addf %380, %383 : vector<8x128xf32>
    %c25 = arith.constant 25 : index
    %c0_79 = arith.constant 0 : index
    %c0_80 = arith.constant 0 : index
    %385 = vector.load %arg6[%c25, %c0_79, %c0_80] : memref<32x8x128xf32, #tpu.memory_space<vmem>>, vector<1x8x128xf32>
    %386 = vector.shape_cast %385 : vector<1x8x128xf32> to vector<8x128xf32>
    %387 = vector.shape_cast %384 : vector<8x128xf32> to vector<1x8x128xf32>
    tpu.vector_store %arg6[%c25, %c0_79, %c0_80], %387 {strides = array<i32>} : memref<32x8x128xf32, #tpu.memory_space<vmem>>, vector<1x8x128xf32>,
    %c108 = arith.constant 108 : index
    %388 = memref.load %arg3[%c108] : memref<128xf32, #tpu.memory_space<smem>>
    %389 = vector.broadcast %388 : f32 to vector<8x128xf32>
    %390 = arith.mulf %389, %357 : vector<8x128xf32>
    %c109 = arith.constant 109 : index
    %391 = memref.load %arg3[%c109] : memref<128xf32, #tpu.memory_space<smem>>
    %392 = vector.broadcast %391 : f32 to vector<8x128xf32>
    %393 = arith.mulf %392, %358 : vector<8x128xf32>
    %394 = arith.addf %390, %393 : vector<8x128xf32>
    %c111 = arith.constant 111 : index
    %395 = memref.load %arg3[%c111] : memref<128xf32, #tpu.memory_space<smem>>
    %396 = vector.broadcast %395 : f32 to vector<8x128xf32>
    %397 = arith.mulf %396, %359 : vector<8x128xf32>
    %398 = arith.addf %394, %397 : vector<8x128xf32>
    %c27 = arith.constant 27 : index
    %c0_81 = arith.constant 0 : index
    %c0_82 = arith.constant 0 : index
    %399 = vector.load %arg6[%c27, %c0_81, %c0_82] : memref<32x8x128xf32, #tpu.memory_space<vmem>>, vector<1x8x128xf32>
    %400 = vector.shape_cast %399 : vector<1x8x128xf32> to vector<8x128xf32>
    %401 = vector.shape_cast %398 : vector<8x128xf32> to vector<1x8x128xf32>
    tpu.vector_store %arg6[%c27, %c0_81, %c0_82], %401 {strides = array<i32>} : memref<32x8x128xf32, #tpu.memory_space<vmem>>, vector<1x8x128xf32>,
    %c14 = arith.constant 14 : index
    %402 = arith.index_cast %2 : i32 to index
    %c0_83 = arith.constant 0 : index
    %403 = vector.load %arg4[%c14, %402, %c0_83] : memref<16x8x128xf32, #tpu.memory_space<vmem>>, vector<1x8x128xf32>
    %404 = vector.shape_cast %403 : vector<1x8x128xf32> to vector<8x128xf32>
    %c15_84 = arith.constant 15 : index
    %405 = arith.index_cast %2 : i32 to index
    %c0_85 = arith.constant 0 : index
    %406 = vector.load %arg4[%c15_84, %405, %c0_85] : memref<16x8x128xf32, #tpu.memory_space<vmem>>, vector<1x8x128xf32>
    %407 = vector.shape_cast %406 : vector<1x8x128xf32> to vector<8x128xf32>
    %408 = arith.mulf %404, %404 : vector<8x128xf32>
    %cst_86 = arith.constant 0.000000e+00 : f32
    %409 = vector.broadcast %cst_86 : f32 to vector<8x128xf32>
    %410 = arith.addf %409, %408 : vector<8x128xf32>
    %411 = arith.mulf %407, %407 : vector<8x128xf32>
    %412 = arith.addf %410, %411 : vector<8x128xf32>
    %413 = math.rsqrt %412 : vector<8x128xf32>
    %414 = arith.mulf %404, %413 : vector<8x128xf32>
    %415 = arith.mulf %407, %413 : vector<8x128xf32>
    %416 = arith.mulf %414, %414 : vector<8x128xf32>
    %417 = arith.mulf %414, %415 : vector<8x128xf32>
    %418 = arith.mulf %415, %415 : vector<8x128xf32>
    %c116 = arith.constant 116 : index
    %419 = memref.load %arg3[%c116] : memref<128xf32, #tpu.memory_space<smem>>
    %420 = vector.broadcast %419 : f32 to vector<8x128xf32>
    %421 = arith.mulf %420, %416 : vector<8x128xf32>
    %c117 = arith.constant 117 : index
    %422 = memref.load %arg3[%c117] : memref<128xf32, #tpu.memory_space<smem>>
    %423 = vector.broadcast %422 : f32 to vector<8x128xf32>
    %424 = arith.mulf %423, %417 : vector<8x128xf32>
    %425 = arith.addf %421, %424 : vector<8x128xf32>
    %c119 = arith.constant 119 : index
    %426 = memref.load %arg3[%c119] : memref<128xf32, #tpu.memory_space<smem>>
    %427 = vector.broadcast %426 : f32 to vector<8x128xf32>
    %428 = arith.mulf %427, %418 : vector<8x128xf32>
    %429 = arith.addf %425, %428 : vector<8x128xf32>
    %c29_87 = arith.constant 29 : index
    %c0_88 = arith.constant 0 : index
    %c0_89 = arith.constant 0 : index
    %430 = vector.load %arg6[%c29_87, %c0_88, %c0_89] : memref<32x8x128xf32, #tpu.memory_space<vmem>>, vector<1x8x128xf32>
    %431 = vector.shape_cast %430 : vector<1x8x128xf32> to vector<8x128xf32>
    %432 = vector.shape_cast %429 : vector<8x128xf32> to vector<1x8x128xf32>
    tpu.vector_store %arg6[%c29_87, %c0_88, %c0_89], %432 {strides = array<i32>} : memref<32x8x128xf32, #tpu.memory_space<vmem>>, vector<1x8x128xf32>,
    %c124 = arith.constant 124 : index
    %433 = memref.load %arg3[%c124] : memref<128xf32, #tpu.memory_space<smem>>
    %434 = vector.broadcast %433 : f32 to vector<8x128xf32>
    %435 = arith.mulf %434, %416 : vector<8x128xf32>
    %c125 = arith.constant 125 : index
    %436 = memref.load %arg3[%c125] : memref<128xf32, #tpu.memory_space<smem>>
    %437 = vector.broadcast %436 : f32 to vector<8x128xf32>
    %438 = arith.mulf %437, %417 : vector<8x128xf32>
    %439 = arith.addf %435, %438 : vector<8x128xf32>
    %c127 = arith.constant 127 : index
    %440 = memref.load %arg3[%c127] : memref<128xf32, #tpu.memory_space<smem>>
    %441 = vector.broadcast %440 : f32 to vector<8x128xf32>
    %442 = arith.mulf %441, %418 : vector<8x128xf32>
    %443 = arith.addf %439, %442 : vector<8x128xf32>
    %c31_90 = arith.constant 31 : index
    %c0_91 = arith.constant 0 : index
    %c0_92 = arith.constant 0 : index
    %444 = vector.load %arg6[%c31_90, %c0_91, %c0_92] : memref<32x8x128xf32, #tpu.memory_space<vmem>>, vector<1x8x128xf32>
    %445 = vector.shape_cast %444 : vector<1x8x128xf32> to vector<8x128xf32>
    %446 = vector.shape_cast %443 : vector<8x128xf32> to vector<1x8x128xf32>
    tpu.vector_store %arg6[%c31_90, %c0_91, %c0_92], %446 {strides = array<i32>} : memref<32x8x128xf32, #tpu.memory_space<vmem>>, vector<1x8x128xf32>,
    %c0_93 = arith.constant 0 : index
    %c0_94 = arith.constant 0 : index
    %c0_95 = arith.constant 0 : index
    %447 = vector.load %arg6[%c0_93, %c0_94, %c0_95] : memref<32x8x128xf32, #tpu.memory_space<vmem>>, vector<1x8x128xf32>
    %448 = vector.shape_cast %447 : vector<1x8x128xf32> to vector<8x128xf32>
    %c1_96 = arith.constant 1 : index
    %c0_97 = arith.constant 0 : index
    %c0_98 = arith.constant 0 : index
    %449 = vector.load %arg6[%c1_96, %c0_97, %c0_98] : memref<32x8x128xf32, #tpu.memory_space<vmem>>, vector<1x8x128xf32>
    %450 = vector.shape_cast %449 : vector<1x8x128xf32> to vector<8x128xf32>
    %451 = arith.mulf %448, %448 : vector<8x128xf32>
    %452 = arith.mulf %450, %450 : vector<8x128xf32>
    %453 = arith.addf %451, %452 : vector<8x128xf32>
    %cst_99 = arith.constant 9.99999996E-13 : f32
    %454 = vector.broadcast %cst_99 : f32 to vector<8x128xf32>
    %455 = arith.addf %453, %454 : vector<8x128xf32>
    %456 = math.rsqrt %455 : vector<8x128xf32>
    %457 = arith.mulf %448, %456 : vector<8x128xf32>
    %458 = arith.mulf %450, %456 : vector<8x128xf32>
    %c0_100 = arith.constant 0 : index
    %c0_101 = arith.constant 0 : index
    %c0_102 = arith.constant 0 : index
    %459 = vector.load %arg7[%c0_100, %c0_101, %c0_102] : memref<14x8x128xf32, #tpu.memory_space<vmem>>, vector<1x8x128xf32>
    %460 = vector.shape_cast %459 : vector<1x8x128xf32> to vector<8x128xf32>
    %461 = vector.shape_cast %457 : vector<8x128xf32> to vector<1x8x128xf32>
    tpu.vector_store %arg7[%c0_100, %c0_101, %c0_102], %461 {strides = array<i32>} : memref<14x8x128xf32, #tpu.memory_space<vmem>>, vector<1x8x128xf32>,
    %c1_103 = arith.constant 1 : index
    %c0_104 = arith.constant 0 : index
    %c0_105 = arith.constant 0 : index
    %462 = vector.load %arg7[%c1_103, %c0_104, %c0_105] : memref<14x8x128xf32, #tpu.memory_space<vmem>>, vector<1x8x128xf32>
    %463 = vector.shape_cast %462 : vector<1x8x128xf32> to vector<8x128xf32>
    %464 = vector.shape_cast %458 : vector<8x128xf32> to vector<1x8x128xf32>
    tpu.vector_store %arg7[%c1_103, %c0_104, %c0_105], %464 {strides = array<i32>} : memref<14x8x128xf32, #tpu.memory_space<vmem>>, vector<1x8x128xf32>,
    %c4_106 = arith.constant 4 : index
    %c0_107 = arith.constant 0 : index
    %c0_108 = arith.constant 0 : index
    %465 = vector.load %arg6[%c4_106, %c0_107, %c0_108] : memref<32x8x128xf32, #tpu.memory_space<vmem>>, vector<1x8x128xf32>
    %466 = vector.shape_cast %465 : vector<1x8x128xf32> to vector<8x128xf32>
    %467 = arith.mulf %448, %466 : vector<8x128xf32>
    %c5_109 = arith.constant 5 : index
    %c0_110 = arith.constant 0 : index
    %c0_111 = arith.constant 0 : index
    %468 = vector.load %arg6[%c5_109, %c0_110, %c0_111] : memref<32x8x128xf32, #tpu.memory_space<vmem>>, vector<1x8x128xf32>
    %469 = vector.shape_cast %468 : vector<1x8x128xf32> to vector<8x128xf32>
    %470 = arith.mulf %448, %469 : vector<8x128xf32>
    %c7_112 = arith.constant 7 : index
    %c0_113 = arith.constant 0 : index
    %c0_114 = arith.constant 0 : index
    %471 = vector.load %arg6[%c7_112, %c0_113, %c0_114] : memref<32x8x128xf32, #tpu.memory_space<vmem>>, vector<1x8x128xf32>
    %472 = vector.shape_cast %471 : vector<1x8x128xf32> to vector<8x128xf32>
    %473 = arith.mulf %450, %472 : vector<8x128xf32>
    %474 = arith.addf %470, %473 : vector<8x128xf32>
    %475 = arith.mulf %467, %467 : vector<8x128xf32>
    %476 = arith.mulf %474, %474 : vector<8x128xf32>
    %477 = arith.addf %475, %476 : vector<8x128xf32>
    %cst_115 = arith.constant 9.99999996E-13 : f32
    %478 = vector.broadcast %cst_115 : f32 to vector<8x128xf32>
    %479 = arith.addf %477, %478 : vector<8x128xf32>
    %480 = math.rsqrt %479 : vector<8x128xf32>
    %481 = arith.mulf %467, %480 : vector<8x128xf32>
    %482 = arith.mulf %474, %480 : vector<8x128xf32>
    %c2_116 = arith.constant 2 : index
    %c0_117 = arith.constant 0 : index
    %c0_118 = arith.constant 0 : index
    %483 = vector.load %arg7[%c2_116, %c0_117, %c0_118] : memref<14x8x128xf32, #tpu.memory_space<vmem>>, vector<1x8x128xf32>
    %484 = vector.shape_cast %483 : vector<1x8x128xf32> to vector<8x128xf32>
    %485 = vector.shape_cast %481 : vector<8x128xf32> to vector<1x8x128xf32>
    tpu.vector_store %arg7[%c2_116, %c0_117, %c0_118], %485 {strides = array<i32>} : memref<14x8x128xf32, #tpu.memory_space<vmem>>, vector<1x8x128xf32>,
    %c3_119 = arith.constant 3 : index
    %c0_120 = arith.constant 0 : index
    %c0_121 = arith.constant 0 : index
    %486 = vector.load %arg7[%c3_119, %c0_120, %c0_121] : memref<14x8x128xf32, #tpu.memory_space<vmem>>, vector<1x8x128xf32>
    %487 = vector.shape_cast %486 : vector<1x8x128xf32> to vector<8x128xf32>
    %488 = vector.shape_cast %482 : vector<8x128xf32> to vector<1x8x128xf32>
    tpu.vector_store %arg7[%c3_119, %c0_120, %c0_121], %488 {strides = array<i32>} : memref<14x8x128xf32, #tpu.memory_space<vmem>>, vector<1x8x128xf32>,
    %c8_122 = arith.constant 8 : index
    %c0_123 = arith.constant 0 : index
    %c0_124 = arith.constant 0 : index
    %489 = vector.load %arg6[%c8_122, %c0_123, %c0_124] : memref<32x8x128xf32, #tpu.memory_space<vmem>>, vector<1x8x128xf32>
    %490 = vector.shape_cast %489 : vector<1x8x128xf32> to vector<8x128xf32>
    %491 = arith.mulf %467, %490 : vector<8x128xf32>
    %c9_125 = arith.constant 9 : index
    %c0_126 = arith.constant 0 : index
    %c0_127 = arith.constant 0 : index
    %492 = vector.load %arg6[%c9_125, %c0_126, %c0_127] : memref<32x8x128xf32, #tpu.memory_space<vmem>>, vector<1x8x128xf32>
    %493 = vector.shape_cast %492 : vector<1x8x128xf32> to vector<8x128xf32>
    %494 = arith.mulf %467, %493 : vector<8x128xf32>
    %c11_128 = arith.constant 11 : index
    %c0_129 = arith.constant 0 : index
    %c0_130 = arith.constant 0 : index
    %495 = vector.load %arg6[%c11_128, %c0_129, %c0_130] : memref<32x8x128xf32, #tpu.memory_space<vmem>>, vector<1x8x128xf32>
    %496 = vector.shape_cast %495 : vector<1x8x128xf32> to vector<8x128xf32>
    %497 = arith.mulf %474, %496 : vector<8x128xf32>
    %498 = arith.addf %494, %497 : vector<8x128xf32>
    %499 = arith.mulf %491, %491 : vector<8x128xf32>
    %500 = arith.mulf %498, %498 : vector<8x128xf32>
    %501 = arith.addf %499, %500 : vector<8x128xf32>
    %cst_131 = arith.constant 9.99999996E-13 : f32
    %502 = vector.broadcast %cst_131 : f32 to vector<8x128xf32>
    %503 = arith.addf %501, %502 : vector<8x128xf32>
    %504 = math.rsqrt %503 : vector<8x128xf32>
    %505 = arith.mulf %491, %504 : vector<8x128xf32>
    %506 = arith.mulf %498, %504 : vector<8x128xf32>
    %c4_132 = arith.constant 4 : index
    %c0_133 = arith.constant 0 : index
    %c0_134 = arith.constant 0 : index
    %507 = vector.load %arg7[%c4_132, %c0_133, %c0_134] : memref<14x8x128xf32, #tpu.memory_space<vmem>>, vector<1x8x128xf32>
    %508 = vector.shape_cast %507 : vector<1x8x128xf32> to vector<8x128xf32>
    %509 = vector.shape_cast %505 : vector<8x128xf32> to vector<1x8x128xf32>
    tpu.vector_store %arg7[%c4_132, %c0_133, %c0_134], %509 {strides = array<i32>} : memref<14x8x128xf32, #tpu.memory_space<vmem>>, vector<1x8x128xf32>,
    %c5_135 = arith.constant 5 : index
    %c0_136 = arith.constant 0 : index
    %c0_137 = arith.constant 0 : index
    %510 = vector.load %arg7[%c5_135, %c0_136, %c0_137] : memref<14x8x128xf32, #tpu.memory_space<vmem>>, vector<1x8x128xf32>
    %511 = vector.shape_cast %510 : vector<1x8x128xf32> to vector<8x128xf32>
    %512 = vector.shape_cast %506 : vector<8x128xf32> to vector<1x8x128xf32>
    tpu.vector_store %arg7[%c5_135, %c0_136, %c0_137], %512 {strides = array<i32>} : memref<14x8x128xf32, #tpu.memory_space<vmem>>, vector<1x8x128xf32>,
    %c12_138 = arith.constant 12 : index
    %c0_139 = arith.constant 0 : index
    %c0_140 = arith.constant 0 : index
    %513 = vector.load %arg6[%c12_138, %c0_139, %c0_140] : memref<32x8x128xf32, #tpu.memory_space<vmem>>, vector<1x8x128xf32>
    %514 = vector.shape_cast %513 : vector<1x8x128xf32> to vector<8x128xf32>
    %515 = arith.mulf %491, %514 : vector<8x128xf32>
    %c13_141 = arith.constant 13 : index
    %c0_142 = arith.constant 0 : index
    %c0_143 = arith.constant 0 : index
    %516 = vector.load %arg6[%c13_141, %c0_142, %c0_143] : memref<32x8x128xf32, #tpu.memory_space<vmem>>, vector<1x8x128xf32>
    %517 = vector.shape_cast %516 : vector<1x8x128xf32> to vector<8x128xf32>
    %518 = arith.mulf %491, %517 : vector<8x128xf32>
    %c15_144 = arith.constant 15 : index
    %c0_145 = arith.constant 0 : index
    %c0_146 = arith.constant 0 : index
    %519 = vector.load %arg6[%c15_144, %c0_145, %c0_146] : memref<32x8x128xf32, #tpu.memory_space<vmem>>, vector<1x8x128xf32>
    %520 = vector.shape_cast %519 : vector<1x8x128xf32> to vector<8x128xf32>
    %521 = arith.mulf %498, %520 : vector<8x128xf32>
    %522 = arith.addf %518, %521 : vector<8x128xf32>
    %523 = arith.mulf %515, %515 : vector<8x128xf32>
    %524 = arith.mulf %522, %522 : vector<8x128xf32>
    %525 = arith.addf %523, %524 : vector<8x128xf32>
    %cst_147 = arith.constant 9.99999996E-13 : f32
    %526 = vector.broadcast %cst_147 : f32 to vector<8x128xf32>
    %527 = arith.addf %525, %526 : vector<8x128xf32>
    %528 = math.rsqrt %527 : vector<8x128xf32>
    %529 = arith.mulf %515, %528 : vector<8x128xf32>
    %530 = arith.mulf %522, %528 : vector<8x128xf32>
    %c6_148 = arith.constant 6 : index
    %c0_149 = arith.constant 0 : index
    %c0_150 = arith.constant 0 : index
    %531 = vector.load %arg7[%c6_148, %c0_149, %c0_150] : memref<14x8x128xf32, #tpu.memory_space<vmem>>, vector<1x8x128xf32>
    %532 = vector.shape_cast %531 : vector<1x8x128xf32> to vector<8x128xf32>
    %533 = vector.shape_cast %529 : vector<8x128xf32> to vector<1x8x128xf32>
    tpu.vector_store %arg7[%c6_148, %c0_149, %c0_150], %533 {strides = array<i32>} : memref<14x8x128xf32, #tpu.memory_space<vmem>>, vector<1x8x128xf32>,
    %c7_151 = arith.constant 7 : index
    %c0_152 = arith.constant 0 : index
    %c0_153 = arith.constant 0 : index
    %534 = vector.load %arg7[%c7_151, %c0_152, %c0_153] : memref<14x8x128xf32, #tpu.memory_space<vmem>>, vector<1x8x128xf32>
    %535 = vector.shape_cast %534 : vector<1x8x128xf32> to vector<8x128xf32>
    %536 = vector.shape_cast %530 : vector<8x128xf32> to vector<1x8x128xf32>
    tpu.vector_store %arg7[%c7_151, %c0_152, %c0_153], %536 {strides = array<i32>} : memref<14x8x128xf32, #tpu.memory_space<vmem>>, vector<1x8x128xf32>,
    %c16_154 = arith.constant 16 : index
    %c0_155 = arith.constant 0 : index
    %c0_156 = arith.constant 0 : index
    %537 = vector.load %arg6[%c16_154, %c0_155, %c0_156] : memref<32x8x128xf32, #tpu.memory_space<vmem>>, vector<1x8x128xf32>
    %538 = vector.shape_cast %537 : vector<1x8x128xf32> to vector<8x128xf32>
    %539 = arith.mulf %515, %538 : vector<8x128xf32>
    %c17_157 = arith.constant 17 : index
    %c0_158 = arith.constant 0 : index
    %c0_159 = arith.constant 0 : index
    %540 = vector.load %arg6[%c17_157, %c0_158, %c0_159] : memref<32x8x128xf32, #tpu.memory_space<vmem>>, vector<1x8x128xf32>
    %541 = vector.shape_cast %540 : vector<1x8x128xf32> to vector<8x128xf32>
    %542 = arith.mulf %515, %541 : vector<8x128xf32>
    %c19_160 = arith.constant 19 : index
    %c0_161 = arith.constant 0 : index
    %c0_162 = arith.constant 0 : index
    %543 = vector.load %arg6[%c19_160, %c0_161, %c0_162] : memref<32x8x128xf32, #tpu.memory_space<vmem>>, vector<1x8x128xf32>
    %544 = vector.shape_cast %543 : vector<1x8x128xf32> to vector<8x128xf32>
    %545 = arith.mulf %522, %544 : vector<8x128xf32>
    %546 = arith.addf %542, %545 : vector<8x128xf32>
    %547 = arith.mulf %539, %539 : vector<8x128xf32>
    %548 = arith.mulf %546, %546 : vector<8x128xf32>
    %549 = arith.addf %547, %548 : vector<8x128xf32>
    %cst_163 = arith.constant 9.99999996E-13 : f32
    %550 = vector.broadcast %cst_163 : f32 to vector<8x128xf32>
    %551 = arith.addf %549, %550 : vector<8x128xf32>
    %552 = math.rsqrt %551 : vector<8x128xf32>
    %553 = arith.mulf %539, %552 : vector<8x128xf32>
    %554 = arith.mulf %546, %552 : vector<8x128xf32>
    %c8_164 = arith.constant 8 : index
    %c0_165 = arith.constant 0 : index
    %c0_166 = arith.constant 0 : index
    %555 = vector.load %arg7[%c8_164, %c0_165, %c0_166] : memref<14x8x128xf32, #tpu.memory_space<vmem>>, vector<1x8x128xf32>
    %556 = vector.shape_cast %555 : vector<1x8x128xf32> to vector<8x128xf32>
    %557 = vector.shape_cast %553 : vector<8x128xf32> to vector<1x8x128xf32>
    tpu.vector_store %arg7[%c8_164, %c0_165, %c0_166], %557 {strides = array<i32>} : memref<14x8x128xf32, #tpu.memory_space<vmem>>, vector<1x8x128xf32>,
    %c9_167 = arith.constant 9 : index
    %c0_168 = arith.constant 0 : index
    %c0_169 = arith.constant 0 : index
    %558 = vector.load %arg7[%c9_167, %c0_168, %c0_169] : memref<14x8x128xf32, #tpu.memory_space<vmem>>, vector<1x8x128xf32>
    %559 = vector.shape_cast %558 : vector<1x8x128xf32> to vector<8x128xf32>
    %560 = vector.shape_cast %554 : vector<8x128xf32> to vector<1x8x128xf32>
    tpu.vector_store %arg7[%c9_167, %c0_168, %c0_169], %560 {strides = array<i32>} : memref<14x8x128xf32, #tpu.memory_space<vmem>>, vector<1x8x128xf32>,
    %c20_170 = arith.constant 20 : index
    %c0_171 = arith.constant 0 : index
    %c0_172 = arith.constant 0 : index
    %561 = vector.load %arg6[%c20_170, %c0_171, %c0_172] : memref<32x8x128xf32, #tpu.memory_space<vmem>>, vector<1x8x128xf32>
    %562 = vector.shape_cast %561 : vector<1x8x128xf32> to vector<8x128xf32>
    %563 = arith.mulf %539, %562 : vector<8x128xf32>
    %c21_173 = arith.constant 21 : index
    %c0_174 = arith.constant 0 : index
    %c0_175 = arith.constant 0 : index
    %564 = vector.load %arg6[%c21_173, %c0_174, %c0_175] : memref<32x8x128xf32, #tpu.memory_space<vmem>>, vector<1x8x128xf32>
    %565 = vector.shape_cast %564 : vector<1x8x128xf32> to vector<8x128xf32>
    %566 = arith.mulf %539, %565 : vector<8x128xf32>
    %c23_176 = arith.constant 23 : index
    %c0_177 = arith.constant 0 : index
    %c0_178 = arith.constant 0 : index
    %567 = vector.load %arg6[%c23_176, %c0_177, %c0_178] : memref<32x8x128xf32, #tpu.memory_space<vmem>>, vector<1x8x128xf32>
    %568 = vector.shape_cast %567 : vector<1x8x128xf32> to vector<8x128xf32>
    %569 = arith.mulf %546, %568 : vector<8x128xf32>
    %570 = arith.addf %566, %569 : vector<8x128xf32>
    %571 = arith.mulf %563, %563 : vector<8x128xf32>
    %572 = arith.mulf %570, %570 : vector<8x128xf32>
    %573 = arith.addf %571, %572 : vector<8x128xf32>
    %cst_179 = arith.constant 9.99999996E-13 : f32
    %574 = vector.broadcast %cst_179 : f32 to vector<8x128xf32>
    %575 = arith.addf %573, %574 : vector<8x128xf32>
    %576 = math.rsqrt %575 : vector<8x128xf32>
    %577 = arith.mulf %563, %576 : vector<8x128xf32>
    %578 = arith.mulf %570, %576 : vector<8x128xf32>
    %c10_180 = arith.constant 10 : index
    %c0_181 = arith.constant 0 : index
    %c0_182 = arith.constant 0 : index
    %579 = vector.load %arg7[%c10_180, %c0_181, %c0_182] : memref<14x8x128xf32, #tpu.memory_space<vmem>>, vector<1x8x128xf32>
    %580 = vector.shape_cast %579 : vector<1x8x128xf32> to vector<8x128xf32>
    %581 = vector.shape_cast %577 : vector<8x128xf32> to vector<1x8x128xf32>
    tpu.vector_store %arg7[%c10_180, %c0_181, %c0_182], %581 {strides = array<i32>} : memref<14x8x128xf32, #tpu.memory_space<vmem>>, vector<1x8x128xf32>,
    %c11_183 = arith.constant 11 : index
    %c0_184 = arith.constant 0 : index
    %c0_185 = arith.constant 0 : index
    %582 = vector.load %arg7[%c11_183, %c0_184, %c0_185] : memref<14x8x128xf32, #tpu.memory_space<vmem>>, vector<1x8x128xf32>
    %583 = vector.shape_cast %582 : vector<1x8x128xf32> to vector<8x128xf32>
    %584 = vector.shape_cast %578 : vector<8x128xf32> to vector<1x8x128xf32>
    tpu.vector_store %arg7[%c11_183, %c0_184, %c0_185], %584 {strides = array<i32>} : memref<14x8x128xf32, #tpu.memory_space<vmem>>, vector<1x8x128xf32>,
    %c24_186 = arith.constant 24 : index
    %c0_187 = arith.constant 0 : index
    %c0_188 = arith.constant 0 : index
    %585 = vector.load %arg6[%c24_186, %c0_187, %c0_188] : memref<32x8x128xf32, #tpu.memory_space<vmem>>, vector<1x8x128xf32>
    %586 = vector.shape_cast %585 : vector<1x8x128xf32> to vector<8x128xf32>
    %587 = arith.mulf %563, %586 : vector<8x128xf32>
    %c25_189 = arith.constant 25 : index
    %c0_190 = arith.constant 0 : index
    %c0_191 = arith.constant 0 : index
    %588 = vector.load %arg6[%c25_189, %c0_190, %c0_191] : memref<32x8x128xf32, #tpu.memory_space<vmem>>, vector<1x8x128xf32>
    %589 = vector.shape_cast %588 : vector<1x8x128xf32> to vector<8x128xf32>
    %590 = arith.mulf %563, %589 : vector<8x128xf32>
    %c27_192 = arith.constant 27 : index
    %c0_193 = arith.constant 0 : index
    %c0_194 = arith.constant 0 : index
    %591 = vector.load %arg6[%c27_192, %c0_193, %c0_194] : memref<32x8x128xf32, #tpu.memory_space<vmem>>, vector<1x8x128xf32>
    %592 = vector.shape_cast %591 : vector<1x8x128xf32> to vector<8x128xf32>
    %593 = arith.mulf %570, %592 : vector<8x128xf32>
    %594 = arith.addf %590, %593 : vector<8x128xf32>
    %595 = arith.mulf %587, %587 : vector<8x128xf32>
    %596 = arith.mulf %594, %594 : vector<8x128xf32>
    %597 = arith.addf %595, %596 : vector<8x128xf32>
    %cst_195 = arith.constant 9.99999996E-13 : f32
    %598 = vector.broadcast %cst_195 : f32 to vector<8x128xf32>
    %599 = arith.addf %597, %598 : vector<8x128xf32>
    %600 = math.rsqrt %599 : vector<8x128xf32>
    %601 = arith.mulf %587, %600 : vector<8x128xf32>
    %602 = arith.mulf %594, %600 : vector<8x128xf32>
    %c116_196 = arith.constant 116 : index
    %603 = memref.load %arg2[%c116_196] : memref<128xf32, #tpu.memory_space<smem>>
    %604 = vector.broadcast %603 : f32 to vector<8x128xf32>
    %605 = arith.mulf %604, %601 : vector<8x128xf32>
    %c124_197 = arith.constant 124 : index
    %606 = memref.load %arg2[%c124_197] : memref<128xf32, #tpu.memory_space<smem>>
    %607 = vector.broadcast %606 : f32 to vector<8x128xf32>
    %608 = arith.mulf %607, %602 : vector<8x128xf32>
    %609 = arith.addf %605, %608 : vector<8x128xf32>
    %c117_198 = arith.constant 117 : index
    %610 = memref.load %arg2[%c117_198] : memref<128xf32, #tpu.memory_space<smem>>
    %611 = vector.broadcast %610 : f32 to vector<8x128xf32>
    %612 = arith.mulf %611, %601 : vector<8x128xf32>
    %c125_199 = arith.constant 125 : index
    %613 = memref.load %arg2[%c125_199] : memref<128xf32, #tpu.memory_space<smem>>
    %614 = vector.broadcast %613 : f32 to vector<8x128xf32>
    %615 = arith.mulf %614, %602 : vector<8x128xf32>
    %616 = arith.addf %612, %615 : vector<8x128xf32>
    %c118 = arith.constant 118 : index
    %617 = memref.load %arg2[%c118] : memref<128xf32, #tpu.memory_space<smem>>
    %618 = vector.broadcast %617 : f32 to vector<8x128xf32>
    %619 = arith.mulf %618, %601 : vector<8x128xf32>
    %c126 = arith.constant 126 : index
    %620 = memref.load %arg2[%c126] : memref<128xf32, #tpu.memory_space<smem>>
    %621 = vector.broadcast %620 : f32 to vector<8x128xf32>
    %622 = arith.mulf %621, %602 : vector<8x128xf32>
    %623 = arith.addf %619, %622 : vector<8x128xf32>
    %c119_200 = arith.constant 119 : index
    %624 = memref.load %arg2[%c119_200] : memref<128xf32, #tpu.memory_space<smem>>
    %625 = vector.broadcast %624 : f32 to vector<8x128xf32>
    %626 = arith.mulf %625, %601 : vector<8x128xf32>
    %c127_201 = arith.constant 127 : index
    %627 = memref.load %arg2[%c127_201] : memref<128xf32, #tpu.memory_space<smem>>
    %628 = vector.broadcast %627 : f32 to vector<8x128xf32>
    %629 = arith.mulf %628, %602 : vector<8x128xf32>
    %630 = arith.addf %626, %629 : vector<8x128xf32>
    %631 = arith.mulf %609, %609 : vector<8x128xf32>
    %632 = arith.mulf %616, %616 : vector<8x128xf32>
    %633 = arith.addf %631, %632 : vector<8x128xf32>
    %634 = arith.mulf %623, %623 : vector<8x128xf32>
    %635 = arith.addf %633, %634 : vector<8x128xf32>
    %636 = arith.mulf %630, %630 : vector<8x128xf32>
    %637 = arith.addf %635, %636 : vector<8x128xf32>
    %cst_202 = arith.constant 9.99999996E-13 : f32
    %638 = vector.broadcast %cst_202 : f32 to vector<8x128xf32>
    %639 = arith.addf %637, %638 : vector<8x128xf32>
    %640 = math.rsqrt %639 : vector<8x128xf32>
    %641 = vector.broadcast %0 : f32 to vector<8x128xf32>
    %642 = arith.mulf %641, %640 : vector<8x128xf32>
    %643 = arith.cmpf oeq, %637, %637 : vector<8x128xf32>
    %c14_203 = arith.constant 14 : index
    %644 = arith.index_cast %2 : i32 to index
    %c0_204 = arith.constant 0 : index
    %645 = vector.load %arg4[%c14_203, %644, %c0_204] : memref<16x8x128xf32, #tpu.memory_space<vmem>>, vector<1x8x128xf32>
    %646 = vector.shape_cast %645 : vector<1x8x128xf32> to vector<8x128xf32>
    %647 = arith.mulf %609, %646 : vector<8x128xf32>
    %c15_205 = arith.constant 15 : index
    %648 = arith.index_cast %2 : i32 to index
    %c0_206 = arith.constant 0 : index
    %649 = vector.load %arg4[%c15_205, %648, %c0_206] : memref<16x8x128xf32, #tpu.memory_space<vmem>>, vector<1x8x128xf32>
    %650 = vector.shape_cast %649 : vector<1x8x128xf32> to vector<8x128xf32>
    %651 = arith.mulf %616, %650 : vector<8x128xf32>
    %652 = arith.addf %647, %651 : vector<8x128xf32>
    %653 = arith.mulf %652, %642 : vector<8x128xf32>
    %cst_207 = arith.constant 0.000000e+00 : f32
    %654 = vector.broadcast %cst_207 : f32 to vector<8x128xf32>
    %655 = arith.select %643, %653, %654 : vector<8x128xi1>, vector<8x128xf32>
    %cst_208 = arith.constant 0.000000e+00 : f32
    %656 = vector.broadcast %cst_208 : f32 to vector<8x128xf32>
    %657 = arith.cmpf oge, %655, %656 : vector<8x128xf32>
    %cst_209 = arith.constant 9.99999974E-6 : f32
    %658 = vector.broadcast %cst_209 : f32 to vector<8x128xf32>
    %659 = arith.mulf %658, %655 : vector<8x128xf32>
    %660 = arith.select %657, %655, %659 : vector<8x128xi1>, vector<8x128xf32>
    %661 = math.absf %660 : vector<8x128xf32>
    %c14_210 = arith.constant 14 : index
    %662 = arith.index_cast %2 : i32 to index
    %c0_211 = arith.constant 0 : index
    %663 = vector.load %arg4[%c14_210, %662, %c0_211] : memref<16x8x128xf32, #tpu.memory_space<vmem>>, vector<1x8x128xf32>
    %664 = vector.shape_cast %663 : vector<1x8x128xf32> to vector<8x128xf32>
    %665 = arith.mulf %623, %664 : vector<8x128xf32>
    %c15_212 = arith.constant 15 : index
    %666 = arith.index_cast %2 : i32 to index
    %c0_213 = arith.constant 0 : index
    %667 = vector.load %arg4[%c15_212, %666, %c0_213] : memref<16x8x128xf32, #tpu.memory_space<vmem>>, vector<1x8x128xf32>
    %668 = vector.shape_cast %667 : vector<1x8x128xf32> to vector<8x128xf32>
    %669 = arith.mulf %630, %668 : vector<8x128xf32>
    %670 = arith.addf %665, %669 : vector<8x128xf32>
    %671 = arith.mulf %670, %642 : vector<8x128xf32>
    %cst_214 = arith.constant 0.000000e+00 : f32
    %672 = vector.broadcast %cst_214 : f32 to vector<8x128xf32>
    %673 = arith.select %643, %671, %672 : vector<8x128xi1>, vector<8x128xf32>
    %cst_215 = arith.constant 0.000000e+00 : f32
    %674 = vector.broadcast %cst_215 : f32 to vector<8x128xf32>
    %675 = arith.cmpf oge, %673, %674 : vector<8x128xf32>
    %cst_216 = arith.constant 9.99999974E-6 : f32
    %676 = vector.broadcast %cst_216 : f32 to vector<8x128xf32>
    %677 = arith.mulf %676, %673 : vector<8x128xf32>
    %678 = arith.select %675, %673, %677 : vector<8x128xi1>, vector<8x128xf32>
    %679 = math.absf %678 : vector<8x128xf32>
    %680 = arith.addf %661, %679 : vector<8x128xf32>
    %681 = tpu.reciprocal %680 : vector<8x128xf32> -> vector<8x128xf32>
    %682 = arith.mulf %661, %681 : vector<8x128xf32>
    %c14_217 = arith.constant 14 : index
    %683 = arith.index_cast %2 : i32 to index
    %c0_218 = arith.constant 0 : index
    %684 = vector.load %arg5[%c14_217, %683, %c0_218] : memref<16x8x128xf32, #tpu.memory_space<vmem>>, vector<1x8x128xf32>
    %685 = vector.shape_cast %684 : vector<1x8x128xf32> to vector<8x128xf32>
    %686 = vector.shape_cast %682 : vector<8x128xf32> to vector<1x8x128xf32>
    tpu.vector_store %arg5[%c14_217, %683, %c0_218], %686 {strides = array<i32>} : memref<16x8x128xf32, #tpu.memory_space<vmem>>, vector<1x8x128xf32>,
    %687 = arith.mulf %679, %681 : vector<8x128xf32>
    %c15_219 = arith.constant 15 : index
    %688 = arith.index_cast %2 : i32 to index
    %c0_220 = arith.constant 0 : index
    %689 = vector.load %arg5[%c15_219, %688, %c0_220] : memref<16x8x128xf32, #tpu.memory_space<vmem>>, vector<1x8x128xf32>
    %690 = vector.shape_cast %689 : vector<1x8x128xf32> to vector<8x128xf32>
    %691 = vector.shape_cast %687 : vector<8x128xf32> to vector<1x8x128xf32>
    tpu.vector_store %arg5[%c15_219, %688, %c0_220], %691 {strides = array<i32>} : memref<16x8x128xf32, #tpu.memory_space<vmem>>, vector<1x8x128xf32>,
    %c29_221 = arith.constant 29 : index
    %c0_222 = arith.constant 0 : index
    %c0_223 = arith.constant 0 : index
    %692 = vector.load %arg6[%c29_221, %c0_222, %c0_223] : memref<32x8x128xf32, #tpu.memory_space<vmem>>, vector<1x8x128xf32>
    %693 = vector.shape_cast %692 : vector<1x8x128xf32> to vector<8x128xf32>
    %c31_224 = arith.constant 31 : index
    %c0_225 = arith.constant 0 : index
    %c0_226 = arith.constant 0 : index
    %694 = vector.load %arg6[%c31_224, %c0_225, %c0_226] : memref<32x8x128xf32, #tpu.memory_space<vmem>>, vector<1x8x128xf32>
    %695 = vector.shape_cast %694 : vector<1x8x128xf32> to vector<8x128xf32>
    %696 = arith.mulf %693, %693 : vector<8x128xf32>
    %697 = arith.mulf %695, %695 : vector<8x128xf32>
    %698 = arith.addf %696, %697 : vector<8x128xf32>
    %cst_227 = arith.constant 9.99999996E-13 : f32
    %699 = vector.broadcast %cst_227 : f32 to vector<8x128xf32>
    %700 = arith.addf %698, %699 : vector<8x128xf32>
    %701 = math.rsqrt %700 : vector<8x128xf32>
    %702 = arith.mulf %693, %701 : vector<8x128xf32>
    %703 = arith.mulf %695, %701 : vector<8x128xf32>
    %c10_228 = arith.constant 10 : index
    %c0_229 = arith.constant 0 : index
    %c0_230 = arith.constant 0 : index
    %704 = vector.load %arg7[%c10_228, %c0_229, %c0_230] : memref<14x8x128xf32, #tpu.memory_space<vmem>>, vector<1x8x128xf32>
    %705 = vector.shape_cast %704 : vector<1x8x128xf32> to vector<8x128xf32>
    %c11_231 = arith.constant 11 : index
    %c0_232 = arith.constant 0 : index
    %c0_233 = arith.constant 0 : index
    %706 = vector.load %arg7[%c11_231, %c0_232, %c0_233] : memref<14x8x128xf32, #tpu.memory_space<vmem>>, vector<1x8x128xf32>
    %707 = vector.shape_cast %706 : vector<1x8x128xf32> to vector<8x128xf32>
    %708 = arith.mulf %705, %702 : vector<8x128xf32>
    %709 = arith.mulf %705, %703 : vector<8x128xf32>
    %710 = arith.mulf %707, %703 : vector<8x128xf32>
    %c96_234 = arith.constant 96 : index
    %711 = memref.load %arg2[%c96_234] : memref<128xf32, #tpu.memory_space<smem>>
    %712 = vector.broadcast %711 : f32 to vector<8x128xf32>
    %713 = arith.mulf %712, %708 : vector<8x128xf32>
    %c100_235 = arith.constant 100 : index
    %714 = memref.load %arg2[%c100_235] : memref<128xf32, #tpu.memory_space<smem>>
    %715 = vector.broadcast %714 : f32 to vector<8x128xf32>
    %716 = arith.mulf %715, %709 : vector<8x128xf32>
    %717 = arith.addf %713, %716 : vector<8x128xf32>
    %c108_236 = arith.constant 108 : index
    %718 = memref.load %arg2[%c108_236] : memref<128xf32, #tpu.memory_space<smem>>
    %719 = vector.broadcast %718 : f32 to vector<8x128xf32>
    %720 = arith.mulf %719, %710 : vector<8x128xf32>
    %721 = arith.addf %717, %720 : vector<8x128xf32>
    %c97_237 = arith.constant 97 : index
    %722 = memref.load %arg2[%c97_237] : memref<128xf32, #tpu.memory_space<smem>>
    %723 = vector.broadcast %722 : f32 to vector<8x128xf32>
    %724 = arith.mulf %723, %708 : vector<8x128xf32>
    %c101_238 = arith.constant 101 : index
    %725 = memref.load %arg2[%c101_238] : memref<128xf32, #tpu.memory_space<smem>>
    %726 = vector.broadcast %725 : f32 to vector<8x128xf32>
    %727 = arith.mulf %726, %709 : vector<8x128xf32>
    %728 = arith.addf %724, %727 : vector<8x128xf32>
    %c109_239 = arith.constant 109 : index
    %729 = memref.load %arg2[%c109_239] : memref<128xf32, #tpu.memory_space<smem>>
    %730 = vector.broadcast %729 : f32 to vector<8x128xf32>
    %731 = arith.mulf %730, %710 : vector<8x128xf32>
    %732 = arith.addf %728, %731 : vector<8x128xf32>
    %c98 = arith.constant 98 : index
    %733 = memref.load %arg2[%c98] : memref<128xf32, #tpu.memory_space<smem>>
    %734 = vector.broadcast %733 : f32 to vector<8x128xf32>
    %735 = arith.mulf %734, %708 : vector<8x128xf32>
    %c102 = arith.constant 102 : index
    %736 = memref.load %arg2[%c102] : memref<128xf32, #tpu.memory_space<smem>>
    %737 = vector.broadcast %736 : f32 to vector<8x128xf32>
    %738 = arith.mulf %737, %709 : vector<8x128xf32>
    %739 = arith.addf %735, %738 : vector<8x128xf32>
    %c110 = arith.constant 110 : index
    %740 = memref.load %arg2[%c110] : memref<128xf32, #tpu.memory_space<smem>>
    %741 = vector.broadcast %740 : f32 to vector<8x128xf32>
    %742 = arith.mulf %741, %710 : vector<8x128xf32>
    %743 = arith.addf %739, %742 : vector<8x128xf32>
    %c99_240 = arith.constant 99 : index
    %744 = memref.load %arg2[%c99_240] : memref<128xf32, #tpu.memory_space<smem>>
    %745 = vector.broadcast %744 : f32 to vector<8x128xf32>
    %746 = arith.mulf %745, %708 : vector<8x128xf32>
    %c103_241 = arith.constant 103 : index
    %747 = memref.load %arg2[%c103_241] : memref<128xf32, #tpu.memory_space<smem>>
    %748 = vector.broadcast %747 : f32 to vector<8x128xf32>
    %749 = arith.mulf %748, %709 : vector<8x128xf32>
    %750 = arith.addf %746, %749 : vector<8x128xf32>
    %c111_242 = arith.constant 111 : index
    %751 = memref.load %arg2[%c111_242] : memref<128xf32, #tpu.memory_space<smem>>
    %752 = vector.broadcast %751 : f32 to vector<8x128xf32>
    %753 = arith.mulf %752, %710 : vector<8x128xf32>
    %754 = arith.addf %750, %753 : vector<8x128xf32>
    %755 = arith.mulf %721, %721 : vector<8x128xf32>
    %756 = arith.mulf %732, %732 : vector<8x128xf32>
    %757 = arith.addf %755, %756 : vector<8x128xf32>
    %758 = arith.mulf %743, %743 : vector<8x128xf32>
    %759 = arith.addf %757, %758 : vector<8x128xf32>
    %760 = arith.mulf %754, %754 : vector<8x128xf32>
    %761 = arith.addf %759, %760 : vector<8x128xf32>
    %cst_243 = arith.constant 9.99999996E-13 : f32
    %762 = vector.broadcast %cst_243 : f32 to vector<8x128xf32>
    %763 = arith.addf %761, %762 : vector<8x128xf32>
    %764 = math.rsqrt %763 : vector<8x128xf32>
    %765 = vector.broadcast %0 : f32 to vector<8x128xf32>
    %766 = arith.mulf %765, %764 : vector<8x128xf32>
    %767 = arith.cmpf oeq, %761, %761 : vector<8x128xf32>
    %c12_244 = arith.constant 12 : index
    %768 = arith.index_cast %2 : i32 to index
    %c0_245 = arith.constant 0 : index
    %769 = vector.load %arg4[%c12_244, %768, %c0_245] : memref<16x8x128xf32, #tpu.memory_space<vmem>>, vector<1x8x128xf32>
    %770 = vector.shape_cast %769 : vector<1x8x128xf32> to vector<8x128xf32>
    %771 = arith.mulf %721, %770 : vector<8x128xf32>
    %c13_246 = arith.constant 13 : index
    %772 = arith.index_cast %2 : i32 to index
    %c0_247 = arith.constant 0 : index
    %773 = vector.load %arg4[%c13_246, %772, %c0_247] : memref<16x8x128xf32, #tpu.memory_space<vmem>>, vector<1x8x128xf32>
    %774 = vector.shape_cast %773 : vector<1x8x128xf32> to vector<8x128xf32>
    %775 = arith.mulf %732, %774 : vector<8x128xf32>
    %776 = arith.addf %771, %775 : vector<8x128xf32>
    %777 = arith.mulf %776, %766 : vector<8x128xf32>
    %cst_248 = arith.constant 0.000000e+00 : f32
    %778 = vector.broadcast %cst_248 : f32 to vector<8x128xf32>
    %779 = arith.select %767, %777, %778 : vector<8x128xi1>, vector<8x128xf32>
    %cst_249 = arith.constant 0.000000e+00 : f32
    %780 = vector.broadcast %cst_249 : f32 to vector<8x128xf32>
    %781 = arith.cmpf oge, %779, %780 : vector<8x128xf32>
    %cst_250 = arith.constant 9.99999974E-6 : f32
    %782 = vector.broadcast %cst_250 : f32 to vector<8x128xf32>
    %783 = arith.mulf %782, %779 : vector<8x128xf32>
    %784 = arith.select %781, %779, %783 : vector<8x128xi1>, vector<8x128xf32>
    %785 = math.absf %784 : vector<8x128xf32>
    %c12_251 = arith.constant 12 : index
    %786 = arith.index_cast %2 : i32 to index
    %c0_252 = arith.constant 0 : index
    %787 = vector.load %arg4[%c12_251, %786, %c0_252] : memref<16x8x128xf32, #tpu.memory_space<vmem>>, vector<1x8x128xf32>
    %788 = vector.shape_cast %787 : vector<1x8x128xf32> to vector<8x128xf32>
    %789 = arith.mulf %743, %788 : vector<8x128xf32>
    %c13_253 = arith.constant 13 : index
    %790 = arith.index_cast %2 : i32 to index
    %c0_254 = arith.constant 0 : index
    %791 = vector.load %arg4[%c13_253, %790, %c0_254] : memref<16x8x128xf32, #tpu.memory_space<vmem>>, vector<1x8x128xf32>
    %792 = vector.shape_cast %791 : vector<1x8x128xf32> to vector<8x128xf32>
    %793 = arith.mulf %754, %792 : vector<8x128xf32>
    %794 = arith.addf %789, %793 : vector<8x128xf32>
    %795 = arith.mulf %794, %766 : vector<8x128xf32>
    %cst_255 = arith.constant 0.000000e+00 : f32
    %796 = vector.broadcast %cst_255 : f32 to vector<8x128xf32>
    %797 = arith.select %767, %795, %796 : vector<8x128xi1>, vector<8x128xf32>
    %cst_256 = arith.constant 0.000000e+00 : f32
    %798 = vector.broadcast %cst_256 : f32 to vector<8x128xf32>
    %799 = arith.cmpf oge, %797, %798 : vector<8x128xf32>
    %cst_257 = arith.constant 9.99999974E-6 : f32
    %800 = vector.broadcast %cst_257 : f32 to vector<8x128xf32>
    %801 = arith.mulf %800, %797 : vector<8x128xf32>
    %802 = arith.select %799, %797, %801 : vector<8x128xi1>, vector<8x128xf32>
    %803 = math.absf %802 : vector<8x128xf32>
    %804 = arith.addf %785, %803 : vector<8x128xf32>
    %805 = tpu.reciprocal %804 : vector<8x128xf32> -> vector<8x128xf32>
    %806 = arith.mulf %785, %805 : vector<8x128xf32>
    %c12_258 = arith.constant 12 : index
    %807 = arith.index_cast %2 : i32 to index
    %c0_259 = arith.constant 0 : index
    %808 = vector.load %arg5[%c12_258, %807, %c0_259] : memref<16x8x128xf32, #tpu.memory_space<vmem>>, vector<1x8x128xf32>
    %809 = vector.shape_cast %808 : vector<1x8x128xf32> to vector<8x128xf32>
    %810 = vector.shape_cast %806 : vector<8x128xf32> to vector<1x8x128xf32>
    tpu.vector_store %arg5[%c12_258, %807, %c0_259], %810 {strides = array<i32>} : memref<16x8x128xf32, #tpu.memory_space<vmem>>, vector<1x8x128xf32>,
    %811 = arith.mulf %803, %805 : vector<8x128xf32>
    %c13_260 = arith.constant 13 : index
    %812 = arith.index_cast %2 : i32 to index
    %c0_261 = arith.constant 0 : index
    %813 = vector.load %arg5[%c13_260, %812, %c0_261] : memref<16x8x128xf32, #tpu.memory_space<vmem>>, vector<1x8x128xf32>
    %814 = vector.shape_cast %813 : vector<1x8x128xf32> to vector<8x128xf32>
    %815 = vector.shape_cast %811 : vector<8x128xf32> to vector<1x8x128xf32>
    tpu.vector_store %arg5[%c13_260, %812, %c0_261], %815 {strides = array<i32>} : memref<16x8x128xf32, #tpu.memory_space<vmem>>, vector<1x8x128xf32>,
    %c24_262 = arith.constant 24 : index
    %c0_263 = arith.constant 0 : index
    %c0_264 = arith.constant 0 : index
    %816 = vector.load %arg6[%c24_262, %c0_263, %c0_264] : memref<32x8x128xf32, #tpu.memory_space<vmem>>, vector<1x8x128xf32>
    %817 = vector.shape_cast %816 : vector<1x8x128xf32> to vector<8x128xf32>
    %818 = arith.mulf %817, %693 : vector<8x128xf32>
    %c25_265 = arith.constant 25 : index
    %c0_266 = arith.constant 0 : index
    %c0_267 = arith.constant 0 : index
    %819 = vector.load %arg6[%c25_265, %c0_266, %c0_267] : memref<32x8x128xf32, #tpu.memory_space<vmem>>, vector<1x8x128xf32>
    %820 = vector.shape_cast %819 : vector<1x8x128xf32> to vector<8x128xf32>
    %821 = arith.mulf %820, %695 : vector<8x128xf32>
    %822 = arith.addf %818, %821 : vector<8x128xf32>
    %c27_268 = arith.constant 27 : index
    %c0_269 = arith.constant 0 : index
    %c0_270 = arith.constant 0 : index
    %823 = vector.load %arg6[%c27_268, %c0_269, %c0_270] : memref<32x8x128xf32, #tpu.memory_space<vmem>>, vector<1x8x128xf32>
    %824 = vector.shape_cast %823 : vector<1x8x128xf32> to vector<8x128xf32>
    %825 = arith.mulf %824, %695 : vector<8x128xf32>
    %826 = arith.mulf %822, %822 : vector<8x128xf32>
    %827 = arith.mulf %825, %825 : vector<8x128xf32>
    %828 = arith.addf %826, %827 : vector<8x128xf32>
    %cst_271 = arith.constant 9.99999996E-13 : f32
    %829 = vector.broadcast %cst_271 : f32 to vector<8x128xf32>
    %830 = arith.addf %828, %829 : vector<8x128xf32>
    %831 = math.rsqrt %830 : vector<8x128xf32>
    %832 = arith.mulf %822, %831 : vector<8x128xf32>
    %833 = arith.mulf %825, %831 : vector<8x128xf32>
    %c8_272 = arith.constant 8 : index
    %c0_273 = arith.constant 0 : index
    %c0_274 = arith.constant 0 : index
    %834 = vector.load %arg7[%c8_272, %c0_273, %c0_274] : memref<14x8x128xf32, #tpu.memory_space<vmem>>, vector<1x8x128xf32>
    %835 = vector.shape_cast %834 : vector<1x8x128xf32> to vector<8x128xf32>
    %c9_275 = arith.constant 9 : index
    %c0_276 = arith.constant 0 : index
    %c0_277 = arith.constant 0 : index
    %836 = vector.load %arg7[%c9_275, %c0_276, %c0_277] : memref<14x8x128xf32, #tpu.memory_space<vmem>>, vector<1x8x128xf32>
    %837 = vector.shape_cast %836 : vector<1x8x128xf32> to vector<8x128xf32>
    %838 = arith.mulf %835, %832 : vector<8x128xf32>
    %839 = arith.mulf %835, %833 : vector<8x128xf32>
    %840 = arith.mulf %837, %833 : vector<8x128xf32>
    %c80_278 = arith.constant 80 : index
    %841 = memref.load %arg2[%c80_278] : memref<128xf32, #tpu.memory_space<smem>>
    %842 = vector.broadcast %841 : f32 to vector<8x128xf32>
    %843 = arith.mulf %842, %838 : vector<8x128xf32>
    %c84_279 = arith.constant 84 : index
    %844 = memref.load %arg2[%c84_279] : memref<128xf32, #tpu.memory_space<smem>>
    %845 = vector.broadcast %844 : f32 to vector<8x128xf32>
    %846 = arith.mulf %845, %839 : vector<8x128xf32>
    %847 = arith.addf %843, %846 : vector<8x128xf32>
    %c92_280 = arith.constant 92 : index
    %848 = memref.load %arg2[%c92_280] : memref<128xf32, #tpu.memory_space<smem>>
    %849 = vector.broadcast %848 : f32 to vector<8x128xf32>
    %850 = arith.mulf %849, %840 : vector<8x128xf32>
    %851 = arith.addf %847, %850 : vector<8x128xf32>
    %c81_281 = arith.constant 81 : index
    %852 = memref.load %arg2[%c81_281] : memref<128xf32, #tpu.memory_space<smem>>
    %853 = vector.broadcast %852 : f32 to vector<8x128xf32>
    %854 = arith.mulf %853, %838 : vector<8x128xf32>
    %c85_282 = arith.constant 85 : index
    %855 = memref.load %arg2[%c85_282] : memref<128xf32, #tpu.memory_space<smem>>
    %856 = vector.broadcast %855 : f32 to vector<8x128xf32>
    %857 = arith.mulf %856, %839 : vector<8x128xf32>
    %858 = arith.addf %854, %857 : vector<8x128xf32>
    %c93_283 = arith.constant 93 : index
    %859 = memref.load %arg2[%c93_283] : memref<128xf32, #tpu.memory_space<smem>>
    %860 = vector.broadcast %859 : f32 to vector<8x128xf32>
    %861 = arith.mulf %860, %840 : vector<8x128xf32>
    %862 = arith.addf %858, %861 : vector<8x128xf32>
    %c82 = arith.constant 82 : index
    %863 = memref.load %arg2[%c82] : memref<128xf32, #tpu.memory_space<smem>>
    %864 = vector.broadcast %863 : f32 to vector<8x128xf32>
    %865 = arith.mulf %864, %838 : vector<8x128xf32>
    %c86 = arith.constant 86 : index
    %866 = memref.load %arg2[%c86] : memref<128xf32, #tpu.memory_space<smem>>
    %867 = vector.broadcast %866 : f32 to vector<8x128xf32>
    %868 = arith.mulf %867, %839 : vector<8x128xf32>
    %869 = arith.addf %865, %868 : vector<8x128xf32>
    %c94 = arith.constant 94 : index
    %870 = memref.load %arg2[%c94] : memref<128xf32, #tpu.memory_space<smem>>
    %871 = vector.broadcast %870 : f32 to vector<8x128xf32>
    %872 = arith.mulf %871, %840 : vector<8x128xf32>
    %873 = arith.addf %869, %872 : vector<8x128xf32>
    %c83_284 = arith.constant 83 : index
    %874 = memref.load %arg2[%c83_284] : memref<128xf32, #tpu.memory_space<smem>>
    %875 = vector.broadcast %874 : f32 to vector<8x128xf32>
    %876 = arith.mulf %875, %838 : vector<8x128xf32>
    %c87_285 = arith.constant 87 : index
    %877 = memref.load %arg2[%c87_285] : memref<128xf32, #tpu.memory_space<smem>>
    %878 = vector.broadcast %877 : f32 to vector<8x128xf32>
    %879 = arith.mulf %878, %839 : vector<8x128xf32>
    %880 = arith.addf %876, %879 : vector<8x128xf32>
    %c95_286 = arith.constant 95 : index
    %881 = memref.load %arg2[%c95_286] : memref<128xf32, #tpu.memory_space<smem>>
    %882 = vector.broadcast %881 : f32 to vector<8x128xf32>
    %883 = arith.mulf %882, %840 : vector<8x128xf32>
    %884 = arith.addf %880, %883 : vector<8x128xf32>
    %885 = arith.mulf %851, %851 : vector<8x128xf32>
    %886 = arith.mulf %862, %862 : vector<8x128xf32>
    %887 = arith.addf %885, %886 : vector<8x128xf32>
    %888 = arith.mulf %873, %873 : vector<8x128xf32>
    %889 = arith.addf %887, %888 : vector<8x128xf32>
    %890 = arith.mulf %884, %884 : vector<8x128xf32>
    %891 = arith.addf %889, %890 : vector<8x128xf32>
    %cst_287 = arith.constant 9.99999996E-13 : f32
    %892 = vector.broadcast %cst_287 : f32 to vector<8x128xf32>
    %893 = arith.addf %891, %892 : vector<8x128xf32>
    %894 = math.rsqrt %893 : vector<8x128xf32>
    %895 = vector.broadcast %0 : f32 to vector<8x128xf32>
    %896 = arith.mulf %895, %894 : vector<8x128xf32>
    %897 = arith.cmpf oeq, %891, %891 : vector<8x128xf32>
    %c10_288 = arith.constant 10 : index
    %898 = arith.index_cast %2 : i32 to index
    %c0_289 = arith.constant 0 : index
    %899 = vector.load %arg4[%c10_288, %898, %c0_289] : memref<16x8x128xf32, #tpu.memory_space<vmem>>, vector<1x8x128xf32>
    %900 = vector.shape_cast %899 : vector<1x8x128xf32> to vector<8x128xf32>
    %901 = arith.mulf %851, %900 : vector<8x128xf32>
    %c11_290 = arith.constant 11 : index
    %902 = arith.index_cast %2 : i32 to index
    %c0_291 = arith.constant 0 : index
    %903 = vector.load %arg4[%c11_290, %902, %c0_291] : memref<16x8x128xf32, #tpu.memory_space<vmem>>, vector<1x8x128xf32>
    %904 = vector.shape_cast %903 : vector<1x8x128xf32> to vector<8x128xf32>
    %905 = arith.mulf %862, %904 : vector<8x128xf32>
    %906 = arith.addf %901, %905 : vector<8x128xf32>
    %907 = arith.mulf %906, %896 : vector<8x128xf32>
    %cst_292 = arith.constant 0.000000e+00 : f32
    %908 = vector.broadcast %cst_292 : f32 to vector<8x128xf32>
    %909 = arith.select %897, %907, %908 : vector<8x128xi1>, vector<8x128xf32>
    %cst_293 = arith.constant 0.000000e+00 : f32
    %910 = vector.broadcast %cst_293 : f32 to vector<8x128xf32>
    %911 = arith.cmpf oge, %909, %910 : vector<8x128xf32>
    %cst_294 = arith.constant 9.99999974E-6 : f32
    %912 = vector.broadcast %cst_294 : f32 to vector<8x128xf32>
    %913 = arith.mulf %912, %909 : vector<8x128xf32>
    %914 = arith.select %911, %909, %913 : vector<8x128xi1>, vector<8x128xf32>
    %915 = math.absf %914 : vector<8x128xf32>
    %c10_295 = arith.constant 10 : index
    %916 = arith.index_cast %2 : i32 to index
    %c0_296 = arith.constant 0 : index
    %917 = vector.load %arg4[%c10_295, %916, %c0_296] : memref<16x8x128xf32, #tpu.memory_space<vmem>>, vector<1x8x128xf32>
    %918 = vector.shape_cast %917 : vector<1x8x128xf32> to vector<8x128xf32>
    %919 = arith.mulf %873, %918 : vector<8x128xf32>
    %c11_297 = arith.constant 11 : index
    %920 = arith.index_cast %2 : i32 to index
    %c0_298 = arith.constant 0 : index
    %921 = vector.load %arg4[%c11_297, %920, %c0_298] : memref<16x8x128xf32, #tpu.memory_space<vmem>>, vector<1x8x128xf32>
    %922 = vector.shape_cast %921 : vector<1x8x128xf32> to vector<8x128xf32>
    %923 = arith.mulf %884, %922 : vector<8x128xf32>
    %924 = arith.addf %919, %923 : vector<8x128xf32>
    %925 = arith.mulf %924, %896 : vector<8x128xf32>
    %cst_299 = arith.constant 0.000000e+00 : f32
    %926 = vector.broadcast %cst_299 : f32 to vector<8x128xf32>
    %927 = arith.select %897, %925, %926 : vector<8x128xi1>, vector<8x128xf32>
    %cst_300 = arith.constant 0.000000e+00 : f32
    %928 = vector.broadcast %cst_300 : f32 to vector<8x128xf32>
    %929 = arith.cmpf oge, %927, %928 : vector<8x128xf32>
    %cst_301 = arith.constant 9.99999974E-6 : f32
    %930 = vector.broadcast %cst_301 : f32 to vector<8x128xf32>
    %931 = arith.mulf %930, %927 : vector<8x128xf32>
    %932 = arith.select %929, %927, %931 : vector<8x128xi1>, vector<8x128xf32>
    %933 = math.absf %932 : vector<8x128xf32>
    %934 = arith.addf %915, %933 : vector<8x128xf32>
    %935 = tpu.reciprocal %934 : vector<8x128xf32> -> vector<8x128xf32>
    %936 = arith.mulf %915, %935 : vector<8x128xf32>
    %c10_302 = arith.constant 10 : index
    %937 = arith.index_cast %2 : i32 to index
    %c0_303 = arith.constant 0 : index
    %938 = vector.load %arg5[%c10_302, %937, %c0_303] : memref<16x8x128xf32, #tpu.memory_space<vmem>>, vector<1x8x128xf32>
    %939 = vector.shape_cast %938 : vector<1x8x128xf32> to vector<8x128xf32>
    %940 = vector.shape_cast %936 : vector<8x128xf32> to vector<1x8x128xf32>
    tpu.vector_store %arg5[%c10_302, %937, %c0_303], %940 {strides = array<i32>} : memref<16x8x128xf32, #tpu.memory_space<vmem>>, vector<1x8x128xf32>,
    %941 = arith.mulf %933, %935 : vector<8x128xf32>
    %c11_304 = arith.constant 11 : index
    %942 = arith.index_cast %2 : i32 to index
    %c0_305 = arith.constant 0 : index
    %943 = vector.load %arg5[%c11_304, %942, %c0_305] : memref<16x8x128xf32, #tpu.memory_space<vmem>>, vector<1x8x128xf32>
    %944 = vector.shape_cast %943 : vector<1x8x128xf32> to vector<8x128xf32>
    %945 = vector.shape_cast %941 : vector<8x128xf32> to vector<1x8x128xf32>
    tpu.vector_store %arg5[%c11_304, %942, %c0_305], %945 {strides = array<i32>} : memref<16x8x128xf32, #tpu.memory_space<vmem>>, vector<1x8x128xf32>,
    %c20_306 = arith.constant 20 : index
    %c0_307 = arith.constant 0 : index
    %c0_308 = arith.constant 0 : index
    %946 = vector.load %arg6[%c20_306, %c0_307, %c0_308] : memref<32x8x128xf32, #tpu.memory_space<vmem>>, vector<1x8x128xf32>
    %947 = vector.shape_cast %946 : vector<1x8x128xf32> to vector<8x128xf32>
    %948 = arith.mulf %947, %822 : vector<8x128xf32>
    %c21_309 = arith.constant 21 : index
    %c0_310 = arith.constant 0 : index
    %c0_311 = arith.constant 0 : index
    %949 = vector.load %arg6[%c21_309, %c0_310, %c0_311] : memref<32x8x128xf32, #tpu.memory_space<vmem>>, vector<1x8x128xf32>
    %950 = vector.shape_cast %949 : vector<1x8x128xf32> to vector<8x128xf32>
    %951 = arith.mulf %950, %825 : vector<8x128xf32>
    %952 = arith.addf %948, %951 : vector<8x128xf32>
    %c23_312 = arith.constant 23 : index
    %c0_313 = arith.constant 0 : index
    %c0_314 = arith.constant 0 : index
    %953 = vector.load %arg6[%c23_312, %c0_313, %c0_314] : memref<32x8x128xf32, #tpu.memory_space<vmem>>, vector<1x8x128xf32>
    %954 = vector.shape_cast %953 : vector<1x8x128xf32> to vector<8x128xf32>
    %955 = arith.mulf %954, %825 : vector<8x128xf32>
    %956 = arith.mulf %952, %952 : vector<8x128xf32>
    %957 = arith.mulf %955, %955 : vector<8x128xf32>
    %958 = arith.addf %956, %957 : vector<8x128xf32>
    %cst_315 = arith.constant 9.99999996E-13 : f32
    %959 = vector.broadcast %cst_315 : f32 to vector<8x128xf32>
    %960 = arith.addf %958, %959 : vector<8x128xf32>
    %961 = math.rsqrt %960 : vector<8x128xf32>
    %962 = arith.mulf %952, %961 : vector<8x128xf32>
    %963 = arith.mulf %955, %961 : vector<8x128xf32>
    %c6_316 = arith.constant 6 : index
    %c0_317 = arith.constant 0 : index
    %c0_318 = arith.constant 0 : index
    %964 = vector.load %arg7[%c6_316, %c0_317, %c0_318] : memref<14x8x128xf32, #tpu.memory_space<vmem>>, vector<1x8x128xf32>
    %965 = vector.shape_cast %964 : vector<1x8x128xf32> to vector<8x128xf32>
    %c7_319 = arith.constant 7 : index
    %c0_320 = arith.constant 0 : index
    %c0_321 = arith.constant 0 : index
    %966 = vector.load %arg7[%c7_319, %c0_320, %c0_321] : memref<14x8x128xf32, #tpu.memory_space<vmem>>, vector<1x8x128xf32>
    %967 = vector.shape_cast %966 : vector<1x8x128xf32> to vector<8x128xf32>
    %968 = arith.mulf %965, %962 : vector<8x128xf32>
    %969 = arith.mulf %965, %963 : vector<8x128xf32>
    %970 = arith.mulf %967, %963 : vector<8x128xf32>
    %c64_322 = arith.constant 64 : index
    %971 = memref.load %arg2[%c64_322] : memref<128xf32, #tpu.memory_space<smem>>
    %972 = vector.broadcast %971 : f32 to vector<8x128xf32>
    %973 = arith.mulf %972, %968 : vector<8x128xf32>
    %c68_323 = arith.constant 68 : index
    %974 = memref.load %arg2[%c68_323] : memref<128xf32, #tpu.memory_space<smem>>
    %975 = vector.broadcast %974 : f32 to vector<8x128xf32>
    %976 = arith.mulf %975, %969 : vector<8x128xf32>
    %977 = arith.addf %973, %976 : vector<8x128xf32>
    %c76_324 = arith.constant 76 : index
    %978 = memref.load %arg2[%c76_324] : memref<128xf32, #tpu.memory_space<smem>>
    %979 = vector.broadcast %978 : f32 to vector<8x128xf32>
    %980 = arith.mulf %979, %970 : vector<8x128xf32>
    %981 = arith.addf %977, %980 : vector<8x128xf32>
    %c65_325 = arith.constant 65 : index
    %982 = memref.load %arg2[%c65_325] : memref<128xf32, #tpu.memory_space<smem>>
    %983 = vector.broadcast %982 : f32 to vector<8x128xf32>
    %984 = arith.mulf %983, %968 : vector<8x128xf32>
    %c69_326 = arith.constant 69 : index
    %985 = memref.load %arg2[%c69_326] : memref<128xf32, #tpu.memory_space<smem>>
    %986 = vector.broadcast %985 : f32 to vector<8x128xf32>
    %987 = arith.mulf %986, %969 : vector<8x128xf32>
    %988 = arith.addf %984, %987 : vector<8x128xf32>
    %c77_327 = arith.constant 77 : index
    %989 = memref.load %arg2[%c77_327] : memref<128xf32, #tpu.memory_space<smem>>
    %990 = vector.broadcast %989 : f32 to vector<8x128xf32>
    %991 = arith.mulf %990, %970 : vector<8x128xf32>
    %992 = arith.addf %988, %991 : vector<8x128xf32>
    %c66 = arith.constant 66 : index
    %993 = memref.load %arg2[%c66] : memref<128xf32, #tpu.memory_space<smem>>
    %994 = vector.broadcast %993 : f32 to vector<8x128xf32>
    %995 = arith.mulf %994, %968 : vector<8x128xf32>
    %c70 = arith.constant 70 : index
    %996 = memref.load %arg2[%c70] : memref<128xf32, #tpu.memory_space<smem>>
    %997 = vector.broadcast %996 : f32 to vector<8x128xf32>
    %998 = arith.mulf %997, %969 : vector<8x128xf32>
    %999 = arith.addf %995, %998 : vector<8x128xf32>
    %c78 = arith.constant 78 : index
    %1000 = memref.load %arg2[%c78] : memref<128xf32, #tpu.memory_space<smem>>
    %1001 = vector.broadcast %1000 : f32 to vector<8x128xf32>
    %1002 = arith.mulf %1001, %970 : vector<8x128xf32>
    %1003 = arith.addf %999, %1002 : vector<8x128xf32>
    %c67_328 = arith.constant 67 : index
    %1004 = memref.load %arg2[%c67_328] : memref<128xf32, #tpu.memory_space<smem>>
    %1005 = vector.broadcast %1004 : f32 to vector<8x128xf32>
    %1006 = arith.mulf %1005, %968 : vector<8x128xf32>
    %c71_329 = arith.constant 71 : index
    %1007 = memref.load %arg2[%c71_329] : memref<128xf32, #tpu.memory_space<smem>>
    %1008 = vector.broadcast %1007 : f32 to vector<8x128xf32>
    %1009 = arith.mulf %1008, %969 : vector<8x128xf32>
    %1010 = arith.addf %1006, %1009 : vector<8x128xf32>
    %c79_330 = arith.constant 79 : index
    %1011 = memref.load %arg2[%c79_330] : memref<128xf32, #tpu.memory_space<smem>>
    %1012 = vector.broadcast %1011 : f32 to vector<8x128xf32>
    %1013 = arith.mulf %1012, %970 : vector<8x128xf32>
    %1014 = arith.addf %1010, %1013 : vector<8x128xf32>
    %1015 = arith.mulf %981, %981 : vector<8x128xf32>
    %1016 = arith.mulf %992, %992 : vector<8x128xf32>
    %1017 = arith.addf %1015, %1016 : vector<8x128xf32>
    %1018 = arith.mulf %1003, %1003 : vector<8x128xf32>
    %1019 = arith.addf %1017, %1018 : vector<8x128xf32>
    %1020 = arith.mulf %1014, %1014 : vector<8x128xf32>
    %1021 = arith.addf %1019, %1020 : vector<8x128xf32>
    %cst_331 = arith.constant 9.99999996E-13 : f32
    %1022 = vector.broadcast %cst_331 : f32 to vector<8x128xf32>
    %1023 = arith.addf %1021, %1022 : vector<8x128xf32>
    %1024 = math.rsqrt %1023 : vector<8x128xf32>
    %1025 = vector.broadcast %0 : f32 to vector<8x128xf32>
    %1026 = arith.mulf %1025, %1024 : vector<8x128xf32>
    %1027 = arith.cmpf oeq, %1021, %1021 : vector<8x128xf32>
    %c8_332 = arith.constant 8 : index
    %1028 = arith.index_cast %2 : i32 to index
    %c0_333 = arith.constant 0 : index
    %1029 = vector.load %arg4[%c8_332, %1028, %c0_333] : memref<16x8x128xf32, #tpu.memory_space<vmem>>, vector<1x8x128xf32>
    %1030 = vector.shape_cast %1029 : vector<1x8x128xf32> to vector<8x128xf32>
    %1031 = arith.mulf %981, %1030 : vector<8x128xf32>
    %c9_334 = arith.constant 9 : index
    %1032 = arith.index_cast %2 : i32 to index
    %c0_335 = arith.constant 0 : index
    %1033 = vector.load %arg4[%c9_334, %1032, %c0_335] : memref<16x8x128xf32, #tpu.memory_space<vmem>>, vector<1x8x128xf32>
    %1034 = vector.shape_cast %1033 : vector<1x8x128xf32> to vector<8x128xf32>
    %1035 = arith.mulf %992, %1034 : vector<8x128xf32>
    %1036 = arith.addf %1031, %1035 : vector<8x128xf32>
    %1037 = arith.mulf %1036, %1026 : vector<8x128xf32>
    %cst_336 = arith.constant 0.000000e+00 : f32
    %1038 = vector.broadcast %cst_336 : f32 to vector<8x128xf32>
    %1039 = arith.select %1027, %1037, %1038 : vector<8x128xi1>, vector<8x128xf32>
    %cst_337 = arith.constant 0.000000e+00 : f32
    %1040 = vector.broadcast %cst_337 : f32 to vector<8x128xf32>
    %1041 = arith.cmpf oge, %1039, %1040 : vector<8x128xf32>
    %cst_338 = arith.constant 9.99999974E-6 : f32
    %1042 = vector.broadcast %cst_338 : f32 to vector<8x128xf32>
    %1043 = arith.mulf %1042, %1039 : vector<8x128xf32>
    %1044 = arith.select %1041, %1039, %1043 : vector<8x128xi1>, vector<8x128xf32>
    %1045 = math.absf %1044 : vector<8x128xf32>
    %c8_339 = arith.constant 8 : index
    %1046 = arith.index_cast %2 : i32 to index
    %c0_340 = arith.constant 0 : index
    %1047 = vector.load %arg4[%c8_339, %1046, %c0_340] : memref<16x8x128xf32, #tpu.memory_space<vmem>>, vector<1x8x128xf32>
    %1048 = vector.shape_cast %1047 : vector<1x8x128xf32> to vector<8x128xf32>
    %1049 = arith.mulf %1003, %1048 : vector<8x128xf32>
    %c9_341 = arith.constant 9 : index
    %1050 = arith.index_cast %2 : i32 to index
    %c0_342 = arith.constant 0 : index
    %1051 = vector.load %arg4[%c9_341, %1050, %c0_342] : memref<16x8x128xf32, #tpu.memory_space<vmem>>, vector<1x8x128xf32>
    %1052 = vector.shape_cast %1051 : vector<1x8x128xf32> to vector<8x128xf32>
    %1053 = arith.mulf %1014, %1052 : vector<8x128xf32>
    %1054 = arith.addf %1049, %1053 : vector<8x128xf32>
    %1055 = arith.mulf %1054, %1026 : vector<8x128xf32>
    %cst_343 = arith.constant 0.000000e+00 : f32
    %1056 = vector.broadcast %cst_343 : f32 to vector<8x128xf32>
    %1057 = arith.select %1027, %1055, %1056 : vector<8x128xi1>, vector<8x128xf32>
    %cst_344 = arith.constant 0.000000e+00 : f32
    %1058 = vector.broadcast %cst_344 : f32 to vector<8x128xf32>
    %1059 = arith.cmpf oge, %1057, %1058 : vector<8x128xf32>
    %cst_345 = arith.constant 9.99999974E-6 : f32
    %1060 = vector.broadcast %cst_345 : f32 to vector<8x128xf32>
    %1061 = arith.mulf %1060, %1057 : vector<8x128xf32>
    %1062 = arith.select %1059, %1057, %1061 : vector<8x128xi1>, vector<8x128xf32>
    %1063 = math.absf %1062 : vector<8x128xf32>
    %1064 = arith.addf %1045, %1063 : vector<8x128xf32>
    %1065 = tpu.reciprocal %1064 : vector<8x128xf32> -> vector<8x128xf32>
    %1066 = arith.mulf %1045, %1065 : vector<8x128xf32>
    %c8_346 = arith.constant 8 : index
    %1067 = arith.index_cast %2 : i32 to index
    %c0_347 = arith.constant 0 : index
    %1068 = vector.load %arg5[%c8_346, %1067, %c0_347] : memref<16x8x128xf32, #tpu.memory_space<vmem>>, vector<1x8x128xf32>
    %1069 = vector.shape_cast %1068 : vector<1x8x128xf32> to vector<8x128xf32>
    %1070 = vector.shape_cast %1066 : vector<8x128xf32> to vector<1x8x128xf32>
    tpu.vector_store %arg5[%c8_346, %1067, %c0_347], %1070 {strides = array<i32>} : memref<16x8x128xf32, #tpu.memory_space<vmem>>, vector<1x8x128xf32>,
    %1071 = arith.mulf %1063, %1065 : vector<8x128xf32>
    %c9_348 = arith.constant 9 : index
    %1072 = arith.index_cast %2 : i32 to index
    %c0_349 = arith.constant 0 : index
    %1073 = vector.load %arg5[%c9_348, %1072, %c0_349] : memref<16x8x128xf32, #tpu.memory_space<vmem>>, vector<1x8x128xf32>
    %1074 = vector.shape_cast %1073 : vector<1x8x128xf32> to vector<8x128xf32>
    %1075 = vector.shape_cast %1071 : vector<8x128xf32> to vector<1x8x128xf32>
    tpu.vector_store %arg5[%c9_348, %1072, %c0_349], %1075 {strides = array<i32>} : memref<16x8x128xf32, #tpu.memory_space<vmem>>, vector<1x8x128xf32>,
    %c16_350 = arith.constant 16 : index
    %c0_351 = arith.constant 0 : index
    %c0_352 = arith.constant 0 : index
    %1076 = vector.load %arg6[%c16_350, %c0_351, %c0_352] : memref<32x8x128xf32, #tpu.memory_space<vmem>>, vector<1x8x128xf32>
    %1077 = vector.shape_cast %1076 : vector<1x8x128xf32> to vector<8x128xf32>
    %1078 = arith.mulf %1077, %952 : vector<8x128xf32>
    %c17_353 = arith.constant 17 : index
    %c0_354 = arith.constant 0 : index
    %c0_355 = arith.constant 0 : index
    %1079 = vector.load %arg6[%c17_353, %c0_354, %c0_355] : memref<32x8x128xf32, #tpu.memory_space<vmem>>, vector<1x8x128xf32>
    %1080 = vector.shape_cast %1079 : vector<1x8x128xf32> to vector<8x128xf32>
    %1081 = arith.mulf %1080, %955 : vector<8x128xf32>
    %1082 = arith.addf %1078, %1081 : vector<8x128xf32>
    %c19_356 = arith.constant 19 : index
    %c0_357 = arith.constant 0 : index
    %c0_358 = arith.constant 0 : index
    %1083 = vector.load %arg6[%c19_356, %c0_357, %c0_358] : memref<32x8x128xf32, #tpu.memory_space<vmem>>, vector<1x8x128xf32>
    %1084 = vector.shape_cast %1083 : vector<1x8x128xf32> to vector<8x128xf32>
    %1085 = arith.mulf %1084, %955 : vector<8x128xf32>
    %1086 = arith.mulf %1082, %1082 : vector<8x128xf32>
    %1087 = arith.mulf %1085, %1085 : vector<8x128xf32>
    %1088 = arith.addf %1086, %1087 : vector<8x128xf32>
    %cst_359 = arith.constant 9.99999996E-13 : f32
    %1089 = vector.broadcast %cst_359 : f32 to vector<8x128xf32>
    %1090 = arith.addf %1088, %1089 : vector<8x128xf32>
    %1091 = math.rsqrt %1090 : vector<8x128xf32>
    %1092 = arith.mulf %1082, %1091 : vector<8x128xf32>
    %1093 = arith.mulf %1085, %1091 : vector<8x128xf32>
    %c4_360 = arith.constant 4 : index
    %c0_361 = arith.constant 0 : index
    %c0_362 = arith.constant 0 : index
    %1094 = vector.load %arg7[%c4_360, %c0_361, %c0_362] : memref<14x8x128xf32, #tpu.memory_space<vmem>>, vector<1x8x128xf32>
    %1095 = vector.shape_cast %1094 : vector<1x8x128xf32> to vector<8x128xf32>
    %c5_363 = arith.constant 5 : index
    %c0_364 = arith.constant 0 : index
    %c0_365 = arith.constant 0 : index
    %1096 = vector.load %arg7[%c5_363, %c0_364, %c0_365] : memref<14x8x128xf32, #tpu.memory_space<vmem>>, vector<1x8x128xf32>
    %1097 = vector.shape_cast %1096 : vector<1x8x128xf32> to vector<8x128xf32>
    %1098 = arith.mulf %1095, %1092 : vector<8x128xf32>
    %1099 = arith.mulf %1095, %1093 : vector<8x128xf32>
    %1100 = arith.mulf %1097, %1093 : vector<8x128xf32>
    %c48_366 = arith.constant 48 : index
    %1101 = memref.load %arg2[%c48_366] : memref<128xf32, #tpu.memory_space<smem>>
    %1102 = vector.broadcast %1101 : f32 to vector<8x128xf32>
    %1103 = arith.mulf %1102, %1098 : vector<8x128xf32>
    %c52_367 = arith.constant 52 : index
    %1104 = memref.load %arg2[%c52_367] : memref<128xf32, #tpu.memory_space<smem>>
    %1105 = vector.broadcast %1104 : f32 to vector<8x128xf32>
    %1106 = arith.mulf %1105, %1099 : vector<8x128xf32>
    %1107 = arith.addf %1103, %1106 : vector<8x128xf32>
    %c60_368 = arith.constant 60 : index
    %1108 = memref.load %arg2[%c60_368] : memref<128xf32, #tpu.memory_space<smem>>
    %1109 = vector.broadcast %1108 : f32 to vector<8x128xf32>
    %1110 = arith.mulf %1109, %1100 : vector<8x128xf32>
    %1111 = arith.addf %1107, %1110 : vector<8x128xf32>
    %c49_369 = arith.constant 49 : index
    %1112 = memref.load %arg2[%c49_369] : memref<128xf32, #tpu.memory_space<smem>>
    %1113 = vector.broadcast %1112 : f32 to vector<8x128xf32>
    %1114 = arith.mulf %1113, %1098 : vector<8x128xf32>
    %c53_370 = arith.constant 53 : index
    %1115 = memref.load %arg2[%c53_370] : memref<128xf32, #tpu.memory_space<smem>>
    %1116 = vector.broadcast %1115 : f32 to vector<8x128xf32>
    %1117 = arith.mulf %1116, %1099 : vector<8x128xf32>
    %1118 = arith.addf %1114, %1117 : vector<8x128xf32>
    %c61_371 = arith.constant 61 : index
    %1119 = memref.load %arg2[%c61_371] : memref<128xf32, #tpu.memory_space<smem>>
    %1120 = vector.broadcast %1119 : f32 to vector<8x128xf32>
    %1121 = arith.mulf %1120, %1100 : vector<8x128xf32>
    %1122 = arith.addf %1118, %1121 : vector<8x128xf32>
    %c50 = arith.constant 50 : index
    %1123 = memref.load %arg2[%c50] : memref<128xf32, #tpu.memory_space<smem>>
    %1124 = vector.broadcast %1123 : f32 to vector<8x128xf32>
    %1125 = arith.mulf %1124, %1098 : vector<8x128xf32>
    %c54 = arith.constant 54 : index
    %1126 = memref.load %arg2[%c54] : memref<128xf32, #tpu.memory_space<smem>>
    %1127 = vector.broadcast %1126 : f32 to vector<8x128xf32>
    %1128 = arith.mulf %1127, %1099 : vector<8x128xf32>
    %1129 = arith.addf %1125, %1128 : vector<8x128xf32>
    %c62 = arith.constant 62 : index
    %1130 = memref.load %arg2[%c62] : memref<128xf32, #tpu.memory_space<smem>>
    %1131 = vector.broadcast %1130 : f32 to vector<8x128xf32>
    %1132 = arith.mulf %1131, %1100 : vector<8x128xf32>
    %1133 = arith.addf %1129, %1132 : vector<8x128xf32>
    %c51_372 = arith.constant 51 : index
    %1134 = memref.load %arg2[%c51_372] : memref<128xf32, #tpu.memory_space<smem>>
    %1135 = vector.broadcast %1134 : f32 to vector<8x128xf32>
    %1136 = arith.mulf %1135, %1098 : vector<8x128xf32>
    %c55_373 = arith.constant 55 : index
    %1137 = memref.load %arg2[%c55_373] : memref<128xf32, #tpu.memory_space<smem>>
    %1138 = vector.broadcast %1137 : f32 to vector<8x128xf32>
    %1139 = arith.mulf %1138, %1099 : vector<8x128xf32>
    %1140 = arith.addf %1136, %1139 : vector<8x128xf32>
    %c63_374 = arith.constant 63 : index
    %1141 = memref.load %arg2[%c63_374] : memref<128xf32, #tpu.memory_space<smem>>
    %1142 = vector.broadcast %1141 : f32 to vector<8x128xf32>
    %1143 = arith.mulf %1142, %1100 : vector<8x128xf32>
    %1144 = arith.addf %1140, %1143 : vector<8x128xf32>
    %1145 = arith.mulf %1111, %1111 : vector<8x128xf32>
    %1146 = arith.mulf %1122, %1122 : vector<8x128xf32>
    %1147 = arith.addf %1145, %1146 : vector<8x128xf32>
    %1148 = arith.mulf %1133, %1133 : vector<8x128xf32>
    %1149 = arith.addf %1147, %1148 : vector<8x128xf32>
    %1150 = arith.mulf %1144, %1144 : vector<8x128xf32>
    %1151 = arith.addf %1149, %1150 : vector<8x128xf32>
    %cst_375 = arith.constant 9.99999996E-13 : f32
    %1152 = vector.broadcast %cst_375 : f32 to vector<8x128xf32>
    %1153 = arith.addf %1151, %1152 : vector<8x128xf32>
    %1154 = math.rsqrt %1153 : vector<8x128xf32>
    %1155 = vector.broadcast %0 : f32 to vector<8x128xf32>
    %1156 = arith.mulf %1155, %1154 : vector<8x128xf32>
    %1157 = arith.cmpf oeq, %1151, %1151 : vector<8x128xf32>
    %c6_376 = arith.constant 6 : index
    %1158 = arith.index_cast %2 : i32 to index
    %c0_377 = arith.constant 0 : index
    %1159 = vector.load %arg4[%c6_376, %1158, %c0_377] : memref<16x8x128xf32, #tpu.memory_space<vmem>>, vector<1x8x128xf32>
    %1160 = vector.shape_cast %1159 : vector<1x8x128xf32> to vector<8x128xf32>
    %1161 = arith.mulf %1111, %1160 : vector<8x128xf32>
    %c7_378 = arith.constant 7 : index
    %1162 = arith.index_cast %2 : i32 to index
    %c0_379 = arith.constant 0 : index
    %1163 = vector.load %arg4[%c7_378, %1162, %c0_379] : memref<16x8x128xf32, #tpu.memory_space<vmem>>, vector<1x8x128xf32>
    %1164 = vector.shape_cast %1163 : vector<1x8x128xf32> to vector<8x128xf32>
    %1165 = arith.mulf %1122, %1164 : vector<8x128xf32>
    %1166 = arith.addf %1161, %1165 : vector<8x128xf32>
    %1167 = arith.mulf %1166, %1156 : vector<8x128xf32>
    %cst_380 = arith.constant 0.000000e+00 : f32
    %1168 = vector.broadcast %cst_380 : f32 to vector<8x128xf32>
    %1169 = arith.select %1157, %1167, %1168 : vector<8x128xi1>, vector<8x128xf32>
    %cst_381 = arith.constant 0.000000e+00 : f32
    %1170 = vector.broadcast %cst_381 : f32 to vector<8x128xf32>
    %1171 = arith.cmpf oge, %1169, %1170 : vector<8x128xf32>
    %cst_382 = arith.constant 9.99999974E-6 : f32
    %1172 = vector.broadcast %cst_382 : f32 to vector<8x128xf32>
    %1173 = arith.mulf %1172, %1169 : vector<8x128xf32>
    %1174 = arith.select %1171, %1169, %1173 : vector<8x128xi1>, vector<8x128xf32>
    %1175 = math.absf %1174 : vector<8x128xf32>
    %c6_383 = arith.constant 6 : index
    %1176 = arith.index_cast %2 : i32 to index
    %c0_384 = arith.constant 0 : index
    %1177 = vector.load %arg4[%c6_383, %1176, %c0_384] : memref<16x8x128xf32, #tpu.memory_space<vmem>>, vector<1x8x128xf32>
    %1178 = vector.shape_cast %1177 : vector<1x8x128xf32> to vector<8x128xf32>
    %1179 = arith.mulf %1133, %1178 : vector<8x128xf32>
    %c7_385 = arith.constant 7 : index
    %1180 = arith.index_cast %2 : i32 to index
    %c0_386 = arith.constant 0 : index
    %1181 = vector.load %arg4[%c7_385, %1180, %c0_386] : memref<16x8x128xf32, #tpu.memory_space<vmem>>, vector<1x8x128xf32>
    %1182 = vector.shape_cast %1181 : vector<1x8x128xf32> to vector<8x128xf32>
    %1183 = arith.mulf %1144, %1182 : vector<8x128xf32>
    %1184 = arith.addf %1179, %1183 : vector<8x128xf32>
    %1185 = arith.mulf %1184, %1156 : vector<8x128xf32>
    %cst_387 = arith.constant 0.000000e+00 : f32
    %1186 = vector.broadcast %cst_387 : f32 to vector<8x128xf32>
    %1187 = arith.select %1157, %1185, %1186 : vector<8x128xi1>, vector<8x128xf32>
    %cst_388 = arith.constant 0.000000e+00 : f32
    %1188 = vector.broadcast %cst_388 : f32 to vector<8x128xf32>
    %1189 = arith.cmpf oge, %1187, %1188 : vector<8x128xf32>
    %cst_389 = arith.constant 9.99999974E-6 : f32
    %1190 = vector.broadcast %cst_389 : f32 to vector<8x128xf32>
    %1191 = arith.mulf %1190, %1187 : vector<8x128xf32>
    %1192 = arith.select %1189, %1187, %1191 : vector<8x128xi1>, vector<8x128xf32>
    %1193 = math.absf %1192 : vector<8x128xf32>
    %1194 = arith.addf %1175, %1193 : vector<8x128xf32>
    %1195 = tpu.reciprocal %1194 : vector<8x128xf32> -> vector<8x128xf32>
    %1196 = arith.mulf %1175, %1195 : vector<8x128xf32>
    %c6_390 = arith.constant 6 : index
    %1197 = arith.index_cast %2 : i32 to index
    %c0_391 = arith.constant 0 : index
    %1198 = vector.load %arg5[%c6_390, %1197, %c0_391] : memref<16x8x128xf32, #tpu.memory_space<vmem>>, vector<1x8x128xf32>
    %1199 = vector.shape_cast %1198 : vector<1x8x128xf32> to vector<8x128xf32>
    %1200 = vector.shape_cast %1196 : vector<8x128xf32> to vector<1x8x128xf32>
    tpu.vector_store %arg5[%c6_390, %1197, %c0_391], %1200 {strides = array<i32>} : memref<16x8x128xf32, #tpu.memory_space<vmem>>, vector<1x8x128xf32>,
    %1201 = arith.mulf %1193, %1195 : vector<8x128xf32>
    %c7_392 = arith.constant 7 : index
    %1202 = arith.index_cast %2 : i32 to index
    %c0_393 = arith.constant 0 : index
    %1203 = vector.load %arg5[%c7_392, %1202, %c0_393] : memref<16x8x128xf32, #tpu.memory_space<vmem>>, vector<1x8x128xf32>
    %1204 = vector.shape_cast %1203 : vector<1x8x128xf32> to vector<8x128xf32>
    %1205 = vector.shape_cast %1201 : vector<8x128xf32> to vector<1x8x128xf32>
    tpu.vector_store %arg5[%c7_392, %1202, %c0_393], %1205 {strides = array<i32>} : memref<16x8x128xf32, #tpu.memory_space<vmem>>, vector<1x8x128xf32>,
    %c12_394 = arith.constant 12 : index
    %c0_395 = arith.constant 0 : index
    %c0_396 = arith.constant 0 : index
    %1206 = vector.load %arg6[%c12_394, %c0_395, %c0_396] : memref<32x8x128xf32, #tpu.memory_space<vmem>>, vector<1x8x128xf32>
    %1207 = vector.shape_cast %1206 : vector<1x8x128xf32> to vector<8x128xf32>
    %1208 = arith.mulf %1207, %1082 : vector<8x128xf32>
    %c13_397 = arith.constant 13 : index
    %c0_398 = arith.constant 0 : index
    %c0_399 = arith.constant 0 : index
    %1209 = vector.load %arg6[%c13_397, %c0_398, %c0_399] : memref<32x8x128xf32, #tpu.memory_space<vmem>>, vector<1x8x128xf32>
    %1210 = vector.shape_cast %1209 : vector<1x8x128xf32> to vector<8x128xf32>
    %1211 = arith.mulf %1210, %1085 : vector<8x128xf32>
    %1212 = arith.addf %1208, %1211 : vector<8x128xf32>
    %c15_400 = arith.constant 15 : index
    %c0_401 = arith.constant 0 : index
    %c0_402 = arith.constant 0 : index
    %1213 = vector.load %arg6[%c15_400, %c0_401, %c0_402] : memref<32x8x128xf32, #tpu.memory_space<vmem>>, vector<1x8x128xf32>
    %1214 = vector.shape_cast %1213 : vector<1x8x128xf32> to vector<8x128xf32>
    %1215 = arith.mulf %1214, %1085 : vector<8x128xf32>
    %1216 = arith.mulf %1212, %1212 : vector<8x128xf32>
    %1217 = arith.mulf %1215, %1215 : vector<8x128xf32>
    %1218 = arith.addf %1216, %1217 : vector<8x128xf32>
    %cst_403 = arith.constant 9.99999996E-13 : f32
    %1219 = vector.broadcast %cst_403 : f32 to vector<8x128xf32>
    %1220 = arith.addf %1218, %1219 : vector<8x128xf32>
    %1221 = math.rsqrt %1220 : vector<8x128xf32>
    %1222 = arith.mulf %1212, %1221 : vector<8x128xf32>
    %1223 = arith.mulf %1215, %1221 : vector<8x128xf32>
    %c2_404 = arith.constant 2 : index
    %c0_405 = arith.constant 0 : index
    %c0_406 = arith.constant 0 : index
    %1224 = vector.load %arg7[%c2_404, %c0_405, %c0_406] : memref<14x8x128xf32, #tpu.memory_space<vmem>>, vector<1x8x128xf32>
    %1225 = vector.shape_cast %1224 : vector<1x8x128xf32> to vector<8x128xf32>
    %c3_407 = arith.constant 3 : index
    %c0_408 = arith.constant 0 : index
    %c0_409 = arith.constant 0 : index
    %1226 = vector.load %arg7[%c3_407, %c0_408, %c0_409] : memref<14x8x128xf32, #tpu.memory_space<vmem>>, vector<1x8x128xf32>
    %1227 = vector.shape_cast %1226 : vector<1x8x128xf32> to vector<8x128xf32>
    %1228 = arith.mulf %1225, %1222 : vector<8x128xf32>
    %1229 = arith.mulf %1225, %1223 : vector<8x128xf32>
    %1230 = arith.mulf %1227, %1223 : vector<8x128xf32>
    %c32_410 = arith.constant 32 : index
    %1231 = memref.load %arg2[%c32_410] : memref<128xf32, #tpu.memory_space<smem>>
    %1232 = vector.broadcast %1231 : f32 to vector<8x128xf32>
    %1233 = arith.mulf %1232, %1228 : vector<8x128xf32>
    %c36_411 = arith.constant 36 : index
    %1234 = memref.load %arg2[%c36_411] : memref<128xf32, #tpu.memory_space<smem>>
    %1235 = vector.broadcast %1234 : f32 to vector<8x128xf32>
    %1236 = arith.mulf %1235, %1229 : vector<8x128xf32>
    %1237 = arith.addf %1233, %1236 : vector<8x128xf32>
    %c44_412 = arith.constant 44 : index
    %1238 = memref.load %arg2[%c44_412] : memref<128xf32, #tpu.memory_space<smem>>
    %1239 = vector.broadcast %1238 : f32 to vector<8x128xf32>
    %1240 = arith.mulf %1239, %1230 : vector<8x128xf32>
    %1241 = arith.addf %1237, %1240 : vector<8x128xf32>
    %c33_413 = arith.constant 33 : index
    %1242 = memref.load %arg2[%c33_413] : memref<128xf32, #tpu.memory_space<smem>>
    %1243 = vector.broadcast %1242 : f32 to vector<8x128xf32>
    %1244 = arith.mulf %1243, %1228 : vector<8x128xf32>
    %c37_414 = arith.constant 37 : index
    %1245 = memref.load %arg2[%c37_414] : memref<128xf32, #tpu.memory_space<smem>>
    %1246 = vector.broadcast %1245 : f32 to vector<8x128xf32>
    %1247 = arith.mulf %1246, %1229 : vector<8x128xf32>
    %1248 = arith.addf %1244, %1247 : vector<8x128xf32>
    %c45_415 = arith.constant 45 : index
    %1249 = memref.load %arg2[%c45_415] : memref<128xf32, #tpu.memory_space<smem>>
    %1250 = vector.broadcast %1249 : f32 to vector<8x128xf32>
    %1251 = arith.mulf %1250, %1230 : vector<8x128xf32>
    %1252 = arith.addf %1248, %1251 : vector<8x128xf32>
    %c34 = arith.constant 34 : index
    %1253 = memref.load %arg2[%c34] : memref<128xf32, #tpu.memory_space<smem>>
    %1254 = vector.broadcast %1253 : f32 to vector<8x128xf32>
    %1255 = arith.mulf %1254, %1228 : vector<8x128xf32>
    %c38 = arith.constant 38 : index
    %1256 = memref.load %arg2[%c38] : memref<128xf32, #tpu.memory_space<smem>>
    %1257 = vector.broadcast %1256 : f32 to vector<8x128xf32>
    %1258 = arith.mulf %1257, %1229 : vector<8x128xf32>
    %1259 = arith.addf %1255, %1258 : vector<8x128xf32>
    %c46 = arith.constant 46 : index
    %1260 = memref.load %arg2[%c46] : memref<128xf32, #tpu.memory_space<smem>>
    %1261 = vector.broadcast %1260 : f32 to vector<8x128xf32>
    %1262 = arith.mulf %1261, %1230 : vector<8x128xf32>
    %1263 = arith.addf %1259, %1262 : vector<8x128xf32>
    %c35_416 = arith.constant 35 : index
    %1264 = memref.load %arg2[%c35_416] : memref<128xf32, #tpu.memory_space<smem>>
    %1265 = vector.broadcast %1264 : f32 to vector<8x128xf32>
    %1266 = arith.mulf %1265, %1228 : vector<8x128xf32>
    %c39_417 = arith.constant 39 : index
    %1267 = memref.load %arg2[%c39_417] : memref<128xf32, #tpu.memory_space<smem>>
    %1268 = vector.broadcast %1267 : f32 to vector<8x128xf32>
    %1269 = arith.mulf %1268, %1229 : vector<8x128xf32>
    %1270 = arith.addf %1266, %1269 : vector<8x128xf32>
    %c47_418 = arith.constant 47 : index
    %1271 = memref.load %arg2[%c47_418] : memref<128xf32, #tpu.memory_space<smem>>
    %1272 = vector.broadcast %1271 : f32 to vector<8x128xf32>
    %1273 = arith.mulf %1272, %1230 : vector<8x128xf32>
    %1274 = arith.addf %1270, %1273 : vector<8x128xf32>
    %1275 = arith.mulf %1241, %1241 : vector<8x128xf32>
    %1276 = arith.mulf %1252, %1252 : vector<8x128xf32>
    %1277 = arith.addf %1275, %1276 : vector<8x128xf32>
    %1278 = arith.mulf %1263, %1263 : vector<8x128xf32>
    %1279 = arith.addf %1277, %1278 : vector<8x128xf32>
    %1280 = arith.mulf %1274, %1274 : vector<8x128xf32>
    %1281 = arith.addf %1279, %1280 : vector<8x128xf32>
    %cst_419 = arith.constant 9.99999996E-13 : f32
    %1282 = vector.broadcast %cst_419 : f32 to vector<8x128xf32>
    %1283 = arith.addf %1281, %1282 : vector<8x128xf32>
    %1284 = math.rsqrt %1283 : vector<8x128xf32>
    %1285 = vector.broadcast %0 : f32 to vector<8x128xf32>
    %1286 = arith.mulf %1285, %1284 : vector<8x128xf32>
    %1287 = arith.cmpf oeq, %1281, %1281 : vector<8x128xf32>
    %c4_420 = arith.constant 4 : index
    %1288 = arith.index_cast %2 : i32 to index
    %c0_421 = arith.constant 0 : index
    %1289 = vector.load %arg4[%c4_420, %1288, %c0_421] : memref<16x8x128xf32, #tpu.memory_space<vmem>>, vector<1x8x128xf32>
    %1290 = vector.shape_cast %1289 : vector<1x8x128xf32> to vector<8x128xf32>
    %1291 = arith.mulf %1241, %1290 : vector<8x128xf32>
    %c5_422 = arith.constant 5 : index
    %1292 = arith.index_cast %2 : i32 to index
    %c0_423 = arith.constant 0 : index
    %1293 = vector.load %arg4[%c5_422, %1292, %c0_423] : memref<16x8x128xf32, #tpu.memory_space<vmem>>, vector<1x8x128xf32>
    %1294 = vector.shape_cast %1293 : vector<1x8x128xf32> to vector<8x128xf32>
    %1295 = arith.mulf %1252, %1294 : vector<8x128xf32>
    %1296 = arith.addf %1291, %1295 : vector<8x128xf32>
    %1297 = arith.mulf %1296, %1286 : vector<8x128xf32>
    %cst_424 = arith.constant 0.000000e+00 : f32
    %1298 = vector.broadcast %cst_424 : f32 to vector<8x128xf32>
    %1299 = arith.select %1287, %1297, %1298 : vector<8x128xi1>, vector<8x128xf32>
    %cst_425 = arith.constant 0.000000e+00 : f32
    %1300 = vector.broadcast %cst_425 : f32 to vector<8x128xf32>
    %1301 = arith.cmpf oge, %1299, %1300 : vector<8x128xf32>
    %cst_426 = arith.constant 9.99999974E-6 : f32
    %1302 = vector.broadcast %cst_426 : f32 to vector<8x128xf32>
    %1303 = arith.mulf %1302, %1299 : vector<8x128xf32>
    %1304 = arith.select %1301, %1299, %1303 : vector<8x128xi1>, vector<8x128xf32>
    %1305 = math.absf %1304 : vector<8x128xf32>
    %c4_427 = arith.constant 4 : index
    %1306 = arith.index_cast %2 : i32 to index
    %c0_428 = arith.constant 0 : index
    %1307 = vector.load %arg4[%c4_427, %1306, %c0_428] : memref<16x8x128xf32, #tpu.memory_space<vmem>>, vector<1x8x128xf32>
    %1308 = vector.shape_cast %1307 : vector<1x8x128xf32> to vector<8x128xf32>
    %1309 = arith.mulf %1263, %1308 : vector<8x128xf32>
    %c5_429 = arith.constant 5 : index
    %1310 = arith.index_cast %2 : i32 to index
    %c0_430 = arith.constant 0 : index
    %1311 = vector.load %arg4[%c5_429, %1310, %c0_430] : memref<16x8x128xf32, #tpu.memory_space<vmem>>, vector<1x8x128xf32>
    %1312 = vector.shape_cast %1311 : vector<1x8x128xf32> to vector<8x128xf32>
    %1313 = arith.mulf %1274, %1312 : vector<8x128xf32>
    %1314 = arith.addf %1309, %1313 : vector<8x128xf32>
    %1315 = arith.mulf %1314, %1286 : vector<8x128xf32>
    %cst_431 = arith.constant 0.000000e+00 : f32
    %1316 = vector.broadcast %cst_431 : f32 to vector<8x128xf32>
    %1317 = arith.select %1287, %1315, %1316 : vector<8x128xi1>, vector<8x128xf32>
    %cst_432 = arith.constant 0.000000e+00 : f32
    %1318 = vector.broadcast %cst_432 : f32 to vector<8x128xf32>
    %1319 = arith.cmpf oge, %1317, %1318 : vector<8x128xf32>
    %cst_433 = arith.constant 9.99999974E-6 : f32
    %1320 = vector.broadcast %cst_433 : f32 to vector<8x128xf32>
    %1321 = arith.mulf %1320, %1317 : vector<8x128xf32>
    %1322 = arith.select %1319, %1317, %1321 : vector<8x128xi1>, vector<8x128xf32>
    %1323 = math.absf %1322 : vector<8x128xf32>
    %1324 = arith.addf %1305, %1323 : vector<8x128xf32>
    %1325 = tpu.reciprocal %1324 : vector<8x128xf32> -> vector<8x128xf32>
    %1326 = arith.mulf %1305, %1325 : vector<8x128xf32>
    %c4_434 = arith.constant 4 : index
    %1327 = arith.index_cast %2 : i32 to index
    %c0_435 = arith.constant 0 : index
    %1328 = vector.load %arg5[%c4_434, %1327, %c0_435] : memref<16x8x128xf32, #tpu.memory_space<vmem>>, vector<1x8x128xf32>
    %1329 = vector.shape_cast %1328 : vector<1x8x128xf32> to vector<8x128xf32>
    %1330 = vector.shape_cast %1326 : vector<8x128xf32> to vector<1x8x128xf32>
    tpu.vector_store %arg5[%c4_434, %1327, %c0_435], %1330 {strides = array<i32>} : memref<16x8x128xf32, #tpu.memory_space<vmem>>, vector<1x8x128xf32>,
    %1331 = arith.mulf %1323, %1325 : vector<8x128xf32>
    %c5_436 = arith.constant 5 : index
    %1332 = arith.index_cast %2 : i32 to index
    %c0_437 = arith.constant 0 : index
    %1333 = vector.load %arg5[%c5_436, %1332, %c0_437] : memref<16x8x128xf32, #tpu.memory_space<vmem>>, vector<1x8x128xf32>
    %1334 = vector.shape_cast %1333 : vector<1x8x128xf32> to vector<8x128xf32>
    %1335 = vector.shape_cast %1331 : vector<8x128xf32> to vector<1x8x128xf32>
    tpu.vector_store %arg5[%c5_436, %1332, %c0_437], %1335 {strides = array<i32>} : memref<16x8x128xf32, #tpu.memory_space<vmem>>, vector<1x8x128xf32>,
    %c8_438 = arith.constant 8 : index
    %c0_439 = arith.constant 0 : index
    %c0_440 = arith.constant 0 : index
    %1336 = vector.load %arg6[%c8_438, %c0_439, %c0_440] : memref<32x8x128xf32, #tpu.memory_space<vmem>>, vector<1x8x128xf32>
    %1337 = vector.shape_cast %1336 : vector<1x8x128xf32> to vector<8x128xf32>
    %1338 = arith.mulf %1337, %1212 : vector<8x128xf32>
    %c9_441 = arith.constant 9 : index
    %c0_442 = arith.constant 0 : index
    %c0_443 = arith.constant 0 : index
    %1339 = vector.load %arg6[%c9_441, %c0_442, %c0_443] : memref<32x8x128xf32, #tpu.memory_space<vmem>>, vector<1x8x128xf32>
    %1340 = vector.shape_cast %1339 : vector<1x8x128xf32> to vector<8x128xf32>
    %1341 = arith.mulf %1340, %1215 : vector<8x128xf32>
    %1342 = arith.addf %1338, %1341 : vector<8x128xf32>
    %c11_444 = arith.constant 11 : index
    %c0_445 = arith.constant 0 : index
    %c0_446 = arith.constant 0 : index
    %1343 = vector.load %arg6[%c11_444, %c0_445, %c0_446] : memref<32x8x128xf32, #tpu.memory_space<vmem>>, vector<1x8x128xf32>
    %1344 = vector.shape_cast %1343 : vector<1x8x128xf32> to vector<8x128xf32>
    %1345 = arith.mulf %1344, %1215 : vector<8x128xf32>
    %1346 = arith.mulf %1342, %1342 : vector<8x128xf32>
    %1347 = arith.mulf %1345, %1345 : vector<8x128xf32>
    %1348 = arith.addf %1346, %1347 : vector<8x128xf32>
    %cst_447 = arith.constant 9.99999996E-13 : f32
    %1349 = vector.broadcast %cst_447 : f32 to vector<8x128xf32>
    %1350 = arith.addf %1348, %1349 : vector<8x128xf32>
    %1351 = math.rsqrt %1350 : vector<8x128xf32>
    %1352 = arith.mulf %1342, %1351 : vector<8x128xf32>
    %1353 = arith.mulf %1345, %1351 : vector<8x128xf32>
    %c0_448 = arith.constant 0 : index
    %c0_449 = arith.constant 0 : index
    %c0_450 = arith.constant 0 : index
    %1354 = vector.load %arg7[%c0_448, %c0_449, %c0_450] : memref<14x8x128xf32, #tpu.memory_space<vmem>>, vector<1x8x128xf32>
    %1355 = vector.shape_cast %1354 : vector<1x8x128xf32> to vector<8x128xf32>
    %c1_451 = arith.constant 1 : index
    %c0_452 = arith.constant 0 : index
    %c0_453 = arith.constant 0 : index
    %1356 = vector.load %arg7[%c1_451, %c0_452, %c0_453] : memref<14x8x128xf32, #tpu.memory_space<vmem>>, vector<1x8x128xf32>
    %1357 = vector.shape_cast %1356 : vector<1x8x128xf32> to vector<8x128xf32>
    %1358 = arith.mulf %1355, %1352 : vector<8x128xf32>
    %1359 = arith.mulf %1355, %1353 : vector<8x128xf32>
    %1360 = arith.mulf %1357, %1353 : vector<8x128xf32>
    %c16_454 = arith.constant 16 : index
    %1361 = memref.load %arg2[%c16_454] : memref<128xf32, #tpu.memory_space<smem>>
    %1362 = vector.broadcast %1361 : f32 to vector<8x128xf32>
    %1363 = arith.mulf %1362, %1358 : vector<8x128xf32>
    %c20_455 = arith.constant 20 : index
    %1364 = memref.load %arg2[%c20_455] : memref<128xf32, #tpu.memory_space<smem>>
    %1365 = vector.broadcast %1364 : f32 to vector<8x128xf32>
    %1366 = arith.mulf %1365, %1359 : vector<8x128xf32>
    %1367 = arith.addf %1363, %1366 : vector<8x128xf32>
    %c28_456 = arith.constant 28 : index
    %1368 = memref.load %arg2[%c28_456] : memref<128xf32, #tpu.memory_space<smem>>
    %1369 = vector.broadcast %1368 : f32 to vector<8x128xf32>
    %1370 = arith.mulf %1369, %1360 : vector<8x128xf32>
    %1371 = arith.addf %1367, %1370 : vector<8x128xf32>
    %c17_457 = arith.constant 17 : index
    %1372 = memref.load %arg2[%c17_457] : memref<128xf32, #tpu.memory_space<smem>>
    %1373 = vector.broadcast %1372 : f32 to vector<8x128xf32>
    %1374 = arith.mulf %1373, %1358 : vector<8x128xf32>
    %c21_458 = arith.constant 21 : index
    %1375 = memref.load %arg2[%c21_458] : memref<128xf32, #tpu.memory_space<smem>>
    %1376 = vector.broadcast %1375 : f32 to vector<8x128xf32>
    %1377 = arith.mulf %1376, %1359 : vector<8x128xf32>
    %1378 = arith.addf %1374, %1377 : vector<8x128xf32>
    %c29_459 = arith.constant 29 : index
    %1379 = memref.load %arg2[%c29_459] : memref<128xf32, #tpu.memory_space<smem>>
    %1380 = vector.broadcast %1379 : f32 to vector<8x128xf32>
    %1381 = arith.mulf %1380, %1360 : vector<8x128xf32>
    %1382 = arith.addf %1378, %1381 : vector<8x128xf32>
    %c18 = arith.constant 18 : index
    %1383 = memref.load %arg2[%c18] : memref<128xf32, #tpu.memory_space<smem>>
    %1384 = vector.broadcast %1383 : f32 to vector<8x128xf32>
    %1385 = arith.mulf %1384, %1358 : vector<8x128xf32>
    %c22 = arith.constant 22 : index
    %1386 = memref.load %arg2[%c22] : memref<128xf32, #tpu.memory_space<smem>>
    %1387 = vector.broadcast %1386 : f32 to vector<8x128xf32>
    %1388 = arith.mulf %1387, %1359 : vector<8x128xf32>
    %1389 = arith.addf %1385, %1388 : vector<8x128xf32>
    %c30 = arith.constant 30 : index
    %1390 = memref.load %arg2[%c30] : memref<128xf32, #tpu.memory_space<smem>>
    %1391 = vector.broadcast %1390 : f32 to vector<8x128xf32>
    %1392 = arith.mulf %1391, %1360 : vector<8x128xf32>
    %1393 = arith.addf %1389, %1392 : vector<8x128xf32>
    %c19_460 = arith.constant 19 : index
    %1394 = memref.load %arg2[%c19_460] : memref<128xf32, #tpu.memory_space<smem>>
    %1395 = vector.broadcast %1394 : f32 to vector<8x128xf32>
    %1396 = arith.mulf %1395, %1358 : vector<8x128xf32>
    %c23_461 = arith.constant 23 : index
    %1397 = memref.load %arg2[%c23_461] : memref<128xf32, #tpu.memory_space<smem>>
    %1398 = vector.broadcast %1397 : f32 to vector<8x128xf32>
    %1399 = arith.mulf %1398, %1359 : vector<8x128xf32>
    %1400 = arith.addf %1396, %1399 : vector<8x128xf32>
    %c31_462 = arith.constant 31 : index
    %1401 = memref.load %arg2[%c31_462] : memref<128xf32, #tpu.memory_space<smem>>
    %1402 = vector.broadcast %1401 : f32 to vector<8x128xf32>
    %1403 = arith.mulf %1402, %1360 : vector<8x128xf32>
    %1404 = arith.addf %1400, %1403 : vector<8x128xf32>
    %1405 = arith.mulf %1371, %1371 : vector<8x128xf32>
    %1406 = arith.mulf %1382, %1382 : vector<8x128xf32>
    %1407 = arith.addf %1405, %1406 : vector<8x128xf32>
    %1408 = arith.mulf %1393, %1393 : vector<8x128xf32>
    %1409 = arith.addf %1407, %1408 : vector<8x128xf32>
    %1410 = arith.mulf %1404, %1404 : vector<8x128xf32>
    %1411 = arith.addf %1409, %1410 : vector<8x128xf32>
    %cst_463 = arith.constant 9.99999996E-13 : f32
    %1412 = vector.broadcast %cst_463 : f32 to vector<8x128xf32>
    %1413 = arith.addf %1411, %1412 : vector<8x128xf32>
    %1414 = math.rsqrt %1413 : vector<8x128xf32>
    %1415 = vector.broadcast %0 : f32 to vector<8x128xf32>
    %1416 = arith.mulf %1415, %1414 : vector<8x128xf32>
    %1417 = arith.cmpf oeq, %1411, %1411 : vector<8x128xf32>
    %c2_464 = arith.constant 2 : index
    %1418 = arith.index_cast %2 : i32 to index
    %c0_465 = arith.constant 0 : index
    %1419 = vector.load %arg4[%c2_464, %1418, %c0_465] : memref<16x8x128xf32, #tpu.memory_space<vmem>>, vector<1x8x128xf32>
    %1420 = vector.shape_cast %1419 : vector<1x8x128xf32> to vector<8x128xf32>
    %1421 = arith.mulf %1371, %1420 : vector<8x128xf32>
    %c3_466 = arith.constant 3 : index
    %1422 = arith.index_cast %2 : i32 to index
    %c0_467 = arith.constant 0 : index
    %1423 = vector.load %arg4[%c3_466, %1422, %c0_467] : memref<16x8x128xf32, #tpu.memory_space<vmem>>, vector<1x8x128xf32>
    %1424 = vector.shape_cast %1423 : vector<1x8x128xf32> to vector<8x128xf32>
    %1425 = arith.mulf %1382, %1424 : vector<8x128xf32>
    %1426 = arith.addf %1421, %1425 : vector<8x128xf32>
    %1427 = arith.mulf %1426, %1416 : vector<8x128xf32>
    %cst_468 = arith.constant 0.000000e+00 : f32
    %1428 = vector.broadcast %cst_468 : f32 to vector<8x128xf32>
    %1429 = arith.select %1417, %1427, %1428 : vector<8x128xi1>, vector<8x128xf32>
    %cst_469 = arith.constant 0.000000e+00 : f32
    %1430 = vector.broadcast %cst_469 : f32 to vector<8x128xf32>
    %1431 = arith.cmpf oge, %1429, %1430 : vector<8x128xf32>
    %cst_470 = arith.constant 9.99999974E-6 : f32
    %1432 = vector.broadcast %cst_470 : f32 to vector<8x128xf32>
    %1433 = arith.mulf %1432, %1429 : vector<8x128xf32>
    %1434 = arith.select %1431, %1429, %1433 : vector<8x128xi1>, vector<8x128xf32>
    %1435 = math.absf %1434 : vector<8x128xf32>
    %c2_471 = arith.constant 2 : index
    %1436 = arith.index_cast %2 : i32 to index
    %c0_472 = arith.constant 0 : index
    %1437 = vector.load %arg4[%c2_471, %1436, %c0_472] : memref<16x8x128xf32, #tpu.memory_space<vmem>>, vector<1x8x128xf32>
    %1438 = vector.shape_cast %1437 : vector<1x8x128xf32> to vector<8x128xf32>
    %1439 = arith.mulf %1393, %1438 : vector<8x128xf32>
    %c3_473 = arith.constant 3 : index
    %1440 = arith.index_cast %2 : i32 to index
    %c0_474 = arith.constant 0 : index
    %1441 = vector.load %arg4[%c3_473, %1440, %c0_474] : memref<16x8x128xf32, #tpu.memory_space<vmem>>, vector<1x8x128xf32>
    %1442 = vector.shape_cast %1441 : vector<1x8x128xf32> to vector<8x128xf32>
    %1443 = arith.mulf %1404, %1442 : vector<8x128xf32>
    %1444 = arith.addf %1439, %1443 : vector<8x128xf32>
    %1445 = arith.mulf %1444, %1416 : vector<8x128xf32>
    %cst_475 = arith.constant 0.000000e+00 : f32
    %1446 = vector.broadcast %cst_475 : f32 to vector<8x128xf32>
    %1447 = arith.select %1417, %1445, %1446 : vector<8x128xi1>, vector<8x128xf32>
    %cst_476 = arith.constant 0.000000e+00 : f32
    %1448 = vector.broadcast %cst_476 : f32 to vector<8x128xf32>
    %1449 = arith.cmpf oge, %1447, %1448 : vector<8x128xf32>
    %cst_477 = arith.constant 9.99999974E-6 : f32
    %1450 = vector.broadcast %cst_477 : f32 to vector<8x128xf32>
    %1451 = arith.mulf %1450, %1447 : vector<8x128xf32>
    %1452 = arith.select %1449, %1447, %1451 : vector<8x128xi1>, vector<8x128xf32>
    %1453 = math.absf %1452 : vector<8x128xf32>
    %1454 = arith.addf %1435, %1453 : vector<8x128xf32>
    %1455 = tpu.reciprocal %1454 : vector<8x128xf32> -> vector<8x128xf32>
    %1456 = arith.mulf %1435, %1455 : vector<8x128xf32>
    %c2_478 = arith.constant 2 : index
    %1457 = arith.index_cast %2 : i32 to index
    %c0_479 = arith.constant 0 : index
    %1458 = vector.load %arg5[%c2_478, %1457, %c0_479] : memref<16x8x128xf32, #tpu.memory_space<vmem>>, vector<1x8x128xf32>
    %1459 = vector.shape_cast %1458 : vector<1x8x128xf32> to vector<8x128xf32>
    %1460 = vector.shape_cast %1456 : vector<8x128xf32> to vector<1x8x128xf32>
    tpu.vector_store %arg5[%c2_478, %1457, %c0_479], %1460 {strides = array<i32>} : memref<16x8x128xf32, #tpu.memory_space<vmem>>, vector<1x8x128xf32>,
    %1461 = arith.mulf %1453, %1455 : vector<8x128xf32>
    %c3_480 = arith.constant 3 : index
    %1462 = arith.index_cast %2 : i32 to index
    %c0_481 = arith.constant 0 : index
    %1463 = vector.load %arg5[%c3_480, %1462, %c0_481] : memref<16x8x128xf32, #tpu.memory_space<vmem>>, vector<1x8x128xf32>
    %1464 = vector.shape_cast %1463 : vector<1x8x128xf32> to vector<8x128xf32>
    %1465 = vector.shape_cast %1461 : vector<8x128xf32> to vector<1x8x128xf32>
    tpu.vector_store %arg5[%c3_480, %1462, %c0_481], %1465 {strides = array<i32>} : memref<16x8x128xf32, #tpu.memory_space<vmem>>, vector<1x8x128xf32>,
    %c4_482 = arith.constant 4 : index
    %c0_483 = arith.constant 0 : index
    %c0_484 = arith.constant 0 : index
    %1466 = vector.load %arg6[%c4_482, %c0_483, %c0_484] : memref<32x8x128xf32, #tpu.memory_space<vmem>>, vector<1x8x128xf32>
    %1467 = vector.shape_cast %1466 : vector<1x8x128xf32> to vector<8x128xf32>
    %1468 = arith.mulf %1467, %1342 : vector<8x128xf32>
    %c5_485 = arith.constant 5 : index
    %c0_486 = arith.constant 0 : index
    %c0_487 = arith.constant 0 : index
    %1469 = vector.load %arg6[%c5_485, %c0_486, %c0_487] : memref<32x8x128xf32, #tpu.memory_space<vmem>>, vector<1x8x128xf32>
    %1470 = vector.shape_cast %1469 : vector<1x8x128xf32> to vector<8x128xf32>
    %1471 = arith.mulf %1470, %1345 : vector<8x128xf32>
    %1472 = arith.addf %1468, %1471 : vector<8x128xf32>
    %c7_488 = arith.constant 7 : index
    %c0_489 = arith.constant 0 : index
    %c0_490 = arith.constant 0 : index
    %1473 = vector.load %arg6[%c7_488, %c0_489, %c0_490] : memref<32x8x128xf32, #tpu.memory_space<vmem>>, vector<1x8x128xf32>
    %1474 = vector.shape_cast %1473 : vector<1x8x128xf32> to vector<8x128xf32>
    %1475 = arith.mulf %1474, %1345 : vector<8x128xf32>
    %1476 = arith.mulf %1472, %1472 : vector<8x128xf32>
    %1477 = arith.mulf %1475, %1475 : vector<8x128xf32>
    %1478 = arith.addf %1476, %1477 : vector<8x128xf32>
    %cst_491 = arith.constant 9.99999996E-13 : f32
    %1479 = vector.broadcast %cst_491 : f32 to vector<8x128xf32>
    %1480 = arith.addf %1478, %1479 : vector<8x128xf32>
    %1481 = math.rsqrt %1480 : vector<8x128xf32>
    %1482 = arith.mulf %1472, %1481 : vector<8x128xf32>
    %1483 = arith.mulf %1475, %1481 : vector<8x128xf32>
    %c0_492 = arith.constant 0 : index
    %1484 = memref.load %arg2[%c0_492] : memref<128xf32, #tpu.memory_space<smem>>
    %1485 = vector.broadcast %1484 : f32 to vector<8x128xf32>
    %1486 = arith.mulf %1485, %1482 : vector<8x128xf32>
    %c4_493 = arith.constant 4 : index
    %1487 = memref.load %arg2[%c4_493] : memref<128xf32, #tpu.memory_space<smem>>
    %1488 = vector.broadcast %1487 : f32 to vector<8x128xf32>
    %1489 = arith.mulf %1488, %1483 : vector<8x128xf32>
    %1490 = arith.addf %1486, %1489 : vector<8x128xf32>
    %c1_494 = arith.constant 1 : index
    %1491 = memref.load %arg2[%c1_494] : memref<128xf32, #tpu.memory_space<smem>>
    %1492 = vector.broadcast %1491 : f32 to vector<8x128xf32>
    %1493 = arith.mulf %1492, %1482 : vector<8x128xf32>
    %c5_495 = arith.constant 5 : index
    %1494 = memref.load %arg2[%c5_495] : memref<128xf32, #tpu.memory_space<smem>>
    %1495 = vector.broadcast %1494 : f32 to vector<8x128xf32>
    %1496 = arith.mulf %1495, %1483 : vector<8x128xf32>
    %1497 = arith.addf %1493, %1496 : vector<8x128xf32>
    %c2_496 = arith.constant 2 : index
    %1498 = memref.load %arg2[%c2_496] : memref<128xf32, #tpu.memory_space<smem>>
    %1499 = vector.broadcast %1498 : f32 to vector<8x128xf32>
    %1500 = arith.mulf %1499, %1482 : vector<8x128xf32>
    %c6_497 = arith.constant 6 : index
    %1501 = memref.load %arg2[%c6_497] : memref<128xf32, #tpu.memory_space<smem>>
    %1502 = vector.broadcast %1501 : f32 to vector<8x128xf32>
    %1503 = arith.mulf %1502, %1483 : vector<8x128xf32>
    %1504 = arith.addf %1500, %1503 : vector<8x128xf32>
    %c3_498 = arith.constant 3 : index
    %1505 = memref.load %arg2[%c3_498] : memref<128xf32, #tpu.memory_space<smem>>
    %1506 = vector.broadcast %1505 : f32 to vector<8x128xf32>
    %1507 = arith.mulf %1506, %1482 : vector<8x128xf32>
    %c7_499 = arith.constant 7 : index
    %1508 = memref.load %arg2[%c7_499] : memref<128xf32, #tpu.memory_space<smem>>
    %1509 = vector.broadcast %1508 : f32 to vector<8x128xf32>
    %1510 = arith.mulf %1509, %1483 : vector<8x128xf32>
    %1511 = arith.addf %1507, %1510 : vector<8x128xf32>
    %1512 = arith.mulf %1490, %1490 : vector<8x128xf32>
    %1513 = arith.mulf %1497, %1497 : vector<8x128xf32>
    %1514 = arith.addf %1512, %1513 : vector<8x128xf32>
    %1515 = arith.mulf %1504, %1504 : vector<8x128xf32>
    %1516 = arith.addf %1514, %1515 : vector<8x128xf32>
    %1517 = arith.mulf %1511, %1511 : vector<8x128xf32>
    %1518 = arith.addf %1516, %1517 : vector<8x128xf32>
    %cst_500 = arith.constant 9.99999996E-13 : f32
    %1519 = vector.broadcast %cst_500 : f32 to vector<8x128xf32>
    %1520 = arith.addf %1518, %1519 : vector<8x128xf32>
    %1521 = math.rsqrt %1520 : vector<8x128xf32>
    %1522 = vector.broadcast %0 : f32 to vector<8x128xf32>
    %1523 = arith.mulf %1522, %1521 : vector<8x128xf32>
    %1524 = arith.cmpf oeq, %1518, %1518 : vector<8x128xf32>
    %c0_501 = arith.constant 0 : index
    %1525 = arith.index_cast %2 : i32 to index
    %c0_502 = arith.constant 0 : index
    %1526 = vector.load %arg4[%c0_501, %1525, %c0_502] : memref<16x8x128xf32, #tpu.memory_space<vmem>>, vector<1x8x128xf32>
    %1527 = vector.shape_cast %1526 : vector<1x8x128xf32> to vector<8x128xf32>
    %1528 = arith.mulf %1490, %1527 : vector<8x128xf32>
    %c1_503 = arith.constant 1 : index
    %1529 = arith.index_cast %2 : i32 to index
    %c0_504 = arith.constant 0 : index
    %1530 = vector.load %arg4[%c1_503, %1529, %c0_504] : memref<16x8x128xf32, #tpu.memory_space<vmem>>, vector<1x8x128xf32>
    %1531 = vector.shape_cast %1530 : vector<1x8x128xf32> to vector<8x128xf32>
    %1532 = arith.mulf %1497, %1531 : vector<8x128xf32>
    %1533 = arith.addf %1528, %1532 : vector<8x128xf32>
    %1534 = arith.mulf %1533, %1523 : vector<8x128xf32>
    %cst_505 = arith.constant 0.000000e+00 : f32
    %1535 = vector.broadcast %cst_505 : f32 to vector<8x128xf32>
    %1536 = arith.select %1524, %1534, %1535 : vector<8x128xi1>, vector<8x128xf32>
    %cst_506 = arith.constant 0.000000e+00 : f32
    %1537 = vector.broadcast %cst_506 : f32 to vector<8x128xf32>
    %1538 = arith.cmpf oge, %1536, %1537 : vector<8x128xf32>
    %cst_507 = arith.constant 9.99999974E-6 : f32
    %1539 = vector.broadcast %cst_507 : f32 to vector<8x128xf32>
    %1540 = arith.mulf %1539, %1536 : vector<8x128xf32>
    %1541 = arith.select %1538, %1536, %1540 : vector<8x128xi1>, vector<8x128xf32>
    %1542 = math.absf %1541 : vector<8x128xf32>
    %c0_508 = arith.constant 0 : index
    %1543 = arith.index_cast %2 : i32 to index
    %c0_509 = arith.constant 0 : index
    %1544 = vector.load %arg4[%c0_508, %1543, %c0_509] : memref<16x8x128xf32, #tpu.memory_space<vmem>>, vector<1x8x128xf32>
    %1545 = vector.shape_cast %1544 : vector<1x8x128xf32> to vector<8x128xf32>
    %1546 = arith.mulf %1504, %1545 : vector<8x128xf32>
    %c1_510 = arith.constant 1 : index
    %1547 = arith.index_cast %2 : i32 to index
    %c0_511 = arith.constant 0 : index
    %1548 = vector.load %arg4[%c1_510, %1547, %c0_511] : memref<16x8x128xf32, #tpu.memory_space<vmem>>, vector<1x8x128xf32>
    %1549 = vector.shape_cast %1548 : vector<1x8x128xf32> to vector<8x128xf32>
    %1550 = arith.mulf %1511, %1549 : vector<8x128xf32>
    %1551 = arith.addf %1546, %1550 : vector<8x128xf32>
    %1552 = arith.mulf %1551, %1523 : vector<8x128xf32>
    %cst_512 = arith.constant 0.000000e+00 : f32
    %1553 = vector.broadcast %cst_512 : f32 to vector<8x128xf32>
    %1554 = arith.select %1524, %1552, %1553 : vector<8x128xi1>, vector<8x128xf32>
    %cst_513 = arith.constant 0.000000e+00 : f32
    %1555 = vector.broadcast %cst_513 : f32 to vector<8x128xf32>
    %1556 = arith.cmpf oge, %1554, %1555 : vector<8x128xf32>
    %cst_514 = arith.constant 9.99999974E-6 : f32
    %1557 = vector.broadcast %cst_514 : f32 to vector<8x128xf32>
    %1558 = arith.mulf %1557, %1554 : vector<8x128xf32>
    %1559 = arith.select %1556, %1554, %1558 : vector<8x128xi1>, vector<8x128xf32>
    %1560 = math.absf %1559 : vector<8x128xf32>
    %1561 = arith.addf %1542, %1560 : vector<8x128xf32>
    %1562 = tpu.reciprocal %1561 : vector<8x128xf32> -> vector<8x128xf32>
    %1563 = arith.mulf %1542, %1562 : vector<8x128xf32>
    %c0_515 = arith.constant 0 : index
    %1564 = arith.index_cast %2 : i32 to index
    %c0_516 = arith.constant 0 : index
    %1565 = vector.load %arg5[%c0_515, %1564, %c0_516] : memref<16x8x128xf32, #tpu.memory_space<vmem>>, vector<1x8x128xf32>
    %1566 = vector.shape_cast %1565 : vector<1x8x128xf32> to vector<8x128xf32>
    %1567 = vector.shape_cast %1563 : vector<8x128xf32> to vector<1x8x128xf32>
    tpu.vector_store %arg5[%c0_515, %1564, %c0_516], %1567 {strides = array<i32>} : memref<16x8x128xf32, #tpu.memory_space<vmem>>, vector<1x8x128xf32>,
    %1568 = arith.mulf %1560, %1562 : vector<8x128xf32>
    %c1_517 = arith.constant 1 : index
    %1569 = arith.index_cast %2 : i32 to index
    %c0_518 = arith.constant 0 : index
    %1570 = vector.load %arg5[%c1_517, %1569, %c0_518] : memref<16x8x128xf32, #tpu.memory_space<vmem>>, vector<1x8x128xf32>
    %1571 = vector.shape_cast %1570 : vector<1x8x128xf32> to vector<8x128xf32>
    %1572 = vector.shape_cast %1568 : vector<8x128xf32> to vector<1x8x128xf32>
    tpu.vector_store %arg5[%c1_517, %1569, %c0_518], %1572 {strides = array<i32>} : memref<16x8x128xf32, #tpu.memory_space<vmem>>, vector<1x8x128xf32>,
    %c1_i32 = arith.constant 1 : i32
    return
  }
  func.func @transform_0(%arg0: i32) -> i32 {
    %c0_i32 = arith.constant 0 : i32
    %c0_i32_0 = arith.constant 0 : i32
    return %c0_i32 : i32
  }
  func.func @transform_1(%arg0: i32) -> i32 {
    %c0_i32 = arith.constant 0 : i32
    %c0_i32_0 = arith.constant 0 : i32
    return %c0_i32 : i32
  }
  func.func @transform_2(%arg0: i32) -> i32 {
    %c0_i32 = arith.constant 0 : i32
    %c0_i32_0 = arith.constant 0 : i32
    return %c0_i32 : i32
  }
  func.func @transform_3(%arg0: i32) -> (i32, i32, i32) {
    %c0_i32 = arith.constant 0 : i32
    %c0_i32_0 = arith.constant 0 : i32
    %c0_i32_1 = arith.constant 0 : i32
    return %c0_i32, %arg0, %c0_i32_0 : i32, i32, i32
  }
  func.func @transform_4(%arg0: i32) -> (i32, i32, i32) {
    %c0_i32 = arith.constant 0 : i32
    %c0_i32_0 = arith.constant 0 : i32
    %c0_i32_1 = arith.constant 0 : i32
    return %c0_i32, %arg0, %c0_i32_0 : i32, i32, i32
  }
}

</mosaic_0001>

<bundles_post_ra>
// kernel: tdvp_forward.1
= control target key start
LH: loop header
LB: loop body
LE: loop exit
PB: predicated region body
PF: predicated region fallthrough
CT: control target
= control target key end

     0   :  { %10 = vsyncpa [#allocation6], 0  ;;  %s3865_s0 = inlined_call_operand.<no memory space> [shape: f32[1], index: 0, kind: input, shape index: {}]   ;;  %s3866_s1 = inlined_call_operand.vmem [shape: f32[128], index: 1, kind: input, shape index: {}]   ;;  %s3867_s2 = inlined_call_operand.vmem [shape: f32[128], index: 2, kind: input, shape index: {}]   ;;  %s3868_s3 = inlined_call_operand.vmem [shape: f32[16,8,128], index: 3, kind: input, shape index: {}]   ;;  %s3869_s4 = inlined_call_operand.vmem [shape: f32[16,8,128], index: 4, kind: output, shape index: {}]  }
   0x1   :  { %s19_s17 = sshll.u32 %s3866_s1, 4  ;;  %s20_s17 = int_to_ptr.vmem [resolvable:$true] %s19_s17 }
   0x2   :  { %11 = vsyncpa [#allocation8], 0  ;;  %s28_s20 = sshll.u32 %s3867_s2, 4  ;;  %s2041_s21 = smov [#allocation5]   ;;  %s29_s20 = int_to_ptr.vmem [resolvable:$true] %s28_s20 }
   0x3   :  { %22 = dma.vmem_to_smem %s20_s17, 16, %s2041_s21, [#allocation6]  }
   0x4   :  { %s2042_s22 = smov [#allocation7]  }
   0x5   :  { %31 = dma.vmem_to_smem %s29_s20, 16, %s2042_s22, [#allocation8]  }
   0x6   :  { %2037 = dma.done.wait [#allocation6], 16  }
   0x7   :  { %2038 = vsyncadd [#allocation6], 4294967280 }
   0x8   :  { %2039 = dma.done.wait [#allocation8], 16  }
   0x9   :  { %2040 = vsyncadd [#allocation8], 4294967280 }
   0xa   :  { %42 = sfence }
   0xb   :  { %v2077_v0 = vld [vmem:[%s3868_s3] sm:$0xff]  ;;  %v2082_v1 = vld [vmem:[%s3868_s3 + $0x8] sm:$0xff]  ;;  %v2087_v2 = vld [vmem:[%s3868_s3 + $0x10] sm:$0xff]  ;;  %s2133_s13 = sld [smem:[#allocation7]] }
   0xc   :  { %v48_v3 = vmul.f32 %v2077_v0, %v2077_v0  ;;  %v50_v4 = vmul.f32 %v2082_v1, %v2082_v1  ;;  %v2096_v5 = vld [vmem:[%s3868_s3 + $0x18] sm:$0xff]  ;;  %v98_v6 = vmul.f32 %v2087_v2, %v2087_v2  ;;  %v2103_v7 = vld [vmem:[%s3868_s3 + $0x20] sm:$0xff]  ;;  %v2108_v8 = vld [vmem:[%s3868_s3 + $0x28] sm:$0xff]  ;;  %s2146_s16 = sld [smem:[#allocation7 + $0x1]] }
   0xd   :  { %v100_v9 = vmul.f32 %v2096_v5, %v2096_v5  ;;  %v162_v10 = vmul.f32 %v2103_v7, %v2103_v7  ;;  %v164_v11 = vmul.f32 %v2108_v8, %v2108_v8  ;;  %v2119_v12 = vld [vmem:[%s3868_s3 + $0x30] sm:$0xff]  ;;  %v2124_v13 = vld [vmem:[%s3868_s3 + $0x38] sm:$0xff]  ;;  %v2129_v14 = vld [vmem:[%s3868_s3 + $0x40] sm:$0xff]  ;;  %s2165_s21 = sld [smem:[#allocation7 + $0x3]] }
   0xe   :  { %v2131_v15 = vadd.f32 %v50_v4, %v48_v3  ;;  %v226_v16 = vmul.f32 %v2119_v12, %v2119_v12  ;;  %v228_v17 = vmul.f32 %v2124_v13, %v2124_v13  ;;  %v2142_v18 = vld [vmem:[%s3868_s3 + $0x48] sm:$0xff]  ;;  %v290_v19 = vmul.f32 %v2129_v14, %v2129_v14  ;;  %v2157_v23 = vld [vmem:[%s3868_s3 + $0x50] sm:$0xff]  ;;  %v2162_v24 = vld [vmem:[%s3868_s3 + $0x58] sm:$0xff]  ;;  %s2169_s22 = sld [smem:[#allocation7 + $0x4]] }
   0xf   :  { %v2148_v20 = vadd.f32 %v100_v9, %v98_v6  ;;  %v2150_v21 = vadd.f32 %v164_v11, %v162_v10  ;;  %v292_v22 = vmul.f32 %v2142_v18, %v2142_v18  ;;  %s2172_s23 = sld [smem:[#allocation7 + $0x5]]  ;;  %v354_v27 = vmul.f32 %v2157_v23, %v2157_v23  ;;  %v2196_v31 = vld [vmem:[%s3868_s3 + $0x60] sm:$0xff]  ;;  %v2201_v32 = vld [vmem:[%s3868_s3 + $0x68] sm:$0xff] }
  0x10   :  { %1935 = vrsqrt.f32 %v2131_v15  ;;  %v2167_v25 = vadd.f32 %v228_v17, %v226_v16  ;;  %v356_v28 = vmul.f32 %v2162_v24, %v2162_v24  ;;  %s2181_s24 = sld [smem:[#allocation7 + $0x7]]  ;;  %vm58_vm0 = vweird.f32 %v2131_v15 }
  0x11   :  { %1937 = vrsqrt.f32 %v2148_v20  ;;  %v2175_v26 = vadd.f32 %v292_v22, %v290_v19  ;;  %s2184_s1 = sld [smem:[#allocation7 + $0x10]]  ;;  %v418_v40 = vmul.f32 %v2196_v31, %v2196_v31  ;;  %v420_v41 = vmul.f32 %v2201_v32, %v2201_v32 }
  0x12   :  { %1939 = vrsqrt.f32 %v2150_v21  ;;  %s2187_s25 = sld [smem:[#allocation7 + $0x11]]  ;;  %v2191_v30 = vadd.f32 %v356_v28, %v354_v27  ;;  %v68_v43 = vstv %s2133_s13  ;;  %vm108_vm1 = vweird.f32 %v2148_v20 }
  0x13   :  { %1941 = vrsqrt.f32 %v2167_v25  ;;  %s2189_s2 = sld [smem:[#allocation7 + $0x13]]  ;;  %vm172_vm4 = vweird.f32 %v2150_v21  ;;  %v71_v51 = vstv %s2146_s16  ;;  %v2242_v53 = vadd.f32 %v420_v41, %v418_v40 }
  0x14   :  { %1943 = vrsqrt.f32 %v2175_v26  ;;  %s2204_s30 = sld [smem:[#allocation7 + $0x14]]  ;;  %v75_v55 = vstv %s2165_s21  ;;  %v80_v56 = vstv %s2169_s22  ;;  %vm236_vm9 = vweird.f32 %v2167_v25 }
  0x15   :  { %s2210_s5 = sld [smem:[#allocation7 + $0x15]]  ;;  %1945 = vrsqrt.f32 %v2191_v30  ;;  %v83_v57 = vstv %s2172_s23  ;;  %vm300_vm11 = vweird.f32 %v2175_v26  ;;  %vm364_vm15 = vweird.f32 %v2191_v30 }
  0x16   :  { %v1936_v29 = vpop.eup %1935  ;;  %s2214_s6 = sld [smem:[#allocation7 + $0x17]]  ;;  %v87_v3 = vstv %s2181_s24  ;;  %1947 = vrsqrt.f32 %v2242_v53 }
  0x17   :  { %v1938_v33 = vpop.eup %1937  ;;  %v53_v34 = vmul.f32 %v1936_v29, %v2131_v15  ;;  %s2226_s7 = sld [smem:[#allocation7 + $0x1c]]  ;;  %vm59_vm2 = vweird.f32 %v1936_v29  ;;  %v118_v6 = vstv %s2184_s1 }
  0x18   :  { %v2206_v35 = vpop.eup %1939  ;;  %v103_v36 = vmul.f32 %v1938_v33, %v2148_v20  ;;  %s2229_s8 = sld [smem:[#allocation7 + $0x1d]]  ;;  %vm109_vm3 = vweird.f32 %v1938_v33  ;;  %vm2246_vm5 = vmor %vm58_vm0, %vm59_vm2  ;;  %v121_v11 = vstv %s2187_s25  ;;  %vm428_vm2 = vweird.f32 %v2242_v53 }
  0x19   :  { %v2212_v37 = vpop.eup %1941  ;;  %v54_v38 = vmul.f32 %v1936_v29, %v53_v34  ;;  %v167_v39 = vmul.f32 %v2206_v35, %v2150_v21  ;;  %s2234_s9 = sld [smem:[#allocation7 + $0x1f]]  ;;  %vm2258_vm6 = vmor %vm108_vm1, %vm109_vm3  ;;  %vm173_vm7 = vweird.f32 %v2206_v35  ;;  %v125_v20 = vstv %s2189_s2 }
  0x1a   :  { %v2222_v42 = vpop.eup %1943  ;;  %v104_v44 = vmul.f32 %v1938_v33, %v103_v36  ;;  %v231_v47 = vmul.f32 %v2212_v37, %v2167_v25  ;;  %s2240_s10 = sld [smem:[#allocation7 + $0x20]]  ;;  %vm2289_vm8 = vmor %vm172_vm4, %vm173_vm7  ;;  %v131_v28 = vstv %s2204_s30  ;;  %vm237_vm10 = vweird.f32 %v2212_v37 }
  0x1b   :  { %v55_v45 = vmul.f32 0.5, %v54_v38  ;;  %v168_v46 = vmul.f32 %v2206_v35, %v167_v39  ;;  %v295_v49 = vmul.f32 %v2222_v42, %v2175_v26  ;;  %s2253_s11 = sld [smem:[#allocation7 + $0x21]]  ;;  %v2266_v63 = vpop.eup %1945  ;;  %vm301_vm12 = vweird.f32 %v2222_v42  ;;  %vm238_vm13 = vmor %vm236_vm9, %vm237_vm10 }
  0x1c   :  { %v105_v48 = vmul.f32 0.5, %v104_v44  ;;  %s2263_s12 = sld [smem:[#allocation7 + $0x23]]  ;;  %v232_v62 = vmul.f32 %v2212_v37, %v231_v47  ;;  %v359_v21 = vmul.f32 %v2266_v63, %v2191_v30  ;;  %v138_v34 = vstv %s2214_s6  ;;  %v2323_v44 = vpop.eup %1947  ;;  %vm302_vm14 = vmor %vm300_vm11, %vm301_vm12 }
  0x1d   :  { %v56_v50 = vsub.f32 1.5, %v55_v45  ;;  %v169_v52 = vmul.f32 0.5, %v168_v46  ;;  %s2270_s14 = sld [smem:[#allocation7 + $0x24]]  ;;  %v296_v9 = vmul.f32 %v2222_v42, %v295_v49  ;;  %v144_v38 = vstv %s2226_s7 }
  0x1e   :  { %v106_v58 = vsub.f32 1.5, %v105_v48  ;;  %s2277_s15 = sld [smem:[#allocation7 + $0x25]]  ;;  %v147_v39 = vstv %s2229_s8  ;;  %vm365_vm0 = vweird.f32 %v2266_v63  ;;  %vm429_vm3 = vweird.f32 %v2323_v44 }
  0x1f   :  { %v57_v59 = vmul.f32 %v1936_v29, %v56_v50  ;;  %v170_v61 = vsub.f32 1.5, %v169_v52  ;;  %s2293_s17 = sld [smem:[#allocation7 + $0x27]]  ;;  %v151_v40 = vstv %s2234_s9  ;;  %vm366_vm1 = vmor %vm364_vm15, %vm365_vm0 }
  0x20   :  { %v107_v4 = vmul.f32 %v1938_v33, %v106_v58  ;;  %s2297_s18 = sld [smem:[#allocation7 + $0x2c]]  ;;  %v182_v41 = vstv %s2240_s10  ;;  %vm2549_vm4 = vmor %vm428_vm2, %vm429_vm3 }
  0x21   :  { %v61_v10 = vsel %vm2246_vm5, %v1936_v29, %v57_v59  ;;  %v171_v15 = vmul.f32 %v2206_v35, %v170_v61  ;;  %v134_v29 = vstv %s2210_s5  ;;  %s2305_s19 = sld [smem:[#allocation7 + $0x2d]]  ;;  %v185_v50 = vstv %s2253_s11 }
  0x22   :  { %v62_v16 = vmul.f32 %v61_v10, %v2077_v0  ;;  %v63_v17 = vmul.f32 %v2082_v1, %v61_v10  ;;  %v111_v19 = vsel %vm2258_vm6, %v1938_v33, %v107_v4  ;;  %v2299_v1 = vmul.f32 0.5, %v232_v62  ;;  %s2315_s20 = sld [smem:[#allocation7 + $0x2f]] }
  0x23   :  { %v112_v27 = vmul.f32 %v2087_v2, %v111_v19  ;;  %v113_v0 = vmul.f32 %v2096_v5, %v111_v19  ;;  %v2309_v2 = vmul.f32 0.5, %v296_v9  ;;  %v175_v36 = vsel %vm2289_vm8, %v2206_v35, %v171_v15  ;;  %s2321_s1 = sld [smem:[#allocation7 + $0x30]] }
  0x24   :  { %v64_v5 = vmul.f32 %v62_v16, %v62_v16  ;;  %v65_v33 = vmul.f32 %v63_v17, %v62_v16  ;;  %v234_v47 = vsub.f32 1.5, %v2299_v1  ;;  %s2326_s25 = sld [smem:[#allocation7 + $0x31]]  ;;  %v2329_v35 = vmul.f32 %v2266_v63, %v359_v21 }
  0x25   :  { %v114_v45 = vmul.f32 %v112_v27, %v112_v27  ;;  %v115_v46 = vmul.f32 %v113_v0, %v112_v27  ;;  %v66_v48 = vmul.f32 %v63_v17, %v63_v17  ;;  %v176_v49 = vmul.f32 %v2103_v7, %v175_v36  ;;  %s2333_s2 = sld [smem:[#allocation7 + $0x33]] }
  0x26   :  { %v298_v52 = vsub.f32 1.5, %v2309_v2  ;;  %v69_v54 = vmul.f32 %v68_v43, %v64_v5  ;;  %v72_v58 = vmul.f32 %v71_v51, %v65_v33  ;;  %v116_v59 = vmul.f32 %v113_v0, %v113_v0  ;;  %s2341_s26 = sld [smem:[#allocation7 + $0x34]] }
  0x27   :  { %v177_v60 = vmul.f32 %v2108_v8, %v175_v36  ;;  %v81_v7 = vmul.f32 %v80_v56, %v64_v5  ;;  %v84_v61 = vmul.f32 %v83_v57, %v65_v33  ;;  %v119_v62 = vmul.f32 %v118_v6, %v114_v45  ;;  %s2347_s27 = sld [smem:[#allocation7 + $0x35]] }
  0x28   :  { %v122_v4 = vmul.f32 %v121_v11, %v115_v46  ;;  %v132_v43 = vmul.f32 %v131_v28, %v114_v45  ;;  %v135_v9 = vmul.f32 %v134_v29, %v115_v46  ;;  %v145_v51 = vmul.f32 %v144_v38, %v114_v45  ;;  %s2349_s13 = sld [smem:[#allocation7 + $0x37]] }
  0x29   :  { %v148_v10 = vmul.f32 %v147_v39, %v115_v46  ;;  %v76_v8 = vmul.f32 %v75_v55, %v66_v48  ;;  %v88_v56 = vmul.f32 %v87_v3, %v66_v48  ;;  %v189_v57 = vstv %s2263_s12  ;;  %s2359_s16 = sld [smem:[#allocation7 + $0x3c]] }
  0x2a   :  { %v195_v6 = vstv %s2270_s14  ;;  %v73_v11 = vadd.f32 %v72_v58, %v69_v54  ;;  %v126_v15 = vmul.f32 %v125_v20, %v116_v59  ;;  %v178_v16 = vmul.f32 %v176_v49, %v176_v49  ;;  %s2361_s22 = sld [smem:[#allocation7 + $0x3d]] }
  0x2b   :  { %v179_v17 = vmul.f32 %v177_v60, %v176_v49  ;;  %v85_v19 = vadd.f32 %v84_v61, %v81_v7  ;;  %v123_v22 = vadd.f32 %v122_v4, %v119_v62  ;;  %v139_v27 = vmul.f32 %v138_v34, %v116_v59  ;;  %s2364_s21 = sld [smem:[#allocation7 + $0x3f]] }
  0x2c   :  { %v198_v0 = vstv %s2277_s15  ;;  %v136_v55 = vadd.f32 %v135_v9, %v132_v43  ;;  %v149_v3 = vadd.f32 %v148_v10, %v145_v51  ;;  %v152_v1 = vmul.f32 %v151_v40, %v116_v59  ;;  %s2370_s23 = sld [smem:[#allocation7 + $0x40]] }
  0x2d   :  { %v183_v21 = vmul.f32 %v182_v41, %v178_v16  ;;  %v186_v20 = vmul.f32 %v185_v50, %v179_v17  ;;  %v208_v28 = vstv %s2297_s18  ;;  %v211_v29 = vstv %s2305_s19  ;;  %s2375_s24 = sld [smem:[#allocation7 + $0x41]] }
  0x2e   :  { %v235_v5 = vmul.f32 %v2212_v37, %v234_v47  ;;  %v2377_v33 = vadd.f32 %v76_v8, %v73_v11  ;;  %v180_v34 = vmul.f32 %v177_v60, %v177_v60  ;;  %v196_v36 = vmul.f32 %v195_v6, %v178_v16  ;;  %s2379_s28 = sld [smem:[#allocation7 + $0x43]] }
  0x2f   :  { %v199_v38 = vmul.f32 %v198_v0, %v179_v17  ;;  %v2381_v39 = vadd.f32 %v88_v56, %v85_v19  ;;  %v2383_v25 = vadd.f32 %v126_v15, %v123_v22  ;;  %v202_v40 = vstv %s2293_s17  ;;  %s2387_s29 = sld [smem:[#allocation7 + $0x44]] }
  0x30   :  { %v239_v41 = vsel %vm238_vm13, %v2212_v37, %v235_v5  ;;  %v209_v45 = vmul.f32 %v208_v28, %v178_v16  ;;  %v212_v46 = vmul.f32 %v211_v29, %v179_v17  ;;  %v215_v47 = vstv %s2315_s20  ;;  %s2391_s30 = sld [smem:[#allocation7 + $0x45]] }
  0x31   :  { %v240_v48 = vmul.f32 %v2119_v12, %v239_v41  ;;  %v2393_v49 = vadd.f32 %v139_v27, %v136_v55  ;;  %v2395_v50 = vadd.f32 %v152_v1, %v149_v3  ;;  %v2397_v54 = vadd.f32 %v186_v20, %v183_v21  ;;  %s2401_s5 = sld [smem:[#allocation7 + $0x4c]] }
  0x32   :  { %v2399_v37 = vmul.f32 %v189_v57, %v180_v34  ;;  %v2403_v58 = vadd.f32 %v199_v38, %v196_v36  ;;  %v2405_v59 = vmul.f32 %v202_v40, %v180_v34  ;;  %v241_v12 = vmul.f32 %v2124_v13, %v239_v41  ;;  %s2409_s6 = sld [smem:[#allocation7 + $0x4d]] }
  0x33   :  { %v246_v60 = vstv %s2321_s1  ;;  %v2411_v7 = vmul.f32 %v215_v47, %v180_v34  ;;  %v249_v61 = vstv %s2326_s25  ;;  %v253_v62 = vstv %s2333_s2  ;;  %s2426_s7 = sld [smem:[#allocation7 + $0x47]] }
  0x34   :  { %v299_v4 = vmul.f32 %v2222_v42, %v298_v52  ;;  %v2422_v43 = vadd.f32 %v212_v46, %v209_v45  ;;  %v242_v13 = vmul.f32 %v240_v48, %v240_v48  ;;  %v259_v9 = vstv %s2341_s26  ;;  %s2432_s8 = sld [smem:[#allocation7 + $0x4f]] }
  0x35   :  { %v262_v51 = vstv %s2347_s27  ;;  %v266_v10 = vstv %s2349_s13  ;;  %v272_v8 = vstv %s2359_s16  ;;  %v275_v2 = vstv %s2361_s22  ;;  %s2436_s9 = sld [smem:[#allocation7 + $0x50]] }
  0x36   :  { %v279_v56 = vstv %s2364_s21  ;;  %v243_v52 = vmul.f32 %v241_v12, %v240_v48  ;;  %v244_v57 = vmul.f32 %v241_v12, %v241_v12  ;;  %v303_v26 = vsel %vm302_vm14, %v2222_v42, %v299_v4  ;;  %s2442_s10 = sld [smem:[#allocation7 + $0x51]] }
  0x37   :  { %v310_v6 = vstv %s2370_s23  ;;  %v304_v11 = vmul.f32 %v2129_v14, %v303_v26  ;;  %v305_v15 = vmul.f32 %v2142_v18, %v303_v26  ;;  %v313_v16 = vstv %s2375_s24  ;;  %s2444_s11 = sld [smem:[#allocation7 + $0x53]] }
  0x38   :  { %v317_v17 = vstv %s2379_s28  ;;  %v247_v19 = vmul.f32 %v246_v60, %v242_v13  ;;  %v250_v22 = vmul.f32 %v249_v61, %v243_v52  ;;  %v254_v27 = vmul.f32 %v253_v62, %v244_v57  ;;  %s2448_s12 = sld [smem:[#allocation7 + $0x54]] }
  0x39   :  { %v260_v0 = vmul.f32 %v259_v9, %v242_v13  ;;  %v306_v42 = vmul.f32 %v304_v11, %v304_v11  ;;  %v307_v55 = vmul.f32 %v305_v15, %v304_v11  ;;  %v323_v3 = vstv %s2387_s29  ;;  %s2453_s14 = sld [smem:[#allocation7 + $0x55]] }
  0x3a   :  { %v326_v1 = vstv %s2391_s30  ;;  %v263_v14 = vmul.f32 %v262_v51, %v243_v52  ;;  %v336_v18 = vstv %s2401_s5  ;;  %v339_v21 = vstv %s2409_s6  ;;  %s2455_s15 = sld [smem:[#allocation7 + $0x57]] }
  0x3b   :  { %v361_v20 = vmul.f32 0.5, %v2329_v35  ;;  %v267_v28 = vmul.f32 %v266_v10, %v244_v57  ;;  %v273_v29 = vmul.f32 %v272_v8, %v242_v13  ;;  %v276_v5 = vmul.f32 %v275_v2, %v243_v52  ;;  %s2457_s17 = sld [smem:[#allocation7 + $0x5c]] }
  0x3c   :  { %v308_v34 = vmul.f32 %v305_v15, %v305_v15  ;;  %v311_v36 = vmul.f32 %v310_v6, %v306_v42  ;;  %v314_v38 = vmul.f32 %v313_v16, %v307_v55  ;;  %v324_v40 = vmul.f32 %v323_v3, %v306_v42  ;;  %s2460_s18 = sld [smem:[#allocation7 + $0x5d]] }
  0x3d   :  { %v327_v41 = vmul.f32 %v326_v1, %v307_v55  ;;  %v330_v45 = vstv %s2426_s7  ;;  %v337_v46 = vmul.f32 %v336_v18, %v306_v42  ;;  %v340_v47 = vmul.f32 %v339_v21, %v307_v55  ;;  %s2465_s19 = sld [smem:[#allocation7 + $0x5f]]  ;;  %v2534_v1 = vld [vmem:[%s3868_s3 + $0x78] sm:$0xff] }
  0x3e   :  { %v362_v48 = vsub.f32 1.5, %v361_v20  ;;  %v251_v35 = vadd.f32 %v250_v22, %v247_v19  ;;  %v343_v12 = vstv %s2432_s8  ;;  %v264_v60 = vadd.f32 %v263_v14, %v260_v0  ;;  %s2468_s20 = sld [smem:[#allocation7 + $0x60]] }
  0x3f   :  { %v277_v61 = vadd.f32 %v276_v5, %v273_v29  ;;  %v280_v62 = vmul.f32 %v279_v56, %v244_v57  ;;  %v315_v13 = vadd.f32 %v314_v38, %v311_v36  ;;  %v318_v9 = vmul.f32 %v317_v17, %v308_v34  ;;  %s2470_s1 = sld [smem:[#allocation7 + $0x61]]  ;;  %v2517_v17 = vld [vmem:[%s3868_s3 + $0x70] sm:$0xff] }
  0x40   :  { %v363_v4 = vmul.f32 %v2266_v63, %v362_v48  ;;  %v328_v51 = vadd.f32 %v327_v41, %v324_v40  ;;  %v331_v10 = vmul.f32 %v330_v45, %v308_v34  ;;  %v2474_v30 = vadd.f32 %v2399_v37, %v2397_v54  ;;  %s2477_s25 = sld [smem:[#allocation7 + $0x63]] }
  0x41   :  { %v341_v8 = vadd.f32 %v340_v47, %v337_v46  ;;  %v344_v2 = vmul.f32 %v343_v12, %v308_v34  ;;  %v2481_v52 = vadd.f32 %v2405_v59, %v2403_v58  ;;  %v423_v54 = vmul.f32 %v2323_v44, %v2242_v53  ;;  %s2487_s2 = sld [smem:[#allocation7 + $0x64]] }
  0x42   :  { %v367_v56 = vsel %vm366_vm1, %v2266_v63, %v363_v4  ;;  %v2491_v37 = vadd.f32 %v2411_v7, %v2422_v43  ;;  %v2493_v63 = vadd.f32 %v254_v27, %v251_v35  ;;  %v2495_v58 = vadd.f32 %v267_v28, %v264_v60  ;;  %s2499_s26 = sld [smem:[#allocation7 + $0x65]] }
  0x43   :  { %v368_v57 = vmul.f32 %v2157_v23, %v367_v56  ;;  %v369_v26 = vmul.f32 %v2162_v24, %v367_v56  ;;  %v2497_v23 = vadd.f32 %v280_v62, %v277_v61  ;;  %v2501_v24 = vadd.f32 %v318_v9, %v315_v13  ;;  %s2507_s27 = sld [smem:[#allocation7 + $0x67]] }
  0x44   :  { %v2503_v59 = vadd.f32 %v331_v10, %v328_v51  ;;  %v374_v7 = vstv %s2436_s9  ;;  %v424_v43 = vmul.f32 %v2323_v44, %v423_v54  ;;  %v2509_v6 = vadd.f32 %v344_v2, %v341_v8  ;;  %s2512_s13 = sld [smem:[#allocation7 + $0x6c]] }
  0x45   :  { %v370_v11 = vmul.f32 %v368_v57, %v368_v57  ;;  %v371_v15 = vmul.f32 %v369_v26, %v368_v57  ;;  %v377_v16 = vstv %s2442_s10  ;;  %v381_v19 = vstv %s2444_s11  ;;  %s2523_s21 = sld [smem:[#allocation7 + $0x6d]] }
  0x46   :  { %v387_v22 = vstv %s2448_s12  ;;  %v390_v27 = vstv %s2453_s14  ;;  %v394_v0 = vstv %s2455_s15  ;;  %v400_v42 = vstv %s2457_s17  ;;  %s2529_s23 = sld [smem:[#allocation7 + $0x6f]] }
  0x47   :  { %v403_v55 = vstv %s2460_s18  ;;  %v407_v3 = vstv %s2465_s19  ;;  %v372_v14 = vmul.f32 %v369_v26, %v369_v26  ;;  %v425_v18 = vmul.f32 0.5, %v424_v43  ;;  %s2539_s29 = sld [smem:[#allocation7 + $0x74]] }
  0x48   :  { %v482_v21 = vmul.f32 %v2517_v17, %v2517_v17  ;;  %v375_v20 = vmul.f32 %v374_v7, %v370_v11  ;;  %v378_v28 = vmul.f32 %v377_v16, %v371_v15  ;;  %v388_v29 = vmul.f32 %v387_v22, %v370_v11  ;;  %s2541_s30 = sld [smem:[#allocation7 + $0x75]] }
  0x49   :  { %v391_v5 = vmul.f32 %v390_v27, %v371_v15  ;;  %v401_v34 = vmul.f32 %v400_v42, %v370_v11  ;;  %v404_v36 = vmul.f32 %v403_v55, %v371_v15  ;;  %v426_v38 = vsub.f32 1.5, %v425_v18  ;;  %s2545_s5 = sld [smem:[#allocation7 + $0x77]] }
  0x4a   :  { %v484_v40 = vmul.f32 %v2534_v1, %v2534_v1  ;;  %v438_v45 = vstv %s2468_s20  ;;  %v441_v46 = vstv %s2470_s1  ;;  %v445_v47 = vstv %s2477_s25  ;;  %s2557_s6 = sld [smem:[#allocation7 + $0x7c]] }
  0x4b   :  { %v451_v48 = vstv %s2487_s2  ;;  %v382_v35 = vmul.f32 %v381_v19, %v372_v14  ;;  %v427_v12 = vmul.f32 %v2323_v44, %v426_v38  ;;  %s2562_s7 = sld [smem:[#allocation7 + $0x7d]]  ;;  %v529_v53 = vmul.f32 %v2377_v33, %v2377_v33 }
  0x4c   :  { %v2560_v60 = vadd.f32 %v484_v40, %v482_v21  ;;  %v379_v61 = vadd.f32 %v378_v28, %v375_v20  ;;  %v395_v62 = vmul.f32 %v394_v0, %v372_v14  ;;  %v408_v4 = vmul.f32 %v407_v3, %v372_v14  ;;  %s2566_s8 = sld [smem:[#allocation7 + $0x7f]] }
  0x4d   :  { %v530_v13 = vmul.f32 %v2381_v39, %v2381_v39  ;;  %v392_v9 = vadd.f32 %v391_v5, %v388_v29  ;;  %v405_v51 = vadd.f32 %v404_v36, %v401_v34  ;;  %v431_v10 = vsel %vm2549_vm4, %v2323_v44, %v427_v12  ;;  %s2714_s9 = sld [smem:[#allocation5 + $0x74]] }
  0x4e   :  { %1949 = vrsqrt.f32 %v2560_v60  ;;  %v432_v8 = vmul.f32 %v2196_v31, %v431_v10  ;;  %v433_v2 = vmul.f32 %v2201_v32, %v431_v10  ;;  %v551_v57 = vmul.f32 %v2393_v49, %v2377_v33  ;;  %s2720_s10 = sld [smem:[#allocation5 + $0x7c]] }
  0x4f   :  { %v531_v56 = vadd.f32 %v530_v13, %v529_v53  ;;  %v454_v26 = vstv %s2499_s26  ;;  %v458_v54 = vstv %s2507_s27  ;;  %v464_v7 = vstv %s2512_s13  ;;  %s2734_s11 = sld [smem:[#allocation5 + $0x75]] }
  0x50   :  { %v553_v43 = vmul.f32 %v2395_v50, %v2381_v39  ;;  %v2583_v44 = vadd.f32 %v382_v35, %v379_v61  ;;  %v467_v31 = vstv %s2523_s21  ;;  %v471_v11 = vstv %s2529_s23  ;;  %s2736_s12 = sld [smem:[#allocation5 + $0x7d]] }
  0x51   :  { %v2589_v32 = vmul.f32 %v2383_v25, %v2377_v33  ;;  %v2591_v15 = vadd.f32 %v395_v62, %v392_v9  ;;  %v2593_v16 = vadd.f32 %v408_v4, %v405_v51  ;;  %v434_v19 = vmul.f32 %v432_v8, %v432_v8  ;;  %s2743_s14 = sld [smem:[#allocation5 + $0x76]] }
  0x52   :  { %v2595_v22 = vadd.f32 1e-12, %v531_v56  ;;  %v435_v27 = vmul.f32 %v433_v2, %v432_v8  ;;  %v502_v0 = vstv %s2539_s29  ;;  %v505_v42 = vstv %s2541_s30  ;;  %s2748_s15 = sld [smem:[#allocation5 + $0x7e]] }
  0x53   :  { %v2599_v55 = vadd.f32 %v553_v43, %v551_v57  ;;  %vm492_vm5 = vweird.f32 %v2560_v60  ;;  %v509_v14 = vstv %s2545_s5  ;;  %v515_v18 = vstv %s2557_s6  ;;  %s2762_s17 = sld [smem:[#allocation5 + $0x77]] }
  0x54   :  { %v1950_v3 = vpop.eup %1949  ;;  %v518_v21 = vstv %s2562_s7  ;;  %v522_v28 = vstv %s2566_s8  ;;  %v555_v29 = vmul.f32 %v2589_v32, %v2589_v32  ;;  %v578_v5 = vmul.f32 %v2589_v32, %v2481_v52  ;;  %s2766_s18 = sld [smem:[#allocation5 + $0x7f]] }
  0x55   :  { %v487_v20 = vmul.f32 %v1950_v3, %v2560_v60  ;;  %v436_v34 = vmul.f32 %v433_v2, %v433_v2  ;;  %v439_v36 = vmul.f32 %v438_v45, %v434_v19  ;;  %1951 = vrsqrt.f32 %v2595_v22  ;;  %s2772_s19 = sld [smem:[#allocation5 + $0x60]] }
  0x56   :  { %v2614_v38 = vmul.f32 %v2589_v32, %v2474_v30  ;;  %v442_v40 = vmul.f32 %v441_v46, %v435_v27  ;;  %v556_v35 = vmul.f32 %v2599_v55, %v2599_v55  ;;  %v580_v12 = vmul.f32 %v2599_v55, %v2491_v37  ;;  %s2776_s20 = sld [smem:[#allocation5 + $0x64]] }
  0x57   :  { %v488_v41 = vmul.f32 %v1950_v3, %v487_v20  ;;  %v452_v53 = vmul.f32 %v451_v48, %v434_v19  ;;  %v455_v61 = vmul.f32 %v454_v26, %v435_v27  ;;  %v465_v62 = vmul.f32 %v464_v7, %v434_v19  ;;  %s2790_s1 = sld [smem:[#allocation5 + $0x6c]] }
  0x58   :  { %v468_v4 = vmul.f32 %v467_v31, %v435_v27  ;;  %vm493_vm6 = vweird.f32 %v1950_v3  ;;  %v557_v45 = vadd.f32 %v556_v35, %v555_v29  ;;  %v2620_v9 = vadd.f32 %v580_v12, %v578_v5  ;;  %s2794_s25 = sld [smem:[#allocation5 + $0x61]] }
  0x59   :  { %v489_v13 = vmul.f32 0.5, %v488_v41  ;;  %v446_v51 = vmul.f32 %v445_v47, %v436_v34  ;;  %v582_v46 = vmul.f32 %v2614_v38, %v2614_v38  ;;  %v2626_v10 = vmul.f32 %v2614_v38, %v2493_v63  ;;  %vm494_vm7 = vmor %vm492_vm5, %vm493_vm6  ;;  %s2804_s2 = sld [smem:[#allocation5 + $0x65]] }
  0x5a   :  { %v605_v8 = vmul.f32 %v2614_v38, %v2495_v58  ;;  %v2630_v2 = vadd.f32 1e-12, %v557_v45  ;;  %v583_v56 = vmul.f32 %v2620_v9, %v2620_v9  ;;  %v607_v57 = vmul.f32 %v2620_v9, %v2497_v23  ;;  %s2809_s26 = sld [smem:[#allocation5 + $0x6d]] }
  0x5b   :  { %v490_v48 = vsub.f32 1.5, %v489_v13  ;;  %v1952_v47 = vpop.eup %1951  ;;  %v443_v26 = vadd.f32 %v442_v40, %v439_v36  ;;  %v456_v7 = vadd.f32 %v455_v61, %v452_v53  ;;  %v459_v43 = vmul.f32 %v458_v54, %v436_v34  ;;  %s2815_s27 = sld [smem:[#allocation5 + $0x62]] }
  0x5c   :  { %v472_v31 = vmul.f32 %v471_v11, %v436_v34  ;;  %v469_v19 = vadd.f32 %v468_v4, %v465_v62  ;;  %v534_v20 = vmul.f32 %v1952_v47, %v2595_v22  ;;  %1953 = vrsqrt.f32 %v2630_v2  ;;  %s2822_s13 = sld [smem:[#allocation5 + $0x66]] }
  0x5d   :  { %v491_v27 = vmul.f32 %v1950_v3, %v490_v48  ;;  %vm539_vm8 = vweird.f32 %v2595_v22  ;;  %v584_v29 = vadd.f32 %v583_v56, %v582_v46  ;;  %v2642_v5 = vadd.f32 %v607_v57, %v605_v8  ;;  %s2834_s16 = sld [smem:[#allocation5 + $0x6e]] }
  0x5e   :  { %v609_v36 = vmul.f32 %v2626_v10, %v2626_v10  ;;  %v535_v11 = vmul.f32 %v1952_v47, %v534_v20  ;;  %v2648_v60 = vmul.f32 %v2626_v10, %v2501_v24  ;;  %v632_v34 = vmul.f32 %v2626_v10, %v2503_v59  ;;  %s2838_s22 = sld [smem:[#allocation5 + $0x63]] }
  0x5f   :  { %v495_v54 = vsel %vm494_vm7, %v1950_v3, %v491_v27  ;;  %v2654_v35 = vadd.f32 1e-12, %v584_v29  ;;  %v610_v12 = vmul.f32 %v2642_v5, %v2642_v5  ;;  %vm540_vm9 = vweird.f32 %v1952_v47  ;;  %s2845_s21 = sld [smem:[#allocation5 + $0x67]] }
  0x60   :  { %v496_v40 = vmul.f32 %v2517_v17, %v495_v54  ;;  %v497_v41 = vmul.f32 %v2534_v1, %v495_v54  ;;  %v536_v53 = vmul.f32 0.5, %v535_v11  ;;  %v634_v3 = vmul.f32 %v2642_v5, %v2509_v6  ;;  %vm541_vm10 = vmor %vm539_vm8, %vm540_vm9  ;;  %s2856_s23 = sld [smem:[#allocation5 + $0x6f]] }
  0x61   :  { %v2662_v61 = vmul.f32 %v2648_v60, %v2583_v44  ;;  %v2664_v62 = vadd.f32 %v446_v51, %v443_v26  ;;  %v2666_v4 = vadd.f32 %v459_v43, %v456_v7  ;;  %1955 = vrsqrt.f32 %v2654_v35  ;;  %s2871_s24 = sld [smem:[#allocation5 + $0x50]] }
  0x62   :  { %v498_v13 = vmul.f32 %v496_v40, %v496_v40  ;;  %v1954_v45 = vpop.eup %1953  ;;  %v499_v46 = vmul.f32 %v497_v41, %v496_v40  ;;  %v537_v8 = vsub.f32 1.5, %v536_v53  ;;  %v611_v48 = vadd.f32 %v610_v12, %v609_v36  ;;  %s2877_s28 = sld [smem:[#allocation5 + $0x54]] }
  0x63   :  { %v2669_v56 = vadd.f32 %v634_v3, %v632_v34  ;;  %v2671_v57 = vadd.f32 %v472_v31, %v469_v19  ;;  %vm565_vm11 = vweird.f32 %v2630_v2  ;;  %v636_v51 = vmul.f32 %v2648_v60, %v2648_v60  ;;  %s2890_s29 = sld [smem:[#allocation5 + $0x51]] }
  0x64   :  { %v659_v26 = vmul.f32 %v2648_v60, %v2591_v15  ;;  %v538_v7 = vmul.f32 %v1952_v47, %v537_v8  ;;  %v560_v43 = vmul.f32 %v1954_v45, %v2630_v2  ;;  %v663_v31 = vmul.f32 %v2662_v61, %v2662_v61  ;;  %s2906_s30 = sld [smem:[#allocation5 + $0x55]] }
  0x65   :  { %v2685_v22 = vmul.f32 %v2662_v61, %v2664_v62  ;;  %v500_v19 = vmul.f32 %v497_v41, %v497_v41  ;;  %v503_v27 = vmul.f32 %v502_v0, %v498_v13  ;;  %v2689_v20 = vadd.f32 1e-12, %v611_v48  ;;  %s2909_s5 = sld [smem:[#allocation5 + $0x5c]] }
  0x66   :  { %v637_v29 = vmul.f32 %v2669_v56, %v2669_v56  ;;  %v506_v36 = vmul.f32 %v505_v42, %v499_v46  ;;  %v542_v54 = vsel %vm541_vm10, %v1952_v47, %v538_v7  ;;  %v561_v11 = vmul.f32 %v1954_v45, %v560_v43  ;;  %s2918_s6 = sld [smem:[#allocation5 + $0x5d]] }
  0x67   :  { %v661_v34 = vmul.f32 %v2669_v56, %v2593_v16  ;;  %v1956_v40 = vpop.eup %1955  ;;  %v516_v12 = vmul.f32 %v515_v18, %v498_v13  ;;  %v2700_v41 = vmul.f32 %v542_v54, %v2377_v33  ;;  %v2703_v0 = vmul.f32 %v542_v54, %v2381_v39  ;;  %s2956_s7 = sld [smem:[#allocation5 + $0x52]] }
  0x68   :  { %1957 = vrsqrt.f32 %v2689_v20  ;;  %v519_v42 = vmul.f32 %v518_v21, %v499_v46  ;;  %v562_v47 = vmul.f32 0.5, %v561_v11  ;;  %vm566_vm12 = vweird.f32 %v1954_v45  ;;  %s3654_s8 = sld [smem:[#allocation5 + $0x1e]] }
  0x69   :  { %v587_v53 = vmul.f32 %v1956_v40, %v2654_v35  ;;  %vm592_vm13 = vweird.f32 %v2654_v35  ;;  %v638_v3 = vadd.f32 %v637_v29, %v636_v51  ;;  %v2710_v8 = vadd.f32 %v661_v34, %v659_v26  ;;  %vm2724_vm14 = vmor %vm565_vm11, %vm566_vm12 }
  0x6a   :  { %v686_v33 = vmul.f32 %v2662_v61, %v2666_v4  ;;  %v510_v39 = vmul.f32 %v509_v14, %v500_v19  ;;  %v523_v18 = vmul.f32 %v522_v28, %v500_v19  ;;  %v563_v13 = vsub.f32 1.5, %v562_v47 }
  0x6b   :  { %v588_v21 = vmul.f32 %v1956_v40, %v587_v53  ;;  %v507_v46 = vadd.f32 %v506_v36, %v503_v27  ;;  %v2728_v51 = vadd.f32 1e-12, %v638_v3  ;;  %v664_v26 = vmul.f32 %v2710_v8, %v2710_v8 }
  0x6c   :  { %v688_v14 = vmul.f32 %v2710_v8, %v2671_v57  ;;  %v520_v28 = vadd.f32 %v519_v42, %v516_v12  ;;  %v564_v7 = vmul.f32 %v1954_v45, %v563_v13  ;;  %vm593_vm15 = vweird.f32 %v1956_v40 }
  0x6d   :  { %v589_v43 = vmul.f32 0.5, %v588_v21  ;;  %1959 = vrsqrt.f32 %v2728_v51  ;;  %v665_v19 = vadd.f32 %v664_v26, %v663_v31  ;;  %v690_v29 = vmul.f32 %v2685_v22, %v2685_v22  ;;  %vm594_vm0 = vmor %vm592_vm13, %vm593_vm15 }
  0x6e   :  { %v1958_v2 = vpop.eup %1957  ;;  %v2739_v27 = vadd.f32 %v688_v14, %v686_v33  ;;  %v568_v36 = vsel %vm2724_vm14, %v1954_v45, %v564_v7  ;;  %v2764_v45 = vadd.f32 %v510_v39, %v507_v46  ;;  %vm619_vm1 = vweird.f32 %v2689_v20 }
  0x6f   :  { %v590_v54 = vsub.f32 1.5, %v589_v43  ;;  %v614_v11 = vmul.f32 %v1958_v2, %v2689_v20  ;;  %v2751_v34 = vmul.f32 %v568_v36, %v2589_v32  ;;  %v2754_v31 = vmul.f32 %v568_v36, %v2599_v55 }
  0x70   :  { %v2758_v12 = vadd.f32 1e-12, %v665_v19  ;;  %v691_v42 = vmul.f32 %v2739_v27, %v2739_v27  ;;  %v2768_v32 = vadd.f32 %v523_v18, %v520_v28  ;;  %vm620_vm2 = vweird.f32 %v1958_v2 }
  0x71   :  { %v591_v47 = vmul.f32 %v1956_v40, %v590_v54  ;;  %v615_v53 = vmul.f32 %v1958_v2, %v614_v11  ;;  %v798_v33 = vmul.f32 %v2764_v45, %v2764_v45  ;;  %vm2798_vm3 = vmor %vm619_vm1, %vm620_vm2  ;;  %v710_v7 = vstv %s2720_s10  ;;  %s2976_s10 = sld [smem:[#allocation5 + $0x56]] }
  0x72   :  { %1961 = vrsqrt.f32 %v2758_v12  ;;  %v692_v55 = vadd.f32 %v691_v42, %v690_v29  ;;  %v714_v43 = vstv %s2734_s11  ;;  %vm646_vm4 = vweird.f32 %v2728_v51  ;;  %s2995_s11 = sld [smem:[#allocation5 + $0x53]] }
  0x73   :  { %v595_v35 = vsel %vm594_vm0, %v1956_v40, %v591_v47  ;;  %v616_v3 = vmul.f32 0.5, %v615_v53  ;;  %v2778_v39 = vpop.eup %1959  ;;  %v799_v40 = vmul.f32 %v2768_v32, %v2768_v32  ;;  %v717_v20 = vstv %s2736_s12  ;;  %s3003_s12 = sld [smem:[#allocation5 + $0x57]] }
  0x74   :  { %v2781_v18 = vmul.f32 %v595_v35, %v2614_v38  ;;  %v2784_v13 = vmul.f32 %v595_v35, %v2620_v9  ;;  %v2786_v21 = vadd.f32 1e-12, %v692_v55  ;;  %v641_v48 = vmul.f32 %v2778_v39, %v2728_v51 }
  0x75   :  { %v617_v46 = vsub.f32 1.5, %v616_v3  ;;  %v707_v9 = vstv %s2714_s9  ;;  %v800_v26 = vadd.f32 %v799_v40, %v798_v33  ;;  %v925_v36 = vmul.f32 %v2764_v45, %v2664_v62  ;;  %s3481_s9 = sld [smem:[#allocation5 + $0x25]] }
  0x76   :  { %1963 = vrsqrt.f32 %v2786_v21  ;;  %v642_v28 = vmul.f32 %v2778_v39, %v641_v48  ;;  %v927_v47 = vmul.f32 %v2768_v32, %v2666_v4  ;;  %v721_v62 = vstv %s2743_s14  ;;  %s3006_s14 = sld [smem:[#allocation5 + $0x5f]] }
  0x77   :  { %v618_v14 = vmul.f32 %v1958_v2, %v617_v46  ;;  %v2813_v29 = vadd.f32 1e-12, %v800_v26  ;;  %vm673_vm5 = vweird.f32 %v2758_v12  ;;  %v724_v3 = vstv %s2748_s15  ;;  %s3012_s15 = sld [smem:[#allocation5 + $0x40]] }
  0x78   :  { %v1962_v19 = vpop.eup %1961  ;;  %v643_v11 = vmul.f32 0.5, %v642_v28  ;;  %vm647_vm6 = vweird.f32 %v2778_v39  ;;  %vm700_vm7 = vweird.f32 %v2786_v21  ;;  %v2847_v46 = vadd.f32 %v927_v47, %v925_v36 }
  0x79   :  { %v622_v54 = vsel %vm2798_vm3, %v1958_v2, %v618_v14  ;;  %v668_v42 = vmul.f32 %v1962_v19, %v2758_v12  ;;  %1965 = vrsqrt.f32 %v2813_v29  ;;  %v2851_v48 = vmul.f32 %v2768_v32, %v2671_v57  ;;  %vm2860_vm10 = vmor %vm646_vm4, %vm647_vm6 }
  0x7a   :  { %v2827_v53 = vmul.f32 %v622_v54, %v2626_v10  ;;  %v2830_v55 = vmul.f32 %v622_v54, %v2642_v5  ;;  %v644_v2 = vsub.f32 1.5, %v643_v11  ;;  %v728_v10 = vstv %s2762_s17  ;;  %s3018_s17 = sld [smem:[#allocation5 + $0x44]] }
  0x7b   :  { %v669_v35 = vmul.f32 %v1962_v19, %v668_v42  ;;  %vm674_vm8 = vweird.f32 %v1962_v19  ;;  %vm808_vm9 = vweird.f32 %v2813_v29  ;;  %v842_v57 = vstv %s2815_s27  ;;  %s3118_s27 = sld [smem:[#allocation5 + $0x4d]] }
  0x7c   :  { %v1964_v4 = vpop.eup %1963  ;;  %v645_v38 = vmul.f32 %v2778_v39, %v644_v2  ;;  %vm675_vm11 = vmor %vm673_vm5, %vm674_vm8  ;;  %v845_v47 = vstv %s2822_s13  ;;  %v856_v54 = vstv %s2845_s21  ;;  %s3388_s21 = sld [smem:[#allocation5 + $0x37]] }
  0x7d   :  { %v670_v33 = vmul.f32 0.5, %v669_v35  ;;  %v695_v40 = vmul.f32 %v1964_v4, %v2786_v21  ;;  %v931_v35 = vmul.f32 %v2847_v46, %v2847_v46  ;;  %vm701_vm12 = vweird.f32 %v1964_v4 }
  0x7e   :  { %v649_v2 = vsel %vm2860_vm10, %v2778_v39, %v645_v38  ;;  %vm702_vm13 = vmor %vm700_vm7, %vm701_vm12  ;;  %v1058_v39 = vmul.f32 %v2847_v46, %v2583_v44  ;;  %v1060_v38 = vmul.f32 %v2851_v48, %v2591_v15  ;;  %v860_v21 = vstv %s2856_s23  ;;  %s3397_s23 = sld [smem:[#allocation5 + $0x3f]] }
  0x7f   :  { %v671_v28 = vsub.f32 1.5, %v670_v33  ;;  %v696_v36 = vmul.f32 %v1964_v4, %v695_v40  ;;  %v1966_v11 = vpop.eup %1965  ;;  %v2897_v14 = vmul.f32 %v649_v2, %v2648_v60 }
  0x80   :  { %v803_v40 = vmul.f32 %v1966_v11, %v2813_v29  ;;  %vm809_vm14 = vweird.f32 %v1966_v11 }
  0x81   :  { %v672_v51 = vmul.f32 %v1962_v19, %v671_v28  ;;  %v697_v33 = vmul.f32 0.5, %v696_v36  ;;  %v932_v28 = vmul.f32 %v2851_v48, %v2851_v48  ;;  %v853_v36 = vstv %s2838_s22  ;;  %vm810_vm15 = vmor %vm808_vm9, %vm809_vm14  ;;  %s3125_s22 = sld [smem:[#allocation5 + $0x42]] }
  0x82   :  { %v804_v12 = vmul.f32 %v1966_v11, %v803_v40 }
  0x83   :  { %v698_v42 = vsub.f32 1.5, %v697_v33  ;;  %v676_v26 = vsel %vm675_vm11, %v1962_v19, %v672_v51  ;;  %v933_v5 = vadd.f32 %v932_v28, %v931_v35  ;;  %v2901_v19 = vmul.f32 %v649_v2, %v2669_v56 }
  0x84   :  { %v805_v40 = vmul.f32 0.5, %v804_v12  ;;  %v677_v44 = vmul.f32 %v676_v26, %v2662_v61  ;;  %v2913_v56 = vmul.f32 %v2851_v48, %v2593_v16 }
  0x85   :  { %v699_v33 = vmul.f32 %v1964_v4, %v698_v42  ;;  %v2904_v35 = vadd.f32 1e-12, %v933_v5  ;;  %v678_v5 = vmul.f32 %v676_v26, %v2710_v8 }
  0x86   :  { %v806_v60 = vsub.f32 1.5, %v805_v40 }
  0x87   :  { %v703_v15 = vsel %vm702_vm13, %v1964_v4, %v699_v33  ;;  %v2920_v4 = vadd.f32 %v1060_v38, %v1058_v39  ;;  %1967 = vrsqrt.f32 %v2904_v35  ;;  %v3884_v39 = vstv %s2766_s18  ;;  %s3340_s18 = sld [smem:[#allocation5 + $0x31]] }
  0x88   :  { %v704_v42 = vmul.f32 %v703_v15, %v2685_v22  ;;  %v705_v61 = vmul.f32 %v703_v15, %v2739_v27  ;;  %v807_v2 = vmul.f32 %v1966_v11, %v806_v60  ;;  %vm941_vm0 = vweird.f32 %v2904_v35 }
  0x8a   :  { %v708_v26 = vmul.f32 %v707_v9, %v704_v42  ;;  %v711_v22 = vmul.f32 %v710_v7, %v705_v61  ;;  %v715_v27 = vmul.f32 %v714_v43, %v704_v42  ;;  %v718_v51 = vmul.f32 %v717_v20, %v705_v61 }
  0x8b   :  { %v722_v28 = vmul.f32 %v721_v62, %v704_v42  ;;  %v725_v12 = vmul.f32 %v724_v3, %v705_v61  ;;  %v729_v29 = vmul.f32 %v728_v10, %v704_v42  ;;  %v732_v38 = vmul.f32 %v3884_v39, %v705_v61 }
  0x8c   :  { %v712_v33 = vadd.f32 %v711_v22, %v708_v26  ;;  %v719_v40 = vadd.f32 %v718_v51, %v715_v27  ;;  %v811_v15 = vsel %vm810_vm15, %v1966_v11, %v807_v2  ;;  %v2950_v42 = vmul.f32 %v2920_v4, %v2920_v4 }
  0x8d   :  { %v726_v60 = vadd.f32 %v725_v12, %v722_v28  ;;  %v733_v7 = vadd.f32 %v732_v38, %v729_v29  ;;  %v812_v43 = vmul.f32 %v811_v15, %v2764_v45  ;;  %v813_v20 = vmul.f32 %v811_v15, %v2768_v32  ;;  %v2952_v11 = vpop.eup %1967 }
  0x8e   :  { %v734_v62 = vmul.f32 %v712_v33, %v712_v33  ;;  %v735_v3 = vmul.f32 %v719_v40, %v719_v40  ;;  %v3885_v28 = vstv %s2772_s19  ;;  %v3886_v29 = vstv %s2776_s20  ;;  %s3026_s20 = sld [smem:[#allocation5 + $0x4c]] }
  0x8f   :  { %v737_v61 = vmul.f32 %v726_v60, %v726_v60  ;;  %v816_v2 = vmul.f32 %v812_v43, %v677_v44  ;;  %v817_v26 = vmul.f32 %v813_v20, %v677_v44  ;;  %v739_v27 = vmul.f32 %v733_v7, %v733_v7  ;;  %s3344_s19 = sld [smem:[#allocation5 + $0x35]] }
  0x90   :  { %v736_v22 = vadd.f32 %v735_v3, %v734_v62  ;;  %v818_v32 = vmul.f32 %v813_v20, %v678_v5  ;;  %v3887_v38 = vstv %s2794_s25  ;;  %v3888_v10 = vstv %s2804_s2  ;;  %s3032_s2 = sld [smem:[#allocation5 + $0x41]] }
  0x91   :  { %v821_v12 = vmul.f32 %v3885_v28, %v816_v2  ;;  %v824_v39 = vmul.f32 %v3886_v29, %v817_v26  ;;  %v832_v15 = vmul.f32 %v3887_v38, %v816_v2  ;;  %v835_v43 = vmul.f32 %v3888_v10, %v817_v26  ;;  %s3369_s25 = sld [smem:[#allocation5 + $0x36]] }
  0x92   :  { %v738_v44 = vadd.f32 %v737_v61, %v736_v22  ;;  %v2969_v62 = vstv %s3865_s0  ;;  %v3889_v5 = vstv %s2790_s1  ;;  %v936_v3 = vmul.f32 %v2952_v11, %v2904_v35  ;;  %s2982_s0 = sld [smem:[#allocation5 + $0x5e]] }
  0x93   :  { %v828_v20 = vmul.f32 %v3889_v5, %v818_v32  ;;  %v825_v28 = vadd.f32 %v824_v39, %v821_v12  ;;  %v836_v29 = vadd.f32 %v835_v43, %v832_v15  ;;  %v3890_v10 = vstv %s2809_s26  ;;  %s3067_s26 = sld [smem:[#allocation5 + $0x45]] }
  0x94   :  { %v839_v61 = vmul.f32 %v3890_v10, %v818_v32  ;;  %v843_v22 = vmul.f32 %v842_v57, %v816_v2  ;;  %v2984_v38 = vadd.f32 %v739_v27, %v738_v44  ;;  %v756_v5 = vmul.f32 %v2517_v17, %v712_v33  ;;  %s3361_s1 = sld [smem:[#allocation5 + $0x32]] }
  0x95   :  { %v846_v51 = vmul.f32 %v845_v47, %v817_v26  ;;  %v3891_v9 = vstv %s2834_s16  ;;  %v829_v8 = vadd.f32 %v828_v20, %v825_v28  ;;  %v854_v12 = vmul.f32 %v853_v36, %v816_v2  ;;  %s3606_s16 = sld [smem:[#allocation5 + $0x14]] }
  0x96   :  { %v850_v45 = vmul.f32 %v3891_v9, %v818_v32  ;;  %v840_v16 = vadd.f32 %v839_v61, %v836_v29  ;;  %v857_v39 = vmul.f32 %v856_v54, %v817_v26  ;;  %v2998_v57 = vadd.f32 1e-12, %v2984_v38  ;;  %v2012_v29 = vld [vmem:[%s3868_s3 + $0x68] sm:$0xff] }
  0x97   :  { %v758_v27 = vmul.f32 %v2534_v1, %v719_v40  ;;  %v847_v15 = vadd.f32 %v846_v51, %v843_v22  ;;  %v861_v33 = vmul.f32 %v860_v21, %v818_v32  ;;  %v863_v9 = vmul.f32 %v829_v8, %v829_v8 }
  0x98   :  { %v858_v47 = vadd.f32 %v857_v39, %v854_v12  ;;  %v864_v43 = vmul.f32 %v840_v16, %v840_v16  ;;  %v937_v36 = vmul.f32 %v2952_v11, %v936_v3  ;;  %1969 = vrsqrt.f32 %v2998_v57 }
  0x99   :  { %v766_v54 = vmul.f32 %v2517_v17, %v726_v60  ;;  %v851_v2 = vadd.f32 %v850_v45, %v847_v15  ;;  %v975_v40 = vstv %s2956_s7  ;;  %v767_v26 = vmul.f32 %v2534_v1, %v733_v7  ;;  %v2011_v1 = vld [vmem:[%s3868_s3 + $0x60] sm:$0xff]  ;;  %s3648_s7 = sld [smem:[#allocation5 + $0x16]] }
  0x9a   :  { %v862_v21 = vadd.f32 %v861_v33, %v858_v47  ;;  %v865_v32 = vadd.f32 %v864_v43, %v863_v9  ;;  %v938_v51 = vmul.f32 0.5, %v937_v36  ;;  %vm942_vm1 = vweird.f32 %v2952_v11 }
  0x9b   :  { %v866_v44 = vmul.f32 %v851_v2, %v851_v2  ;;  %v978_v20 = vstv %s2976_s10  ;;  %v1065_v3 = vmul.f32 %v2913_v56, %v2913_v56  ;;  %v3020_v17 = vadd.f32 %v758_v27, %v756_v5  ;;  %vm943_vm3 = vmor %vm941_vm0, %vm942_vm1  ;;  %s3666_s10 = sld [smem:[#allocation5 + $0x17]] }
  0x9c   :  { %v868_v60 = vmul.f32 %v862_v21, %v862_v21  ;;  %v884_v7 = vmul.f32 %v2011_v1, %v829_v8  ;;  %v982_v45 = vstv %s2982_s0  ;;  %v886_v10 = vmul.f32 %v2012_v29, %v840_v16  ;;  %s3673_s0 = sld [smem:[#allocation5 + $0x1f]] }
  0x9d   :  { %v867_v28 = vadd.f32 %v866_v44, %v865_v32  ;;  %v939_v61 = vsub.f32 1.5, %v938_v51  ;;  %v1066_v22 = vadd.f32 %v1065_v3, %v2950_v42  ;;  %vm748_vm2 = vweird.f32 %v2998_v57 }
  0x9e   :  { %v3035_v8 = vadd.f32 %v767_v26, %v766_v54  ;;  %v894_v5 = vmul.f32 %v2011_v1, %v851_v2  ;;  %v3043_v16 = vmul.f32 %v2913_v56, %v2509_v6  ;;  %v1970_v12 = vpop.eup %1969  ;;  %v895_v42 = vmul.f32 %v2012_v29, %v862_v21 }
  0x9f   :  { %v3045_v39 = vadd.f32 %v868_v60, %v867_v28  ;;  %v940_v27 = vmul.f32 %v2952_v11, %v939_v61  ;;  %v3048_v15 = vadd.f32 1e-12, %v1066_v22  ;;  %v743_v33 = vmul.f32 %v1970_v12, %v2998_v57 }
  0xa0   :  { %v986_v47 = vstv %s2995_s11  ;;  %v989_v9 = vstv %s3003_s12  ;;  %v993_v43 = vstv %s3006_s14  ;;  %v3057_v36 = vadd.f32 %v886_v10, %v884_v7  ;;  %s3316_s14 = sld [smem:[#allocation5 + $0x30]] }
  0xa1   :  { %v3055_v35 = vadd.f32 1e-12, %v3045_v39  ;;  %v944_v6 = vsel %vm943_vm3, %v2952_v11, %v940_v27  ;;  %v3062_v54 = vmul.f32 %v2920_v4, %v2501_v24  ;;  %v744_v2 = vmul.f32 %v1970_v12, %v743_v33  ;;  %s3492_s11 = sld [smem:[#allocation5 + $0x2d]] }
  0xa2   :  { %v945_v26 = vmul.f32 %v944_v6, %v2847_v46  ;;  %v946_v21 = vmul.f32 %v944_v6, %v2851_v48  ;;  %1971 = vrsqrt.f32 %v3048_v15  ;;  %vm749_vm4 = vweird.f32 %v1970_v12 }
  0xa3   :  { %1973 = vrsqrt.f32 %v3055_v35  ;;  %v3070_v24 = vadd.f32 %v895_v42, %v894_v5  ;;  %v3074_v11 = vmul.f32 %v2913_v56, %v2503_v59  ;;  %v745_v46 = vmul.f32 0.5, %v744_v2  ;;  %vm3094_vm6 = vmor %vm748_vm2, %vm749_vm4 }
  0xa4   :  { %vm754_vm5 = vcmp.eq.f32.partialorder %v2984_v38, %v2984_v38  ;;  %v949_v48 = vmul.f32 %v945_v26, %v2897_v14  ;;  %v950_v32 = vmul.f32 %v946_v21, %v2897_v14  ;;  %v951_v51 = vmul.f32 %v946_v21, %v2901_v19 }
  0xa5   :  { %v1086_v44 = vstv %s3012_s15  ;;  %v746_v1 = vsub.f32 1.5, %v745_v46  ;;  %v3892_v7 = vstv %s2871_s24  ;;  %v3893_v29 = vstv %s2877_s28  ;;  %s3134_s24 = sld [smem:[#allocation5 + $0x46]] }
  0xa6   :  { %v954_v28 = vmul.f32 %v3892_v7, %v949_v48  ;;  %v957_v10 = vmul.f32 %v3893_v29, %v950_v32  ;;  %v3894_v61 = vstv %s2909_s5  ;;  %vm877_vm7 = vweird.f32 %v3055_v35  ;;  %s3138_s28 = sld [smem:[#allocation5 + $0x4e]] }
  0xa7   :  { %v961_v22 = vmul.f32 %v3894_v61, %v951_v51  ;;  %v3897_v14 = vstv %s2890_s29  ;;  %v3898_v42 = vstv %s2906_s30  ;;  %v3899_v33 = vstv %s2918_s6  ;;  %s3141_s29 = sld [smem:[#allocation5 + $0x43]] }
  0xa8   :  { %v965_v19 = vmul.f32 %v3897_v14, %v949_v48  ;;  %v968_v27 = vmul.f32 %v3898_v42, %v950_v32  ;;  %v972_v6 = vmul.f32 %v3899_v33, %v951_v51  ;;  %v976_v2 = vmul.f32 %v975_v40, %v949_v48  ;;  %v3107_v26 = vpop.eup %1971  ;;  %s3151_s30 = sld [smem:[#allocation5 + $0x47]] }
  0xa9   :  { %v747_v21 = vmul.f32 %v1970_v12, %v746_v1  ;;  %v958_v46 = vadd.f32 %v957_v10, %v954_v28  ;;  %v979_v57 = vmul.f32 %v978_v20, %v950_v32  ;;  %v983_v7 = vmul.f32 %v982_v45, %v951_v51  ;;  %v3111_v29 = vpop.eup %1973  ;;  %s3153_s5 = sld [smem:[#allocation5 + $0x4f]] }
  0xaa   :  { %v969_v61 = vadd.f32 %v968_v27, %v965_v19  ;;  %v987_v59 = vmul.f32 %v986_v47, %v949_v48  ;;  %v990_v60 = vmul.f32 %v989_v9, %v950_v32  ;;  %v994_v14 = vmul.f32 %v993_v43, %v951_v51  ;;  %v1856_v47 = vld [vmem:[%s3868_s3 + $0x50] sm:$0xff]  ;;  %v1857_v43 = vld [vmem:[%s3868_s3 + $0x58] sm:$0xff]  ;;  %s3329_s15 = sld [smem:[#allocation5 + $0x34]] }
  0xab   :  { %v751_v42 = vsel %vm3094_vm6, %v1970_v12, %v747_v21  ;;  %v872_v33 = vmul.f32 %v3111_v29, %v3055_v35  ;;  %v962_v40 = vadd.f32 %v961_v22, %v958_v46  ;;  %v1100_v3 = vstv %s3067_s26  ;;  %s3476_s6 = sld [smem:[#allocation5 + $0x21]] }
  0xac   :  { %v753_v1 = vmul.f32 %v2969_v62, %v751_v42  ;;  %v973_v20 = vadd.f32 %v972_v6, %v969_v61  ;;  %v980_v45 = vadd.f32 %v979_v57, %v976_v2  ;;  %v991_v28 = vadd.f32 %v990_v60, %v987_v59  ;;  %s3779_s26 = sld [smem:[#allocation5 + $0x7]] }
  0xad   :  { %vm1074_vm8 = vweird.f32 %v3048_v15  ;;  %v873_v12 = vmul.f32 %v3111_v29, %v872_v33  ;;  %vm878_vm9 = vweird.f32 %v3111_v29  ;;  %v996_v9 = vmul.f32 %v962_v40, %v962_v40 }
  0xae   :  { %v1069_v48 = vmul.f32 %v3107_v26, %v3048_v15  ;;  %v760_v32 = vmul.f32 %v3020_v17, %v753_v1  ;;  %v769_v51 = vmul.f32 %v3035_v8, %v753_v1  ;;  %v984_v60 = vadd.f32 %v983_v7, %v980_v45  ;;  %vm879_vm13 = vmor %vm877_vm7, %vm878_vm9 }
  0xaf   :  { %v995_v59 = vadd.f32 %v994_v14, %v991_v28  ;;  %v874_v10 = vmul.f32 0.5, %v873_v12  ;;  %v997_v22 = vmul.f32 %v973_v20, %v973_v20  ;;  %v1017_v5 = vmul.f32 %v1856_v47, %v962_v40 }
  0xb0   :  { %v1070_v19 = vmul.f32 %v3107_v26, %v1069_v48  ;;  %v761_v27 = vsel %vm754_vm5, %v760_v32, 0.0  ;;  %v770_v17 = vsel %vm754_vm5, %v769_v51, 0.0  ;;  %vm882_vm10 = vcmp.eq.f32.partialorder %v3045_v39, %v3045_v39 }
  0xb1   :  { %v999_v8 = vmul.f32 %v984_v60, %v984_v60  ;;  %v1019_v6 = vmul.f32 %v1857_v43, %v973_v20  ;;  %vm762_vm11 = vcmp.ge.f32.partialorder %v761_v27, 0.0  ;;  %v763_v2 = vmul.f32 1e-05, %v761_v27 }
  0xb2   :  { %vm771_vm12 = vcmp.ge.f32.partialorder %v770_v17, 0.0  ;;  %v772_v21 = vmul.f32 1e-05, %v770_v17  ;;  %v875_v46 = vsub.f32 1.5, %v874_v10  ;;  %v998_v57 = vadd.f32 %v997_v22, %v996_v9 }
  0xb3   :  { %v1001_v7 = vmul.f32 %v995_v59, %v995_v59  ;;  %v1027_v61 = vmul.f32 %v1856_v47, %v984_v60  ;;  %v3155_v38 = vsel %vm762_vm11, %v761_v27, %v763_v2  ;;  %v1028_v42 = vmul.f32 %v1857_v43, %v995_v59 }
  0xb4   :  { %v3157_v14 = vsel %vm771_vm12, %v770_v17, %v772_v21  ;;  %v1071_v33 = vmul.f32 0.5, %v1070_v19  ;;  %v765_v40 = vand.u32 2147483647, %v3155_v38  ;;  %v876_v20 = vmul.f32 %v3111_v29, %v875_v46 }
  0xb5   :  { %v774_v1 = vand.u32 2147483647, %v3157_v14  ;;  %v1000_v45 = vadd.f32 %v999_v8, %v998_v57  ;;  %vm1075_vm14 = vweird.f32 %v3107_v26  ;;  %v1104_v47 = vstv %s3118_s27  ;;  %s3375_s27 = sld [smem:[#allocation5 + $0x3e]] }
  0xb6   :  { %v1072_v28 = vsub.f32 1.5, %v1071_v33  ;;  %v1108_v12 = vstv %s3125_s22  ;;  %v880_v9 = vsel %vm879_vm13, %v3111_v29, %v876_v20  ;;  %v1111_v48 = vstv %s3134_s24  ;;  %vm1076_vm15 = vmor %vm1074_vm8, %vm1075_vm14  ;;  %s3382_s22 = sld [smem:[#allocation5 + $0x33]] }
  0xb7   :  { %v775_v35 = vadd.f32 %v774_v1, %v765_v40  ;;  %v3174_v43 = vadd.f32 %v1001_v7, %v1000_v45  ;;  %v881_v32 = vmul.f32 %v880_v9, %v2969_v62  ;;  %v3178_v51 = vadd.f32 %v1019_v6, %v1017_v5  ;;  %s3454_s24 = sld [smem:[#allocation5 + $0x20]] }
  0xb8   :  { %v3180_v60 = vadd.f32 %v1028_v42, %v1027_v61  ;;  %v1073_v59 = vmul.f32 %v3107_v26, %v1072_v28  ;;  %v1115_v10 = vstv %s3138_s28  ;;  %v1119_v22 = vstv %s3141_s29  ;;  %s3459_s28 = sld [smem:[#allocation5 + $0x24]] }
  0xb9   :  { %1975 = vrcp.f32 %v775_v35  ;;  %v1122_v19 = vstv %s3151_s30  ;;  %v785_v29 = vand.u32 2147483647, %v775_v35  ;;  %v888_v27 = vmul.f32 %v3057_v36, %v881_v32  ;;  %s3634_s29 = sld [smem:[#allocation5 + $0x1d]] }
  0xba   :  { %v897_v17 = vmul.f32 %v3070_v24, %v881_v32  ;;  %v3191_v8 = vadd.f32 1e-12, %v3174_v43  ;;  %vm781_vm0 = vweird.f32 %v775_v35  ;;  %v1077_v5 = vsel %vm1076_vm15, %v3107_v26, %v1073_v59 }
  0xbb   :  { %v1126_v6 = vstv %s3153_s5  ;;  %v3197_v15 = vadd.f32 %v3074_v11, %v3062_v54  ;;  %v787_v2 = vand.u32 2147483648, %v775_v35  ;;  %v889_v21 = vsel %vm882_vm10, %v888_v27, 0.0  ;;  %s3466_s5 = sld [smem:[#allocation5 + $0x2c]] }
  0xbc   :  { %v898_v36 = vsel %vm882_vm10, %v897_v17, 0.0  ;;  %1977 = vrsqrt.f32 %v3191_v8  ;;  %vm890_vm1 = vcmp.ge.f32.partialorder %v889_v21, 0.0  ;;  %v891_v24 = vmul.f32 1e-05, %v889_v21 }
  0xbd   :  { %vm899_vm2 = vcmp.ge.f32.partialorder %v898_v36, 0.0  ;;  %v900_v26 = vmul.f32 1e-05, %v898_v36  ;;  %vm3206_vm3 = vcmp.eq.f32.partialorder %v785_v29, 8.507059e+37  ;;  %v1078_v54 = vmul.f32 %v1077_v5, %v2920_v4 }
  0xbe   :  { %v1079_v11 = vmul.f32 %v1077_v5, %v2913_v56  ;;  %v1197_v57 = vmul.f32 %v3197_v15, %v3197_v15  ;;  %v1198_v39 = vmul.f32 %v3043_v16, %v3043_v16  ;;  %v3216_v61 = vsel %vm890_vm1, %v889_v21, %v891_v24 }
  0xbf   :  { %v1976_v7 = vpop.eup %1975  ;;  %v3218_v42 = vsel %vm899_vm2, %v898_v36, %v900_v26  ;;  %v1324_v33 = vmul.f32 %v3197_v15, %v2493_v63  ;;  %v1326_v20 = vmul.f32 %v3043_v16, %v2495_v58  ;;  %v788_v56 = vor.u32 1.1754944e-38, %v787_v2 }
  0xc0   :  { %v777_v4 = vmul.f32 %v1976_v7, %v775_v35  ;;  %v893_v45 = vand.u32 2147483647, %v3216_v61  ;;  %v902_v28 = vand.u32 2147483647, %v3218_v42  ;;  %v1082_v9 = vmul.f32 %v1078_v54, %v2827_v53 }
  0xc1   :  { %v1083_v32 = vmul.f32 %v1079_v11, %v2827_v53  ;;  %v1084_v59 = vmul.f32 %v1079_v11, %v2830_v55  ;;  %v3229_v29 = vadd.f32 %v1198_v39, %v1197_v57  ;;  %vm782_vm4 = vweird.f32 %v1976_v7 }
  0xc2   :  { %v1978_v63 = vpop.eup %1977  ;;  %v778_v27 = vsub.f32 1.0, %v777_v4  ;;  %v3235_v58 = vadd.f32 %v902_v28, %v893_v45  ;;  %v3237_v17 = vadd.f32 %v1326_v20, %v1324_v33  ;;  %vm1010_vm5 = vweird.f32 %v3191_v8  ;;  %vm3248_vm7 = vmor %vm781_vm0, %vm782_vm4 }
  0xc3   :  { %v1005_v5 = vmul.f32 %v1978_v63, %v3191_v8  ;;  %v1087_v53 = vmul.f32 %v1086_v44, %v1082_v9  ;;  %v3902_v55 = vstv %s3018_s17  ;;  %vm1011_vm6 = vweird.f32 %v1978_v63  ;;  %s3332_s17 = sld [smem:[#allocation5 + $0x3c]] }
  0xc4   :  { %v1090_v2 = vmul.f32 %v3902_v55, %v1083_v32  ;;  %v779_v21 = vmul.f32 %v1976_v7, %v778_v27  ;;  %1979 = vrcp.f32 %v3235_v58  ;;  %v913_v36 = vand.u32 2147483647, %v3235_v58  ;;  %vm3289_vm11 = vmor %vm1010_vm5, %vm1011_vm6 }
  0xc5   :  { %v915_v26 = vand.u32 2147483648, %v3235_v58  ;;  %v1006_v54 = vmul.f32 %v1978_v63, %v1005_v5  ;;  %v3905_v11 = vstv %s3026_s20  ;;  %vm909_vm8 = vweird.f32 %v3235_v58  ;;  %s3353_s20 = sld [smem:[#allocation5 + $0x3d]] }
  0xc6   :  { %v1091_v44 = vadd.f32 %v1090_v2, %v1087_v53  ;;  %v1094_v57 = vmul.f32 %v3905_v11, %v1084_v59  ;;  %v780_v39 = vadd.f32 %v1976_v7, %v779_v21  ;;  %v3906_v33 = vstv %s3032_s2  ;;  %s3774_s2 = sld [smem:[#allocation5 + $0x3]] }
  0xc7   :  { %v1098_v20 = vmul.f32 %v3906_v33, %v1082_v9  ;;  %v1101_v35 = vmul.f32 %v1100_v3, %v1083_v32  ;;  %v3260_v4 = vor.u32 1.1754944e-38, %v915_v26  ;;  %v1007_v27 = vmul.f32 0.5, %v1006_v54 }
  0xc8   :  { %vm1015_vm9 = vcmp.eq.f32.partialorder %v3174_v43, %v3174_v43  ;;  %v1095_v55 = vadd.f32 %v1094_v57, %v1091_v44  ;;  %v1105_v5 = vmul.f32 %v1104_v47, %v1084_v59  ;;  %v784_v53 = vsel %vm3248_vm7, %v1976_v7, %v780_v39 }
  0xc9   :  { %v1102_v2 = vadd.f32 %v1101_v35, %v1098_v20  ;;  %v1109_v21 = vmul.f32 %v1108_v12, %v1082_v9  ;;  %v1112_v11 = vmul.f32 %v1111_v48, %v1083_v32  ;;  %v789_v3 = vsel %vm3206_vm3, %v788_v56, %v784_v53 }
  0xca   :  { %vm3274_vm10 = vcmp.eq.f32.partialorder %v913_v36, 8.507059e+37  ;;  %v1008_v54 = vsub.f32 1.5, %v1007_v27  ;;  %v1116_v44 = vmul.f32 %v1115_v10, %v1084_v59  ;;  %v1120_v47 = vmul.f32 %v1119_v22, %v1082_v9  ;;  %v1980_v7 = vpop.eup %1979  ;;  %v1872_v10 = vld [vmem:[%s3868_s3 + $0x40] sm:$0xff] }
  0xcb   :  { %v790_v12 = vmul.f32 %v789_v3, %v765_v40  ;;  %v793_v48 = vmul.f32 %v789_v3, %v774_v1  ;;  %v1106_v56 = vadd.f32 %v1105_v5, %v1102_v2  ;;  %v1113_v36 = vadd.f32 %v1112_v11, %v1109_v21  ;;  %v1873_v40 = vld [vmem:[%s3868_s3 + $0x48] sm:$0xff] }
  0xcc   :  { %v905_v22 = vmul.f32 %v1980_v7, %v3235_v58  ;;  %vm910_vm12 = vweird.f32 %v1980_v7  ;;  %v1009_v38 = vmul.f32 %v1978_v63, %v1008_v54  ;;  %v1123_v14 = vmul.f32 %v1122_v19, %v1083_v32 }
  0xcd   :  { %1826 = vst [vmem:[%s3869_s4 + $0x70] sm:$0xff] %v790_v12  ;;  %v1117_v1 = vadd.f32 %v1116_v44, %v1113_v36  ;;  %v1127_v8 = vmul.f32 %v1126_v6, %v1084_v59  ;;  %v1129_v9 = vmul.f32 %v1095_v55, %v1095_v55  ;;  %v1130_v24 = vmul.f32 %v1106_v56, %v1106_v56  ;;  %vm3321_vm13 = vmor %vm909_vm8, %vm910_vm12 }
  0xce   :  { %1827 = vst [vmem:[%s3869_s4 + $0x78] sm:$0xff] %v793_v48  ;;  %v906_v57 = vsub.f32 1.0, %v905_v22  ;;  %v1013_v19 = vsel %vm3289_vm11, %v1978_v63, %v1009_v38  ;;  %v1124_v32 = vadd.f32 %v1123_v14, %v1120_v47  ;;  %v1150_v39 = vmul.f32 %v1872_v10, %v1095_v55 }
  0xcf   :  { %v1014_v33 = vmul.f32 %v1013_v19, %v2969_v62  ;;  %v1131_v20 = vadd.f32 %v1130_v24, %v1129_v9  ;;  %v1132_v35 = vmul.f32 %v1117_v1, %v1117_v1  ;;  %v1152_v27 = vmul.f32 %v1873_v40, %v1106_v56 }
  0xd0   :  { %v907_v5 = vmul.f32 %v1980_v7, %v906_v57  ;;  %v1128_v53 = vadd.f32 %v1127_v8, %v1124_v32  ;;  %v1160_v6 = vmul.f32 %v1872_v10, %v1117_v1  ;;  %v3314_v59 = vadd.f32 1e-12, %v3229_v29 }
  0xd1   :  { %v1021_v55 = vmul.f32 %v3178_v51, %v1014_v33  ;;  %v1030_v2 = vmul.f32 %v3180_v60, %v1014_v33  ;;  %v1133_v21 = vadd.f32 %v1132_v35, %v1131_v20  ;;  %v3327_v11 = vadd.f32 %v1152_v27, %v1150_v39 }
  0xd2   :  { %v908_v29 = vadd.f32 %v1980_v7, %v907_v5  ;;  %v1134_v3 = vmul.f32 %v1128_v53, %v1128_v53  ;;  %v1161_v54 = vmul.f32 %v1873_v40, %v1128_v53  ;;  %1981 = vrsqrt.f32 %v3314_v59 }
  0xd3   :  { %v1022_v58 = vsel %vm1015_vm9, %v1021_v55, 0.0  ;;  %v1031_v51 = vsel %vm1015_vm9, %v1030_v2, 0.0  ;;  %v3392_v10 = vmul.f32 %v3043_v16, %v2497_v23  ;;  %vm1207_vm0 = vweird.f32 %v3314_v59 }
  0xd4   :  { %v912_v60 = vsel %vm3321_vm13, %v1980_v7, %v908_v29  ;;  %vm1023_vm14 = vcmp.ge.f32.partialorder %v1022_v58, 0.0  ;;  %v1024_v44 = vmul.f32 1e-05, %v1022_v58  ;;  %vm1032_vm15 = vcmp.ge.f32.partialorder %v1031_v51, 0.0 }
  0xd5   :  { %v917_v47 = vsel %vm3274_vm10, %v3260_v4, %v912_v60  ;;  %v1033_v12 = vmul.f32 1e-05, %v1031_v51  ;;  %v3349_v48 = vadd.f32 %v1134_v3, %v1133_v21  ;;  %v3351_v46 = vadd.f32 %v1161_v54, %v1160_v6 }
  0xd6   :  { %v918_v43 = vmul.f32 %v917_v47, %v893_v45  ;;  %v921_v7 = vmul.f32 %v917_v47, %v902_v28  ;;  %v3359_v56 = vsel %vm1023_vm14, %v1022_v58, %v1024_v44  ;;  %v1219_v38 = vstv %s3316_s14  ;;  %s3736_s14 = sld [smem:[#allocation5]] }
  0xd7   :  { %v1026_v26 = vand.u32 2147483647, %v3359_v56  ;;  %v3364_v4 = vsel %vm1032_vm15, %v1031_v51, %v1033_v12  ;;  %v3367_v36 = vadd.f32 1e-12, %v3349_v48  ;;  %v1222_v14 = vstv %s3329_s15  ;;  %s3497_s15 = sld [smem:[#allocation5 + $0x22]] }
  0xd8   :  { %v1982_v61 = vpop.eup %1981  ;;  %1842 = vst [vmem:[%s3869_s4 + $0x60] sm:$0xff] %v918_v43  ;;  %v1035_v42 = vand.u32 2147483647, %v3364_v4  ;;  %v1330_v1 = vmul.f32 %v3237_v17, %v3237_v17  ;;  %v1331_v23 = vmul.f32 %v3392_v10, %v3392_v10  ;;  %v1226_v8 = vstv %s3332_s17  ;;  %s3503_s17 = sld [smem:[#allocation5 + $0x26]] }
  0xd9   :  { %1843 = vst [vmem:[%s3869_s4 + $0x68] sm:$0xff] %v921_v7  ;;  %1983 = vrsqrt.f32 %v3367_v36  ;;  %v1202_v45 = vmul.f32 %v1982_v61, %v3314_v59  ;;  %vm1208_vm1 = vweird.f32 %v1982_v61  ;;  %v1230_v9 = vstv %s3340_s18  ;;  %s3510_s18 = sld [smem:[#allocation5 + $0x2e]] }
  0xda   :  { %v1036_v28 = vadd.f32 %v1035_v42, %v1026_v26  ;;  %v1457_v24 = vmul.f32 %v3237_v17, %v2474_v30  ;;  %v1459_v57 = vmul.f32 %v3392_v10, %v2481_v52  ;;  %vm1143_vm2 = vweird.f32 %v3367_v36  ;;  %vm1209_vm3 = vmor %vm1207_vm0, %vm1208_vm1 }
  0xdb   :  { %v1203_v22 = vmul.f32 %v1982_v61, %v1202_v45  ;;  %v1233_v39 = vstv %s3344_s19  ;;  %v1332_v33 = vadd.f32 %v1331_v23, %v1330_v1  ;;  %v1237_v35 = vstv %s3353_s20  ;;  %s3514_s19 = sld [smem:[#allocation5 + $0x23]] }
  0xdc   :  { %1985 = vrcp.f32 %v1036_v28  ;;  %v1241_v27 = vstv %s3361_s1  ;;  %v3416_v5 = vadd.f32 %v1459_v57, %v1457_v24  ;;  %v1046_v30 = vand.u32 2147483647, %v1036_v28  ;;  %s3517_s20 = sld [smem:[#allocation5 + $0x27]] }
  0xdd   :  { %v1204_v40 = vmul.f32 0.5, %v1203_v22  ;;  %v1244_v52 = vstv %s3369_s25  ;;  %v1248_v6 = vstv %s3375_s27  ;;  %vm1042_vm4 = vweird.f32 %v1036_v28  ;;  %s3527_s1 = sld [smem:[#allocation5 + $0x2f]] }
  0xde   :  { %v1252_v2 = vstv %s3382_s22  ;;  %v1255_v21 = vstv %s3388_s21  ;;  %v1048_v3 = vand.u32 2147483648, %v1036_v28  ;;  %v3422_v58 = vadd.f32 1e-12, %v1332_v33  ;;  %s3594_s25 = sld [smem:[#allocation5 + $0x10]] }
  0xdf   :  { %v1984_v19 = vpop.eup %1983  ;;  %v1205_v32 = vsub.f32 1.5, %v1204_v40  ;;  %vm1148_vm6 = vcmp.eq.f32.partialorder %v3349_v48, %v3349_v48  ;;  %vm3428_vm8 = vcmp.eq.f32.partialorder %v1046_v30, 8.507059e+37  ;;  %v1259_v12 = vstv %s3397_s23  ;;  %s3610_s22 = sld [smem:[#allocation5 + $0x1c]] }
  0xe0   :  { %v1138_v20 = vmul.f32 %v1984_v19, %v3367_v36  ;;  %vm1144_vm5 = vweird.f32 %v1984_v19  ;;  %v1049_v40 = vor.u32 1.1754944e-38, %v1048_v3  ;;  %1987 = vrsqrt.f32 %v3422_v58  ;;  %s3624_s21 = sld [smem:[#allocation5 + $0x11]] }
  0xe1   :  { %v1206_v53 = vmul.f32 %v1982_v61, %v1205_v32  ;;  %vm3438_vm9 = vmor %vm1143_vm2, %vm1144_vm5  ;;  %vm1340_vm13 = vweird.f32 %v3422_v58  ;;  %s3627_s23 = sld [smem:[#allocation5 + $0x15]] }
  0xe2   :  { %v1986_v63 = vpop.eup %1985  ;;  %v1139_v55 = vmul.f32 %v1984_v19, %v1138_v20 }
  0xe3   :  { %v1038_v29 = vmul.f32 %v1986_v63, %v1036_v28  ;;  %v1210_v54 = vsel %vm1209_vm3, %v1982_v61, %v1206_v53  ;;  %vm1043_vm7 = vweird.f32 %v1986_v63 }
  0xe4   :  { %v1140_v59 = vmul.f32 0.5, %v1139_v55  ;;  %v1211_v51 = vmul.f32 %v1210_v54, %v3197_v15  ;;  %v1212_v60 = vmul.f32 %v1210_v54, %v3043_v16  ;;  %v3445_v15 = vmul.f32 %v3392_v10, %v2491_v37  ;;  %vm3448_vm10 = vmor %vm1042_vm4, %vm1043_vm7 }
  0xe5   :  { %v1039_v44 = vsub.f32 1.0, %v1038_v29 }
  0xe6   :  { %v1141_v43 = vsub.f32 1.5, %v1140_v59  ;;  %v1215_v7 = vmul.f32 %v1211_v51, %v2781_v18  ;;  %v1216_v61 = vmul.f32 %v1212_v60, %v2781_v18  ;;  %v1217_v45 = vmul.f32 %v1212_v60, %v2784_v13  ;;  %v1889_v51 = vld [vmem:[%s3868_s3 + $0x38] sm:$0xff] }
  0xe7   :  { %v1040_v22 = vmul.f32 %v1986_v63, %v1039_v44 }
  0xe8   :  { %v1142_v18 = vmul.f32 %v1984_v19, %v1141_v43  ;;  %v1220_v13 = vmul.f32 %v1219_v38, %v1215_v7  ;;  %v1223_v23 = vmul.f32 %v1222_v14, %v1216_v61  ;;  %v1227_v24 = vmul.f32 %v1226_v8, %v1217_v45 }
  0xe9   :  { %v1041_v36 = vadd.f32 %v1986_v63, %v1040_v22  ;;  %v1231_v57 = vmul.f32 %v1230_v9, %v1215_v7  ;;  %v1234_v32 = vmul.f32 %v1233_v39, %v1216_v61  ;;  %v1238_v33 = vmul.f32 %v1237_v35, %v1217_v45  ;;  %v1888_v35 = vld [vmem:[%s3868_s3 + $0x30] sm:$0xff] }
  0xea   :  { %v1146_v20 = vsel %vm3438_vm9, %v1984_v19, %v1142_v18  ;;  %v1224_v30 = vadd.f32 %v1223_v23, %v1220_v13  ;;  %v1242_v53 = vmul.f32 %v1241_v27, %v1215_v7  ;;  %v1245_v37 = vmul.f32 %v1244_v52, %v1216_v61  ;;  %v3468_v27 = vpop.eup %1987 }
  0xeb   :  { %v1045_v28 = vsel %vm3448_vm10, %v1986_v63, %v1041_v36  ;;  %v1147_v55 = vmul.f32 %v1146_v20, %v2969_v62  ;;  %v1235_v38 = vadd.f32 %v1234_v32, %v1231_v57  ;;  %v1249_v14 = vmul.f32 %v1248_v6, %v1217_v45 }
  0xec   :  { %v1050_v8 = vsel %vm3428_vm8, %v1049_v40, %v1045_v28  ;;  %v1228_v9 = vadd.f32 %v1227_v24, %v1224_v30  ;;  %v1246_v39 = vadd.f32 %v1245_v37, %v1242_v53  ;;  %v1253_v19 = vmul.f32 %v1252_v2, %v1215_v7 }
  0xed   :  { %v1051_v52 = vmul.f32 %v1050_v8, %v1026_v26  ;;  %v1054_v6 = vmul.f32 %v1050_v8, %v1035_v42  ;;  %v1154_v63 = vmul.f32 %v3327_v11, %v1147_v55  ;;  %v1163_v29 = vmul.f32 %v3351_v46, %v1147_v55 }
  0xee   :  { %v1239_v2 = vadd.f32 %v1238_v33, %v1235_v38  ;;  %v1250_v3 = vadd.f32 %v1249_v14, %v1246_v39  ;;  %v1256_v54 = vmul.f32 %v1255_v21, %v1216_v61  ;;  %v1260_v59 = vmul.f32 %v1259_v12, %v1217_v45 }
  0xef   :  { %1858 = vst [vmem:[%s3869_s4 + $0x50] sm:$0xff] %v1051_v52  ;;  %v1155_v11 = vsel %vm1148_vm6, %v1154_v63, 0.0  ;;  %v1164_v46 = vsel %vm1148_vm6, %v1163_v29, 0.0  ;;  %v1262_v56 = vmul.f32 %v1228_v9, %v1228_v9  ;;  %v1283_v26 = vmul.f32 %v1888_v35, %v1228_v9 }
  0xf0   :  { %1859 = vst [vmem:[%s3869_s4 + $0x58] sm:$0xff] %v1054_v6  ;;  %vm1156_vm11 = vcmp.ge.f32.partialorder %v1155_v11, 0.0  ;;  %v1157_v4 = vmul.f32 1e-05, %v1155_v11  ;;  %vm1165_vm12 = vcmp.ge.f32.partialorder %v1164_v46, 0.0  ;;  %v1257_v42 = vadd.f32 %v1256_v54, %v1253_v19 }
  0xf1   :  { %v1166_v21 = vmul.f32 1e-05, %v1164_v46  ;;  %v1263_v60 = vmul.f32 %v1239_v2, %v1239_v2  ;;  %v1265_v44 = vmul.f32 %v1250_v3, %v1250_v3  ;;  %v1285_v47 = vmul.f32 %v1889_v51, %v1239_v2 }
  0xf2   :  { %v3499_v48 = vsel %vm1156_vm11, %v1155_v11, %v1157_v4  ;;  %v1261_v12 = vadd.f32 %v1260_v59, %v1257_v42  ;;  %v1293_v43 = vmul.f32 %v1888_v35, %v1250_v3  ;;  %v1335_v7 = vmul.f32 %v3468_v27, %v3422_v58 }
  0xf3   :  { %v1159_v61 = vand.u32 2147483647, %v3499_v48  ;;  %v3506_v45 = vsel %vm1165_vm12, %v1164_v46, %v1166_v21  ;;  %v1264_v22 = vadd.f32 %v1263_v60, %v1262_v56  ;;  %v3508_v40 = vadd.f32 %v1285_v47, %v1283_v26 }
  0xf4   :  { %v1168_v16 = vand.u32 2147483647, %v3506_v45  ;;  %v1267_v1 = vmul.f32 %v1261_v12, %v1261_v12  ;;  %v1294_v18 = vmul.f32 %v1889_v51, %v1261_v12  ;;  %v1336_v13 = vmul.f32 %v3468_v27, %v1335_v7 }
  0xf5   :  { %v1266_v23 = vadd.f32 %v1265_v44, %v1264_v22  ;;  %v1463_v24 = vmul.f32 %v3416_v5, %v3416_v5  ;;  %v1464_v33 = vmul.f32 %v3445_v15, %v3445_v15  ;;  %vm1341_vm14 = vweird.f32 %v3468_v27 }
  0xf6   :  { %v1169_v36 = vadd.f32 %v1168_v16, %v1159_v61  ;;  %v3525_v57 = vadd.f32 %v1294_v18, %v1293_v43  ;;  %v1337_v32 = vmul.f32 0.5, %v1336_v13  ;;  %v1590_v30 = vmul.f32 %v3416_v5, %v2383_v25  ;;  %vm1342_vm15 = vmor %vm1340_vm13, %vm1341_vm14 }
  0xf7   :  { %v3531_v20 = vadd.f32 %v1267_v1, %v1266_v23  ;;  %v1592_v53 = vmul.f32 %v3445_v15, %v2393_v49  ;;  %v1352_v37 = vstv %s3454_s24  ;;  %v1355_v28 = vstv %s3459_s28 }
  0xf8   :  { %1989 = vrcp.f32 %v1169_v36  ;;  %v1363_v55 = vstv %s3476_s6  ;;  %v1338_v14 = vsub.f32 1.5, %v1337_v32  ;;  %v1465_v8 = vadd.f32 %v1464_v33, %v1463_v24  ;;  %s3644_s6 = sld [smem:[#allocation5 + $0x12]] }
  0xf9   :  { %v3542_v38 = vadd.f32 1e-12, %v3531_v20  ;;  %v3546_v25 = vmul.f32 %v3445_v15, %v2395_v50  ;;  %v1359_v49 = vstv %s3466_s5  ;;  %v1366_v9 = vstv %s3481_s9  ;;  %s3663_s9 = sld [smem:[#allocation5 + $0x13]] }
  0xfa   :  { %v1370_v39 = vstv %s3492_s11  ;;  %v3553_v19 = vadd.f32 %v1592_v53, %v1590_v30  ;;  %v1179_v35 = vand.u32 2147483647, %v1169_v36  ;;  %v1181_v52 = vand.u32 2147483648, %v1169_v36 }
  0xfb   :  { %1991 = vrsqrt.f32 %v3542_v38  ;;  %v1339_v6 = vmul.f32 %v3468_v27, %v1338_v14  ;;  %v1374_v63 = vstv %s3497_s15  ;;  %v1377_v29 = vstv %s3503_s17 }
  0xfc   :  { %v1381_v2 = vstv %s3510_s18  ;;  %v1385_v50 = vstv %s3514_s19  ;;  %v1388_v58 = vstv %s3517_s20  ;;  %v3563_v54 = vadd.f32 1e-12, %v1465_v8  ;;  %s3742_s18 = sld [smem:[#allocation5 + $0x4]] }
  0xfd   :  { %v1343_v3 = vsel %vm1342_vm15, %v3468_v27, %v1339_v6  ;;  %v1597_v59 = vmul.f32 %v3546_v25, %v3546_v25  ;;  %vm1175_vm0 = vweird.f32 %v1169_v36  ;;  %v1392_v56 = vstv %s3527_s1  ;;  %v1905_v6 = vld [vmem:[%s3868_s3 + $0x28] sm:$0xff]  ;;  %s3753_s19 = sld [smem:[#allocation5 + $0x1]] }
  0xfe   :  { %v1990_v51 = vpop.eup %1989  ;;  %v1344_v11 = vmul.f32 %v1343_v3, %v3237_v17  ;;  %v1345_v46 = vmul.f32 %v1343_v3, %v3392_v10  ;;  %vm3570_vm1 = vcmp.eq.f32.partialorder %v1179_v35, 8.507059e+37  ;;  %v1182_v42 = vor.u32 1.1754944e-38, %v1181_v52  ;;  %s3755_s20 = sld [smem:[#allocation5 + $0x5]] }
  0xff   :  { %v1171_v26 = vmul.f32 %v1990_v51, %v1169_v36  ;;  %v1596_v27 = vmul.f32 %v3553_v19, %v3553_v19  ;;  %vm1276_vm2 = vweird.f32 %v3542_v38  ;;  %vm1176_vm3 = vweird.f32 %v1990_v51  ;;  %s3760_s1 = sld [smem:[#allocation5 + $0x2]] }
 0x100   :  { %v1348_v21 = vmul.f32 %v1344_v11, %v2751_v34  ;;  %v1349_v60 = vmul.f32 %v1345_v46, %v2751_v34  ;;  %v1350_v17 = vmul.f32 %v1345_v46, %v2754_v31  ;;  %1993 = vrsqrt.f32 %v3563_v54  ;;  %vm3589_vm5 = vmor %vm1175_vm0, %vm1176_vm3 }
 0x101   :  { %v3580_v44 = vpop.eup %1991  ;;  %v1172_v10 = vsub.f32 1.0, %v1171_v26  ;;  %v3583_v47 = vadd.f32 %v1597_v59, %v1596_v27  ;;  %vm1281_vm7 = vcmp.eq.f32.partialorder %v3531_v20, %v3531_v20  ;;  %vm1473_vm8 = vweird.f32 %v3563_v54 }
 0x102   :  { %v1271_v12 = vmul.f32 %v3580_v44, %v3542_v38  ;;  %vm1277_vm4 = vweird.f32 %v3580_v44  ;;  %v1353_v43 = vmul.f32 %v1352_v37, %v1348_v21  ;;  %v1356_v7 = vmul.f32 %v1355_v28, %v1349_v60 }
 0x103   :  { %v1173_v22 = vmul.f32 %v1990_v51, %v1172_v10  ;;  %v1360_v1 = vmul.f32 %v1359_v49, %v1350_v17  ;;  %v1364_v34 = vmul.f32 %v1363_v55, %v1348_v21  ;;  %v1367_v18 = vmul.f32 %v1366_v9, %v1349_v60  ;;  %vm3620_vm6 = vmor %vm1276_vm2, %vm1277_vm4 }
 0x104   :  { %v1272_v13 = vmul.f32 %v3580_v44, %v1271_v12  ;;  %v1357_v23 = vadd.f32 %v1356_v7, %v1353_v43  ;;  %v1371_v24 = vmul.f32 %v1370_v39, %v1350_v17  ;;  %v1375_v32 = vmul.f32 %v1374_v63, %v1348_v21  ;;  %v1904_v39 = vld [vmem:[%s3868_s3 + $0x20] sm:$0xff] }
 0x105   :  { %v1174_v33 = vadd.f32 %v1990_v51, %v1173_v22  ;;  %v1368_v30 = vadd.f32 %v1367_v18, %v1364_v34  ;;  %v1378_v53 = vmul.f32 %v1377_v29, %v1349_v60  ;;  %v1382_v14 = vmul.f32 %v1381_v2, %v1350_v17 }
 0x106   :  { %v1273_v37 = vmul.f32 0.5, %v1272_v13  ;;  %v1361_v28 = vadd.f32 %v1360_v1, %v1357_v23  ;;  %v1386_v8 = vmul.f32 %v1385_v50, %v1348_v21  ;;  %v1389_v49 = vmul.f32 %v1388_v58, %v1349_v60  ;;  %v3596_v36 = vpop.eup %1993 }
 0x107   :  { %v1178_v55 = vsel %vm3589_vm5, %v1990_v51, %v1174_v33  ;;  %v1372_v9 = vadd.f32 %v1371_v24, %v1368_v30  ;;  %v1379_v35 = vadd.f32 %v1378_v53, %v1375_v32  ;;  %v1393_v52 = vmul.f32 %v1392_v56, %v1350_v17 }
 0x108   :  { %v1183_v63 = vsel %vm3570_vm1, %v1182_v42, %v1178_v55  ;;  %v1274_v29 = vsub.f32 1.5, %v1273_v37  ;;  %v1390_v2 = vadd.f32 %v1389_v49, %v1386_v8  ;;  %v1395_v50 = vmul.f32 %v1361_v28, %v1361_v28 }
 0x109   :  { %v1184_v3 = vmul.f32 %v1183_v63, %v1159_v61  ;;  %v1187_v58 = vmul.f32 %v1183_v63, %v1168_v16  ;;  %v1383_v51 = vadd.f32 %v1382_v14, %v1379_v35  ;;  %v1396_v11 = vmul.f32 %v1372_v9, %v1372_v9 }
 0x10a   :  { %v1275_v46 = vmul.f32 %v3580_v44, %v1274_v29  ;;  %v1394_v56 = vadd.f32 %v1393_v52, %v1390_v2  ;;  %v1416_v48 = vmul.f32 %v1904_v39, %v1361_v28  ;;  %v1418_v61 = vmul.f32 %v1905_v6, %v1372_v9 }
 0x10b   :  { %1874 = vst [vmem:[%s3869_s4 + $0x40] sm:$0xff] %v1184_v3  ;;  %v1397_v45 = vadd.f32 %v1396_v11, %v1395_v50  ;;  %v1398_v16 = vmul.f32 %v1383_v51, %v1383_v51  ;;  %v1426_v38 = vmul.f32 %v1904_v39, %v1383_v51  ;;  %v1468_v26 = vmul.f32 %v3596_v36, %v3563_v54 }
 0x10c   :  { %1875 = vst [vmem:[%s3869_s4 + $0x48] sm:$0xff] %v1187_v58  ;;  %v1279_v4 = vsel %vm3620_vm6, %v3580_v44, %v1275_v46  ;;  %v1400_v42 = vmul.f32 %v1394_v56, %v1394_v56  ;;  %v3642_v27 = vadd.f32 %v1418_v61, %v1416_v48  ;;  %v1427_v21 = vmul.f32 %v1905_v6, %v1394_v56 }
 0x10d   :  { %v1280_v60 = vmul.f32 %v1279_v4, %v2969_v62  ;;  %v1399_v17 = vadd.f32 %v1398_v16, %v1397_v45  ;;  %v1469_v10 = vmul.f32 %v3596_v36, %v1468_v26  ;;  %v3657_v44 = vadd.f32 1e-12, %v3583_v47 }
 0x10e   :  { %v3652_v12 = vadd.f32 %v1427_v21, %v1426_v38  ;;  %vm1474_vm9 = vweird.f32 %v3596_v36  ;;  %v1485_v23 = vstv %s3594_s25  ;;  %v1488_v24 = vstv %s3606_s16  ;;  %s3770_s25 = sld [smem:[#allocation5 + $0x6]] }
 0x10f   :  { %v1287_v43 = vmul.f32 %v3508_v40, %v1280_v60  ;;  %v1296_v7 = vmul.f32 %v3525_v57, %v1280_v60  ;;  %v3661_v22 = vadd.f32 %v1400_v42, %v1399_v17  ;;  %v1470_v1 = vmul.f32 0.5, %v1469_v10  ;;  %vm1475_vm12 = vmor %vm1473_vm8, %vm1474_vm9 }
 0x110   :  { %1995 = vrsqrt.f32 %v3657_v44  ;;  %v1496_v53 = vstv %s3624_s21  ;;  %v1492_v37 = vstv %s3610_s22  ;;  %v1499_v28 = vstv %s3627_s23 }
 0x111   :  { %v1288_v20 = vsel %vm1281_vm7, %v1287_v43, 0.0  ;;  %v1297_v47 = vsel %vm1281_vm7, %v1296_v7, 0.0  ;;  %v3670_v34 = vadd.f32 1e-12, %v3661_v22  ;;  %v1471_v18 = vsub.f32 1.5, %v1470_v1  ;;  %v1920_v7 = vld [vmem:[%s3868_s3 + $0x10] sm:$0xff] }
 0x112   :  { %vm1289_vm10 = vcmp.ge.f32.partialorder %v1288_v20, 0.0  ;;  %v1290_v40 = vmul.f32 1e-05, %v1288_v20  ;;  %vm1298_vm11 = vcmp.ge.f32.partialorder %v1297_v47, 0.0  ;;  %v1299_v57 = vmul.f32 1e-05, %v1297_v47 }
 0x113   :  { %1997 = vrsqrt.f32 %v3670_v34  ;;  %v1472_v30 = vmul.f32 %v3596_v36, %v1471_v18  ;;  %v1503_v8 = vstv %s3634_s29  ;;  %v1507_v54 = vstv %s3644_s6 }
 0x114   :  { %v3676_v31 = vsel %vm1289_vm10, %v1288_v20, %v1290_v40  ;;  %v3678_v13 = vsel %vm1298_vm11, %v1297_v47, %v1299_v57  ;;  %v1510_v9 = vstv %s3648_s7  ;;  %v1514_v6 = vstv %s3654_s8  ;;  %v1921_v40 = vld [vmem:[%s3868_s3 + $0x18] sm:$0xff] }
 0x115   :  { %v1292_v32 = vand.u32 2147483647, %v3676_v31  ;;  %v1301_v33 = vand.u32 2147483647, %v3678_v13  ;;  %v1476_v55 = vsel %vm1475_vm12, %v3596_v36, %v1472_v30  ;;  %v1518_v63 = vstv %s3663_s9 }
 0x116   :  { %v3688_v14 = vpop.eup %1995  ;;  %v1477_v52 = vmul.f32 %v1476_v55, %v3416_v5  ;;  %v1478_v39 = vmul.f32 %v1476_v55, %v3445_v15  ;;  %vm1409_vm13 = vweird.f32 %v3670_v34  ;;  %v1521_v2 = vstv %s3666_s10 }
 0x117   :  { %v3698_v49 = vadd.f32 %v1301_v33, %v1292_v32  ;;  %v1601_v35 = vmul.f32 %v3688_v14, %v3657_v44  ;;  %v1525_v50 = vstv %s3673_s0  ;;  %vm1414_vm1 = vcmp.eq.f32.partialorder %v3661_v22, %v3661_v22 }
 0x118   :  { %v1481_v5 = vmul.f32 %v1477_v52, %v2700_v41  ;;  %v1482_v15 = vmul.f32 %v1478_v39, %v2700_v41  ;;  %v1483_v59 = vmul.f32 %v1478_v39, %v2703_v0  ;;  %vm1606_vm2 = vweird.f32 %v3657_v44 }
 0x119   :  { %v3708_v29 = vpop.eup %1997  ;;  %1999 = vrcp.f32 %v3698_v49  ;;  %vm1308_vm14 = vweird.f32 %v3698_v49  ;;  %v1312_v36 = vand.u32 2147483647, %v3698_v49  ;;  %v1314_v58 = vand.u32 2147483648, %v3698_v49 }
 0x11a   :  { %v1404_v3 = vmul.f32 %v3708_v29, %v3670_v34  ;;  %vm1410_vm15 = vweird.f32 %v3708_v29  ;;  %v1602_v51 = vmul.f32 %v3688_v14, %v1601_v35  ;;  %v1486_v46 = vmul.f32 %v1485_v23, %v1481_v5 }
 0x11b   :  { %v1489_v56 = vmul.f32 %v1488_v24, %v1482_v15  ;;  %v1497_v48 = vmul.f32 %v1496_v53, %v1481_v5  ;;  %v1493_v61 = vmul.f32 %v1492_v37, %v1483_v59  ;;  %v1500_v45 = vmul.f32 %v1499_v28, %v1482_v15  ;;  %vm3748_vm5 = vmor %vm1409_vm13, %vm1410_vm15 }
 0x11c   :  { %v1405_v11 = vmul.f32 %v3708_v29, %v1404_v3  ;;  %v1504_v16 = vmul.f32 %v1503_v8, %v1483_v59  ;;  %v1508_v38 = vmul.f32 %v1507_v54, %v1481_v5  ;;  %vm3725_vm0 = vcmp.eq.f32.partialorder %v1312_v36, 8.507059e+37 }
 0x11d   :  { %v1490_v0 = vadd.f32 %v1489_v56, %v1486_v46  ;;  %v1511_v4 = vmul.f32 %v1510_v9, %v1482_v15  ;;  %v1515_v42 = vmul.f32 %v1514_v6, %v1483_v59  ;;  %vm1607_vm3 = vweird.f32 %v3688_v14 }
 0x11e   :  { %v1406_v41 = vmul.f32 0.5, %v1405_v11  ;;  %v1501_v60 = vadd.f32 %v1500_v45, %v1497_v48  ;;  %v1519_v17 = vmul.f32 %v1518_v63, %v1481_v5  ;;  %v1522_v10 = vmul.f32 %v1521_v2, %v1482_v15  ;;  %vm1608_vm7 = vmor %vm1606_vm2, %vm1607_vm3 }
 0x11f   :  { %v2000_v21 = vpop.eup %1999  ;;  %v1526_v43 = vmul.f32 %v1525_v50, %v1483_v59  ;;  %v1494_v47 = vadd.f32 %v1493_v61, %v1490_v0  ;;  %v1512_v23 = vadd.f32 %v1511_v4, %v1508_v38  ;;  %v1603_v30 = vmul.f32 0.5, %v1602_v51 }
 0x120   :  { %v1304_v1 = vmul.f32 %v2000_v21, %v3698_v49  ;;  %vm1309_vm4 = vweird.f32 %v2000_v21  ;;  %v1407_v20 = vsub.f32 1.5, %v1406_v41  ;;  %v1505_v18 = vadd.f32 %v1504_v16, %v1501_v60 }
 0x121   :  { %v1523_v24 = vadd.f32 %v1522_v10, %v1519_v17  ;;  %v1528_v28 = vmul.f32 %v1494_v47, %v1494_v47  ;;  %v1549_v8 = vmul.f32 %v1920_v7, %v1494_v47  ;;  %v1516_v54 = vadd.f32 %v1515_v42, %v1512_v23  ;;  %vm3765_vm6 = vmor %vm1308_vm14, %vm1309_vm4 }
 0x122   :  { %v1305_v53 = vsub.f32 1.0, %v1304_v1  ;;  %v1408_v37 = vmul.f32 %v3708_v29, %v1407_v20  ;;  %v1529_v9 = vmul.f32 %v1505_v18, %v1505_v18  ;;  %v1551_v35 = vmul.f32 %v1921_v40, %v1505_v18 }
 0x123   :  { %v1527_v55 = vadd.f32 %v1526_v43, %v1523_v24  ;;  %v1315_v52 = vor.u32 1.1754944e-38, %v1314_v58  ;;  %v1604_v6 = vsub.f32 1.5, %v1603_v30  ;;  %v1531_v36 = vmul.f32 %v1516_v54, %v1516_v54 }
 0x124   :  { %v1306_v34 = vmul.f32 %v2000_v21, %v1305_v53  ;;  %v1412_v39 = vsel %vm3748_vm5, %v3708_v29, %v1408_v37  ;;  %v1530_v50 = vadd.f32 %v1529_v9, %v1528_v28  ;;  %v3772_v5 = vadd.f32 %v1551_v35, %v1549_v8  ;;  %v1660_v37 = vld [vmem:[%s3868_s3] sm:$0xff]  ;;  %v1931_v28 = vld [vmem:[%s3868_s3 + $0x8] sm:$0xff] }
 0x125   :  { %v1413_v2 = vmul.f32 %v1412_v39, %v2969_v62  ;;  %v1533_v3 = vmul.f32 %v1527_v55, %v1527_v55  ;;  %v1559_v15 = vmul.f32 %v1920_v7, %v1516_v54  ;;  %v1560_v58 = vmul.f32 %v1921_v40, %v1527_v55 }
 0x126   :  { %v1307_v29 = vadd.f32 %v2000_v21, %v1306_v34  ;;  %v1532_v51 = vadd.f32 %v1531_v36, %v1530_v50  ;;  %v1613_v11 = vstv %s3736_s14  ;;  %v1605_v48 = vmul.f32 %v3688_v14, %v1604_v6 }
 0x127   :  { %v1420_v49 = vmul.f32 %v3642_v27, %v1413_v2  ;;  %v1429_v59 = vmul.f32 %v3652_v12, %v1413_v2  ;;  %v3783_v56 = vadd.f32 %v1560_v58, %v1559_v15  ;;  %v1616_v61 = vstv %s3742_s18 }
 0x128   :  { %v1311_v46 = vsel %vm3765_vm6, %v2000_v21, %v1307_v29  ;;  %v3795_v16 = vadd.f32 %v1533_v3, %v1532_v51  ;;  %v1620_v4 = vstv %s3753_s19  ;;  %v1609_v31 = vsel %vm1608_vm7, %v3688_v14, %v1605_v48 }
 0x129   :  { %v1316_v45 = vsel %vm3725_vm0, %v1315_v52, %v1311_v46  ;;  %v1421_v27 = vsel %vm1414_vm1, %v1420_v49, 0.0  ;;  %v1430_v12 = vsel %vm1414_vm1, %v1429_v59, 0.0  ;;  %v1623_v13 = vstv %s3755_s20 }
 0x12a   :  { %v1317_v38 = vmul.f32 %v1316_v45, %v1292_v32  ;;  %v1320_v26 = vmul.f32 %v1316_v45, %v1301_v33  ;;  %vm1422_vm8 = vcmp.ge.f32.partialorder %v1421_v27, 0.0  ;;  %v1423_v41 = vmul.f32 1e-05, %v1421_v27 }
 0x12b   :  { %vm1431_vm9 = vcmp.ge.f32.partialorder %v1430_v12, 0.0  ;;  %v1432_v22 = vmul.f32 1e-05, %v1430_v12  ;;  %v1535_v0 = vadd.f32 1e-12, %v3795_v16  ;;  %v1627_v32 = vstv %s3760_s1 }
 0x12c   :  { %1890 = vst [vmem:[%s3869_s4 + $0x30] sm:$0xff] %v1317_v38  ;;  %v3810_v44 = vsel %vm1422_vm8, %v1421_v27, %v1423_v41  ;;  %v1630_v21 = vstv %s3770_s25  ;;  %v1610_v17 = vmul.f32 %v1609_v31, %v3553_v19  ;;  %v1611_v10 = vmul.f32 %v1609_v31, %v3546_v25 }
 0x12d   :  { %1891 = vst [vmem:[%s3869_s4 + $0x38] sm:$0xff] %v1320_v26  ;;  %v1425_v33 = vand.u32 2147483647, %v3810_v44  ;;  %v3819_v42 = vsel %vm1431_vm9, %v1430_v12, %v1432_v22  ;;  %2001 = vrsqrt.f32 %v1535_v0  ;;  %v1634_v43 = vstv %s3774_s2 }
 0x12e   :  { %v1434_v60 = vand.u32 2147483647, %v3819_v42  ;;  %v1637_v14 = vstv %s3779_s26  ;;  %v1614_v1 = vmul.f32 %v1613_v11, %v1610_v17  ;;  %v1617_v20 = vmul.f32 %v1616_v61, %v1611_v10 }
 0x12f   :  { %v1621_v47 = vmul.f32 %v1620_v4, %v1610_v17  ;;  %v1624_v40 = vmul.f32 %v1623_v13, %v1611_v10  ;;  %v1628_v57 = vmul.f32 %v1627_v32, %v1610_v17  ;;  %v1631_v18 = vmul.f32 %v1630_v21, %v1611_v10 }
 0x130   :  { %v1435_v7 = vadd.f32 %v1434_v60, %v1425_v33  ;;  %v1635_v23 = vmul.f32 %v1634_v43, %v1610_v17  ;;  %v1618_v30 = vadd.f32 %v1617_v20, %v1614_v1  ;;  %v1638_v25 = vmul.f32 %v1637_v14, %v1611_v10 }
 0x131   :  { %v1625_v19 = vadd.f32 %v1624_v40, %v1621_v47  ;;  %v1632_v53 = vadd.f32 %v1631_v18, %v1628_v57  ;;  %vm1542_vm10 = vweird.f32 %v1535_v0  ;;  %vm1547_vm1 = vcmp.eq.f32.partialorder %v3795_v16, %v3795_v16 }
 0x132   :  { %2003 = vrcp.f32 %v1435_v7  ;;  %v1639_v54 = vadd.f32 %v1638_v25, %v1635_v23  ;;  %v1640_v55 = vmul.f32 %v1618_v30, %v1618_v30  ;;  %v1661_v52 = vmul.f32 %v1660_v37, %v1618_v30 }
 0x133   :  { %v2002_v24 = vpop.eup %2001  ;;  %v1641_v9 = vmul.f32 %v1625_v19, %v1625_v19  ;;  %v1643_v35 = vmul.f32 %v1632_v53, %v1632_v53  ;;  %v1663_v39 = vmul.f32 %v1931_v28, %v1625_v19  ;;  %v1671_v6 = vmul.f32 %v1660_v37, %v1632_v53 }
 0x134   :  { %v1537_v8 = vmul.f32 %v2002_v24, %v1535_v0  ;;  %v1645_v2 = vmul.f32 %v1639_v54, %v1639_v54  ;;  %v1672_v50 = vmul.f32 %v1931_v28, %v1639_v54  ;;  %vm1543_vm11 = vweird.f32 %v2002_v24 }
 0x135   :  { %v1642_v63 = vadd.f32 %v1641_v9, %v1640_v55  ;;  %v1664_v29 = vadd.f32 %v1663_v39, %v1661_v52  ;;  %vm1441_vm12 = vweird.f32 %v1435_v7  ;;  %v1447_v59 = vand.u32 2147483648, %v1435_v7  ;;  %vm1544_vm14 = vmor %vm1542_vm10, %vm1543_vm11 }
 0x136   :  { %v1538_v34 = vmul.f32 %v2002_v24, %v1537_v8  ;;  %v1673_v49 = vadd.f32 %v1672_v50, %v1671_v6  ;;  %v1445_v46 = vand.u32 2147483647, %v1435_v7 }
 0x137   :  { %v1644_v58 = vadd.f32 %v1643_v35, %v1642_v63  ;;  %v1448_v12 = vor.u32 1.1754944e-38, %v1447_v59 }
 0x138   :  { %v2004_v36 = vpop.eup %2003  ;;  %v1539_v3 = vmul.f32 0.5, %v1538_v34  ;;  %vm1446_vm0 = vcmp.eq.f32.partialorder %v1445_v46, 8.507059e+37 }
 0x139   :  { %v1437_v15 = vmul.f32 %v2004_v36, %v1435_v7  ;;  %vm1442_vm13 = vweird.f32 %v2004_v36  ;;  %v1646_v48 = vadd.f32 %v1645_v2, %v1644_v58 }
 0x13a   :  { %v1540_v51 = vsub.f32 1.5, %v1539_v3  ;;  %vm1443_vm15 = vmor %vm1441_vm12, %vm1442_vm13 }
 0x13b   :  { %v1438_v11 = vsub.f32 1.0, %v1437_v15  ;;  %v1647_v27 = vadd.f32 1e-12, %v1646_v48  ;;  %vm1659_vm7 = vcmp.eq.f32.partialorder %v1646_v48, %v1646_v48 }
 0x13c   :  { %v1541_v61 = vmul.f32 %v2002_v24, %v1540_v51 }
 0x13d   :  { %v1439_v45 = vmul.f32 %v2004_v36, %v1438_v11  ;;  %2005 = vrsqrt.f32 %v1647_v27  ;;  %vm1654_vm4 = vweird.f32 %v1647_v27 }
 0x13e   :  { %v1545_v38 = vsel %vm1544_vm14, %v2002_v24, %v1541_v61 }
 0x13f   :  { %v1440_v26 = vadd.f32 %v2004_v36, %v1439_v45  ;;  %v1546_v41 = vmul.f32 %v1545_v38, %v2969_v62 }
 0x141   :  { %v1444_v22 = vsel %vm1443_vm15, %v2004_v36, %v1440_v26  ;;  %v1553_v0 = vmul.f32 %v3772_v5, %v1546_v41  ;;  %v1562_v4 = vmul.f32 %v3783_v56, %v1546_v41 }
 0x142   :  { %v1449_v31 = vsel %vm1446_vm0, %v1448_v12, %v1444_v22 }
 0x143   :  { %v1450_v13 = vmul.f32 %v1449_v31, %v1425_v33  ;;  %v1453_v32 = vmul.f32 %v1449_v31, %v1434_v60  ;;  %v1554_v21 = vsel %vm1547_vm1, %v1553_v0, 0.0  ;;  %v1563_v17 = vsel %vm1547_vm1, %v1562_v4, 0.0  ;;  %v2006_v14 = vpop.eup %2005 }
 0x144   :  { %vm1555_vm2 = vcmp.ge.f32.partialorder %v1554_v21, 0.0  ;;  %v1556_v10 = vmul.f32 1e-05, %v1554_v21  ;;  %vm1564_vm3 = vcmp.ge.f32.partialorder %v1563_v17, 0.0  ;;  %v1565_v43 = vmul.f32 1e-05, %v1563_v17 }
 0x145   :  { %1906 = vst [vmem:[%s3869_s4 + $0x20] sm:$0xff] %v1450_v13  ;;  %v1649_v16 = vmul.f32 %v2006_v14, %v1647_v27  ;;  %vm1655_vm5 = vweird.f32 %v2006_v14 }
 0x146   :  { %1907 = vst [vmem:[%s3869_s4 + $0x28] sm:$0xff] %v1453_v32  ;;  %v1557_v5 = vsel %vm1555_vm2, %v1554_v21, %v1556_v10  ;;  %v1566_v56 = vsel %vm1564_vm3, %v1563_v17, %v1565_v43  ;;  %vm1656_vm6 = vmor %vm1654_vm4, %vm1655_vm5 }
 0x147   :  { %v1558_v44 = vand.u32 2147483647, %v1557_v5  ;;  %v1567_v33 = vand.u32 2147483647, %v1566_v56  ;;  %v1650_v42 = vmul.f32 %v2006_v14, %v1649_v16 }
 0x149   :  { %v1568_v60 = vadd.f32 %v1567_v33, %v1558_v44  ;;  %v1651_v7 = vmul.f32 0.5, %v1650_v42 }
 0x14b   :  { %2007 = vrcp.f32 %v1568_v60  ;;  %v1652_v1 = vsub.f32 1.5, %v1651_v7  ;;  %v1580_v23 = vand.u32 2147483648, %v1568_v60  ;;  %vm1574_vm8 = vweird.f32 %v1568_v60 }
 0x14c   :  { %v1578_v53 = vand.u32 2147483647, %v1568_v60 }
 0x14d   :  { %v1653_v20 = vmul.f32 %v2006_v14, %v1652_v1  ;;  %v1581_v54 = vor.u32 1.1754944e-38, %v1580_v23 }
 0x14e   :  { %vm1579_vm13 = vcmp.eq.f32.partialorder %v1578_v53, 8.507059e+37 }
 0x14f   :  { %v1657_v47 = vsel %vm1656_vm6, %v2006_v14, %v1653_v20 }
 0x150   :  { %v1658_v57 = vmul.f32 %v1657_v47, %v2969_v62 }
 0x151   :  { %v2008_v40 = vpop.eup %2007 }
 0x152   :  { %v1570_v18 = vmul.f32 %v2008_v40, %v1568_v60  ;;  %v1665_v24 = vmul.f32 %v1664_v29, %v1658_v57  ;;  %v1674_v30 = vmul.f32 %v1673_v49, %v1658_v57  ;;  %vm1575_vm9 = vweird.f32 %v2008_v40 }
 0x153   :  { %vm1576_vm12 = vmor %vm1574_vm8, %vm1575_vm9 }
 0x154   :  { %v1571_v19 = vsub.f32 1.0, %v1570_v18  ;;  %v1666_v25 = vsel %vm1659_vm7, %v1665_v24, 0.0  ;;  %v1675_v37 = vsel %vm1659_vm7, %v1674_v30, 0.0 }
 0x155   :  { %vm1667_vm10 = vcmp.ge.f32.partialorder %v1666_v25, 0.0  ;;  %v1668_v8 = vmul.f32 1e-05, %v1666_v25  ;;  %vm1676_vm11 = vcmp.ge.f32.partialorder %v1675_v37, 0.0  ;;  %v1677_v55 = vmul.f32 1e-05, %v1675_v37 }
 0x156   :  { %v1572_v28 = vmul.f32 %v2008_v40, %v1571_v19 }
 0x157   :  { %v1669_v62 = vsel %vm1667_vm10, %v1666_v25, %v1668_v8  ;;  %v1678_v34 = vsel %vm1676_vm11, %v1675_v37, %v1677_v55 }
 0x158   :  { %v1573_v9 = vadd.f32 %v2008_v40, %v1572_v28  ;;  %v1670_v35 = vand.u32 2147483647, %v1669_v62  ;;  %v1679_v39 = vand.u32 2147483647, %v1678_v34 }
 0x15a   :  { %v1577_v52 = vsel %vm1576_vm12, %v2008_v40, %v1573_v9  ;;  %v1680_v50 = vadd.f32 %v1679_v39, %v1670_v35 }
 0x15b   :  { %v1582_v6 = vsel %vm1579_vm13, %v1581_v54, %v1577_v52 }
 0x15c   :  { %v1583_v63 = vmul.f32 %v1582_v6, %v1558_v44  ;;  %v1586_v2 = vmul.f32 %v1582_v6, %v1567_v33  ;;  %2009 = vrcp.f32 %v1680_v50  ;;  %v1692_v29 = vand.u32 2147483648, %v1680_v50 }
 0x15d   :  { %vm1686_vm14 = vweird.f32 %v1680_v50  ;;  %v1690_v58 = vand.u32 2147483647, %v1680_v50 }
 0x15e   :  { %1922 = vst [vmem:[%s3869_s4 + $0x10] sm:$0xff] %v1583_v63  ;;  %v1693_v59 = vor.u32 1.1754944e-38, %v1692_v29 }
 0x15f   :  { %1923 = vst [vmem:[%s3869_s4 + $0x18] sm:$0xff] %v1586_v2  ;;  %vm1691_vm1 = vcmp.eq.f32.partialorder %v1690_v58, 8.507059e+37 }
 0x162   :  { %v2010_v36 = vpop.eup %2009 }
 0x163   :  { %v1682_v3 = vmul.f32 %v2010_v36, %v1680_v50  ;;  %vm1687_vm15 = vweird.f32 %v2010_v36 }
 0x164   :  { %vm1688_vm0 = vmor %vm1686_vm14, %vm1687_vm15 }
 0x165   :  { %v1683_v15 = vsub.f32 1.0, %v1682_v3 }
 0x167   :  { %v1684_v49 = vmul.f32 %v2010_v36, %v1683_v15 }
 0x169   :  { %v1685_v51 = vadd.f32 %v2010_v36, %v1684_v49 }
 0x16b   :  { %v1689_v11 = vsel %vm1688_vm0, %v2010_v36, %v1685_v51 }
 0x16c   :  { %v1694_v46 = vsel %vm1691_vm1, %v1693_v59, %v1689_v11 }
 0x16d   :  { %v1695_v48 = vmul.f32 %v1694_v46, %v1670_v35  ;;  %v1697_v61 = vmul.f32 %v1694_v46, %v1679_v39 }
 0x16f   :  { %1696 = vst [vmem:[%s3869_s4] sm:$0xff] %v1695_v48 }
 0x170   :  { %1932 = vst [vmem:[%s3869_s4 + $0x8] sm:$0xff] %v1697_v61 }
 0x171   :  { %1704 = vsyncpa [#allocation6], 1 }
 0x172   :  { %1705 = vsyncpa [#allocation8], 1 }

</bundles_post_ra>
